<compile_context>
chip_gen: v6e
topology: v6e:2x2x1
jax: 0.10.0
libtpu: 0.0.40
codegen_flags: <defaults>
</compile_context>

<pallas_src>
import jax
import jax.numpy as jnp
import numpy as np
from jax.experimental import pallas as pl
from jax.experimental.pallas import tpu as pltpu


# Flat-grid geometry (specialized to the 1x28x28 input implied by the module's
# classifier in_features = 32*7*7).
_LXIN = 1152   # padded 30x30 input row, flattened, zero-padded to 9*128 lanes
_LC1 = 1024    # conv1 output lanes on the 30-wide flat grid (8*128)
_LM1 = 896     # pool1 max-base lanes (7*128)
_LP1 = 384     # pool1 output: zero-padded 16-wide grid, padded to 3*128 lanes
_LC2 = 256     # conv2 output lanes on the 16-wide flat grid (2*128)
_LM2 = 224     # pool2 max-base lanes
_LP2 = 64      # pool2 output lanes (49 valid + 15 zero)
_NCLS = 128    # padded classifier output lanes (10 valid)


# ------------------------------ fused kernel ------------------------------- #

def _cnn_kernel(x_ref, w1_ref, b1_ref, w2_ref, b2_ref, sp1_ref, sp2_ref,
                fc1w_ref, fc1b_ref, fc2w_ref, fc2b_ref, o_ref):
    f32, bf16 = jnp.float32, jnp.bfloat16
    x = x_ref[0]                                      # (1, 1152) f32
    w1 = w1_ref[...]                                  # (16, 9)   f32

    # ---- conv1 (1->16, 3x3, pad 1): 9 shifted multiply-accumulates (VPU) ----
    # x[0, 30*r + c] = padded input pixel (r, c); output pixel (h, w) lands at
    # flat index 30*h + w (tail lanes are junk but finite).
    acc1 = x[:, 0:_LC1] * w1[:, 0:1]
    for t in range(1, 9):
        ky, kx = divmod(t, 3)
        off = 30 * ky + kx
        acc1 = acc1 + x[:, off:off + _LC1] * w1[:, t:t + 1]
    c1 = jnp.maximum(acc1 + b1_ref[...], 0.0)         # (16, 1024)

    # ---- maxpool1 2x2/2: max of 4 lane-shifted slices, then the precomputed
    # ---- one-hot "select + re-pad" matmul on the MXU ------------------------
    m1 = jnp.maximum(jnp.maximum(c1[:, 0:_LM1], c1[:, 1:_LM1 + 1]),
                     jnp.maximum(c1[:, 30:_LM1 + 30], c1[:, 31:_LM1 + 31]))
    p1 = jnp.dot(m1.astype(bf16), sp1_ref[...],
                 preferred_element_type=f32).astype(bf16)        # (16, 384)

    # ---- conv2 (16->32, 3x3, pad 1): single fused K=144 MXU dot -------------
    # RHS stacks the 9 lane-shifted p1 slices along sublanes (16-row pieces,
    # bf16 sublane-tile aligned).
    rhs = jnp.concatenate(
        [p1[:, 16 * ky + kx: 16 * ky + kx + _LC2]
         for ky in range(3) for kx in range(3)], axis=0)         # (144, 256)
    c2 = jnp.dot(w2_ref[...], rhs, preferred_element_type=f32)   # (32, 256)
    c2 = jnp.maximum(c2 + b2_ref[...], 0.0)

    # ---- maxpool2 2x2/2 + one-hot select of the 7x7 valid positions ---------
    m2 = jnp.maximum(jnp.maximum(c2[:, 0:_LM2], c2[:, 1:_LM2 + 1]),
                     jnp.maximum(c2[:, 16:_LM2 + 16], c2[:, 17:_LM2 + 17]))
    p2 = jnp.dot(m2.astype(bf16), sp2_ref[...],
                 preferred_element_type=f32)                     # (32, 64)

    # ---- AdaptiveAvgPool2d((7,7)) is the identity here (map is already 7x7).
    # ---- classifier: channel-accumulated FC1 (no flatten relayout), ReLU,
    # ---- FC2 into a lane-dense padded (1, 128) output -----------------------
    p2b = p2.astype(bf16)
    h = fc1b_ref[...]                                            # (1, 128) f32
    for c in range(32):
        h = h + jnp.dot(p2b[c:c + 1, :], fc1w_ref[c],
                        preferred_element_type=f32)
    h = jnp.maximum(h, 0.0).astype(bf16)
    o_ref[0] = jnp.dot(h, fc2w_ref[...],
                       preferred_element_type=f32) + fc2b_ref[...]


# -------------------------------- wrappers --------------------------------- #

def prepare_params(p):
    """One-time repack of torch-convention params into the kernel layout."""
    f32, bf16 = jnp.float32, jnp.bfloat16

    # pool1 select: conv1 flat-30 base index i = 60a + 2b  ->  zero-padded
    # flat-16 pool1-grid index m = 16*(a+1) + (b+1),  a, b in [0, 14).
    sp1 = np.zeros((_LM1, _LP1), np.float32)
    for a in range(14):
        for b in range(14):
            sp1[60 * a + 2 * b, 16 * (a + 1) + (b + 1)] = 1.0

    # pool2 select: conv2 flat-16 base index i = 32a + 2b -> j = 7a + b.
    sp2 = np.zeros((_LM2, _LP2), np.float32)
    for a in range(7):
        for b in range(7):
            sp2[32 * a + 2 * b, 7 * a + b] = 1.0

    fc1 = p["fc1_w"].T.reshape(32, 49, 128)            # [(c, hw), out] order
    fc1 = jnp.pad(fc1, ((0, 0), (0, _LP2 - 49), (0, 0)))
    fc2 = jnp.pad(p["fc2_w"].T, ((0, 0), (0, _NCLS - 10)))
    return {
        "w1c": p["w1"].reshape(9, 16).T.astype(f32),            # (16, 9)
        "b1c": p["b1"].reshape(16, 1).astype(f32),
        "w2m": p["w2"].reshape(9 * 16, 32).T.astype(bf16),      # (32, 144)
        "b2c": p["b2"].reshape(32, 1).astype(f32),
        "sp1": jnp.asarray(sp1, bf16),                          # (896, 384)
        "sp2": jnp.asarray(sp2, bf16),                          # (224, 64)
        "fc1wr": fc1.astype(bf16),                              # (32, 64, 128)
        "fc1b": p["fc1_b"].reshape(1, 128).astype(f32),
        "fc2wp": fc2.astype(bf16),                              # (128, 128)
        "fc2bp": jnp.pad(p["fc2_b"], (0, _NCLS - 10)).reshape(1, _NCLS)
                    .astype(f32),
    }


def cnn_forward(x_nchw, kp):
    n, c, h, w = x_nchw.shape
    assert (c, h, w) == (1, 28, 28), "fused kernel is specialized to 1x28x28"
    # TODO(synk): general AdaptiveAvgPool2d uneven-bin handling for inputs whose
    # pooled feature map is not already 7x7 is not implemented.
    xp = jnp.pad(x_nchw[:, 0], ((0, 0), (1, 1), (1, 1)))          # (N, 30, 30)
    xflat = jnp.pad(xp.reshape(n, 1, 900), ((0, 0), (0, 0), (0, _LXIN - 900)))

    def full(shape):
        return pl.BlockSpec(shape, lambda i, _s=len(shape): (0,) * _s)

    out = pl.pallas_call(
        _cnn_kernel,
        out_shape=jax.ShapeDtypeStruct((n, 1, _NCLS), jnp.float32),
        grid=(n,),
        in_specs=[
            pl.BlockSpec((1, 1, _LXIN), lambda i: (i, 0, 0)),     # x (per sample)
            full((16, 9)), full((16, 1)),                         # conv1 w/b
            full((32, 144)), full((32, 1)),                       # conv2 w/b
            full((_LM1, _LP1)), full((_LM2, _LP2)),               # sp1, sp2
            full((32, _LP2, 128)), full((1, 128)),                # fc1 w/b
            full((128, _NCLS)), full((1, _NCLS)),                 # fc2 w/b
        ],
        out_specs=pl.BlockSpec((1, 1, _NCLS), lambda i: (i, 0, 0)),
        compiler_params=pltpu.CompilerParams(
            dimension_semantics=("parallel",)),
    )(xflat, kp["w1c"], kp["b1c"], kp["w2m"], kp["b2c"], kp["sp1"], kp["sp2"],
      kp["fc1wr"], kp["fc1b"], kp["fc2wp"], kp["fc2bp"])
    return out[:, 0, :10]


# ------------------------- params / reference / main ----------------------- #

def init_params(key):
    ks = jax.random.split(key, 8)

    def u(k, shape, fan_in):
        bound = 1.0 / (fan_in ** 0.5)
        return jax.random.uniform(k, shape, jnp.float32, -bound, bound)

    return {
        # conv weights stored in HWIO (torch OIHW transposed)
        "w1": u(ks[0], (3, 3, 1, 16), 9 * 1),
        "b1": u(ks[1], (16,), 9 * 1),
        "w2": u(ks[2], (3, 3, 16, 32), 9 * 16),
        "b2": u(ks[3], (32,), 9 * 16),
        # linear weights in torch (out_features, in_features) convention
        "fc1_w": u(ks[4], (128, 32 * 7 * 7), 32 * 7 * 7),
        "fc1_b": u(ks[5], (128,), 32 * 7 * 7),
        "fc2_w": u(ks[6], (10, 128), 128),
        "fc2_b": u(ks[7], (10,), 128),
    }


def cnn_reference(x_nchw, p):
    """Pure-JAX (f32) reference of the same forward pass."""
    x = jnp.transpose(x_nchw, (0, 2, 3, 1))

    def conv(x, w, b):
        y = jax.lax.conv_general_dilated(
            x, w, (1, 1), "SAME", dimension_numbers=("NHWC", "HWIO", "NHWC"))
        return jax.nn.relu(y + b)

    def pool_max(x):
        return jax.lax.reduce_window(
            x, -jnp.inf, jax.lax.max, (1, 2, 2, 1), (1, 2, 2, 1), "VALID")

    x = pool_max(conv(x, p["w1"], p["b1"]))
    x = pool_max(conv(x, p["w2"], p["b2"]))
    kh, kw = x.shape[1] // 7, x.shape[2] // 7
    x = jax.lax.reduce_window(
        x, 0.0, jax.lax.add, (1, kh, kw, 1), (1, kh, kw, 1), "VALID") / (kh * kw)
    x = jnp.transpose(x, (0, 3, 1, 2)).reshape(x.shape[0], -1)
    h = jax.nn.relu(x @ p["fc1_w"].T + p["fc1_b"])
    return h @ p["fc2_w"].T + p["fc2_b"]


if __name__ == "__main__":
    key = jax.random.PRNGKey(0)
    k_x, k_p = jax.random.split(key)
    # MNIST-like input implied by the module: (N, 1, 28, 28) -> 32*7*7 features
    x = jax.random.normal(k_x, (2, 1, 28, 28), dtype=jnp.float32)
    params = init_params(k_p)
    kparams = prepare_params(params)

    out = jax.block_until_ready(jax.jit(cnn_forward)(x, kparams))
    assert out.shape == (2, 10), out.shape

    ref = jax.block_until_ready(cnn_reference(x, params))
    max_err = jnp.max(jnp.abs(out - ref))
    # bf16 MXU operands (f32 accumulate) shift logits by O(1e-3); keep a
    # correspondingly loose tolerance against the f32 reference.
    assert jnp.allclose(out, ref, rtol=3e-2, atol=3e-2), (max_err, out, ref)

    print("KERNEL_OK")
</pallas_src>

<mosaic_0001>
module attributes {stable_mosaic.version = 11 : i64} {
  func.func @_cnn_kernel(%arg0: i32, %arg1: memref<1x1x1152xf32, #tpu.memory_space<vmem>>, %arg2: memref<16x9xf32, #tpu.memory_space<vmem>>, %arg3: memref<16x1xf32, #tpu.memory_space<vmem>>, %arg4: memref<32x144xbf16, #tpu.memory_space<vmem>>, %arg5: memref<32x1xf32, #tpu.memory_space<vmem>>, %arg6: memref<896x384xbf16, #tpu.memory_space<vmem>>, %arg7: memref<224x64xbf16, #tpu.memory_space<vmem>>, %arg8: memref<32x64x128xbf16, #tpu.memory_space<vmem>>, %arg9: memref<1x128xf32, #tpu.memory_space<vmem>>, %arg10: memref<128x128xbf16, #tpu.memory_space<vmem>>, %arg11: memref<1x128xf32, #tpu.memory_space<vmem>>, %arg12: memref<1x1x128xf32, #tpu.memory_space<vmem>>) attributes {dimension_semantics = [#tpu.dimension_semantics<parallel>], iteration_bounds = array<i64: 2>, scalar_prefetch = 0 : i64, scratch_operands = 0 : i64, tpu.core_type = #tpu.core_type<tc>, window_params = [{transform_indices = @transform_0, window_bounds = array<i64: 1, 1, 1152>}, {pipeline_mode = #tpu.pipeline_mode<synchronous>, transform_indices = @transform_1, window_bounds = array<i64: 16, 9>}, {pipeline_mode = #tpu.pipeline_mode<synchronous>, transform_indices = @transform_2, window_bounds = array<i64: 16, 1>}, {pipeline_mode = #tpu.pipeline_mode<synchronous>, transform_indices = @transform_3, window_bounds = array<i64: 32, 144>}, {pipeline_mode = #tpu.pipeline_mode<synchronous>, transform_indices = @transform_4, window_bounds = array<i64: 32, 1>}, {pipeline_mode = #tpu.pipeline_mode<synchronous>, transform_indices = @transform_5, window_bounds = array<i64: 896, 384>}, {pipeline_mode = #tpu.pipeline_mode<synchronous>, transform_indices = @transform_6, window_bounds = array<i64: 224, 64>}, {pipeline_mode = #tpu.pipeline_mode<synchronous>, transform_indices = @transform_7, window_bounds = array<i64: 32, 64, 128>}, {pipeline_mode = #tpu.pipeline_mode<synchronous>, transform_indices = @transform_8, window_bounds = array<i64: 1, 128>}, {pipeline_mode = #tpu.pipeline_mode<synchronous>, transform_indices = @transform_9, window_bounds = array<i64: 128, 128>}, {pipeline_mode = #tpu.pipeline_mode<synchronous>, transform_indices = @transform_10, window_bounds = array<i64: 1, 128>}, {transform_indices = @transform_11, window_bounds = array<i64: 1, 1, 128>}]} {
    %c0 = arith.constant 0 : index
    %c0_0 = arith.constant 0 : index
    %c0_1 = arith.constant 0 : index
    %0 = vector.load %arg1[%c0, %c0_0, %c0_1] : memref<1x1x1152xf32, #tpu.memory_space<vmem>>, vector<1x1x1152xf32>
    %1 = vector.shape_cast %0 : vector<1x1x1152xf32> to vector<1x1152xf32>
    %c0_2 = arith.constant 0 : index
    %c0_3 = arith.constant 0 : index
    %2 = vector.load %arg2[%c0_2, %c0_3] : memref<16x9xf32, #tpu.memory_space<vmem>>, vector<16x9xf32>
    %3 = vector.extract_strided_slice %1 {offsets = [0, 0], sizes = [1, 1024], strides = [1, 1]} : vector<1x1152xf32> to vector<1x1024xf32>
    %4 = vector.extract_strided_slice %2 {offsets = [0, 0], sizes = [16, 1], strides = [1, 1]} : vector<16x9xf32> to vector<16x1xf32>
    %5 = vector.broadcast %3 : vector<1x1024xf32> to vector<16x1024xf32>
    %6 = vector.broadcast %4 : vector<16x1xf32> to vector<16x1024xf32>
    %7 = arith.mulf %5, %6 : vector<16x1024xf32>
    %8 = vector.extract_strided_slice %1 {offsets = [0, 1], sizes = [1, 1024], strides = [1, 1]} : vector<1x1152xf32> to vector<1x1024xf32>
    %9 = vector.extract_strided_slice %2 {offsets = [0, 1], sizes = [16, 1], strides = [1, 1]} : vector<16x9xf32> to vector<16x1xf32>
    %10 = vector.broadcast %8 : vector<1x1024xf32> to vector<16x1024xf32>
    %11 = vector.broadcast %9 : vector<16x1xf32> to vector<16x1024xf32>
    %12 = arith.mulf %10, %11 : vector<16x1024xf32>
    %13 = arith.addf %7, %12 : vector<16x1024xf32>
    %14 = vector.extract_strided_slice %1 {offsets = [0, 2], sizes = [1, 1024], strides = [1, 1]} : vector<1x1152xf32> to vector<1x1024xf32>
    %15 = vector.extract_strided_slice %2 {offsets = [0, 2], sizes = [16, 1], strides = [1, 1]} : vector<16x9xf32> to vector<16x1xf32>
    %16 = vector.broadcast %14 : vector<1x1024xf32> to vector<16x1024xf32>
    %17 = vector.broadcast %15 : vector<16x1xf32> to vector<16x1024xf32>
    %18 = arith.mulf %16, %17 : vector<16x1024xf32>
    %19 = arith.addf %13, %18 : vector<16x1024xf32>
    %20 = vector.extract_strided_slice %1 {offsets = [0, 30], sizes = [1, 1024], strides = [1, 1]} : vector<1x1152xf32> to vector<1x1024xf32>
    %21 = vector.extract_strided_slice %2 {offsets = [0, 3], sizes = [16, 1], strides = [1, 1]} : vector<16x9xf32> to vector<16x1xf32>
    %22 = vector.broadcast %20 : vector<1x1024xf32> to vector<16x1024xf32>
    %23 = vector.broadcast %21 : vector<16x1xf32> to vector<16x1024xf32>
    %24 = arith.mulf %22, %23 : vector<16x1024xf32>
    %25 = arith.addf %19, %24 : vector<16x1024xf32>
    %26 = vector.extract_strided_slice %1 {offsets = [0, 31], sizes = [1, 1024], strides = [1, 1]} : vector<1x1152xf32> to vector<1x1024xf32>
    %27 = vector.extract_strided_slice %2 {offsets = [0, 4], sizes = [16, 1], strides = [1, 1]} : vector<16x9xf32> to vector<16x1xf32>
    %28 = vector.broadcast %26 : vector<1x1024xf32> to vector<16x1024xf32>
    %29 = vector.broadcast %27 : vector<16x1xf32> to vector<16x1024xf32>
    %30 = arith.mulf %28, %29 : vector<16x1024xf32>
    %31 = arith.addf %25, %30 : vector<16x1024xf32>
    %32 = vector.extract_strided_slice %1 {offsets = [0, 32], sizes = [1, 1024], strides = [1, 1]} : vector<1x1152xf32> to vector<1x1024xf32>
    %33 = vector.extract_strided_slice %2 {offsets = [0, 5], sizes = [16, 1], strides = [1, 1]} : vector<16x9xf32> to vector<16x1xf32>
    %34 = vector.broadcast %32 : vector<1x1024xf32> to vector<16x1024xf32>
    %35 = vector.broadcast %33 : vector<16x1xf32> to vector<16x1024xf32>
    %36 = arith.mulf %34, %35 : vector<16x1024xf32>
    %37 = arith.addf %31, %36 : vector<16x1024xf32>
    %38 = vector.extract_strided_slice %1 {offsets = [0, 60], sizes = [1, 1024], strides = [1, 1]} : vector<1x1152xf32> to vector<1x1024xf32>
    %39 = vector.extract_strided_slice %2 {offsets = [0, 6], sizes = [16, 1], strides = [1, 1]} : vector<16x9xf32> to vector<16x1xf32>
    %40 = vector.broadcast %38 : vector<1x1024xf32> to vector<16x1024xf32>
    %41 = vector.broadcast %39 : vector<16x1xf32> to vector<16x1024xf32>
    %42 = arith.mulf %40, %41 : vector<16x1024xf32>
    %43 = arith.addf %37, %42 : vector<16x1024xf32>
    %44 = vector.extract_strided_slice %1 {offsets = [0, 61], sizes = [1, 1024], strides = [1, 1]} : vector<1x1152xf32> to vector<1x1024xf32>
    %45 = vector.extract_strided_slice %2 {offsets = [0, 7], sizes = [16, 1], strides = [1, 1]} : vector<16x9xf32> to vector<16x1xf32>
    %46 = vector.broadcast %44 : vector<1x1024xf32> to vector<16x1024xf32>
    %47 = vector.broadcast %45 : vector<16x1xf32> to vector<16x1024xf32>
    %48 = arith.mulf %46, %47 : vector<16x1024xf32>
    %49 = arith.addf %43, %48 : vector<16x1024xf32>
    %50 = vector.extract_strided_slice %1 {offsets = [0, 62], sizes = [1, 1024], strides = [1, 1]} : vector<1x1152xf32> to vector<1x1024xf32>
    %51 = vector.extract_strided_slice %2 {offsets = [0, 8], sizes = [16, 1], strides = [1, 1]} : vector<16x9xf32> to vector<16x1xf32>
    %52 = vector.broadcast %50 : vector<1x1024xf32> to vector<16x1024xf32>
    %53 = vector.broadcast %51 : vector<16x1xf32> to vector<16x1024xf32>
    %54 = arith.mulf %52, %53 : vector<16x1024xf32>
    %55 = arith.addf %49, %54 : vector<16x1024xf32>
    %c0_4 = arith.constant 0 : index
    %c0_5 = arith.constant 0 : index
    %56 = vector.load %arg3[%c0_4, %c0_5] : memref<16x1xf32, #tpu.memory_space<vmem>>, vector<16x1xf32>
    %57 = vector.broadcast %56 : vector<16x1xf32> to vector<16x1024xf32>
    %58 = arith.addf %55, %57 : vector<16x1024xf32>
    %cst = arith.constant 0.000000e+00 : f32
    %59 = vector.broadcast %cst : f32 to vector<16x1024xf32>
    %60 = arith.maximumf %58, %59 : vector<16x1024xf32>
    %61 = vector.extract_strided_slice %60 {offsets = [0, 0], sizes = [16, 896], strides = [1, 1]} : vector<16x1024xf32> to vector<16x896xf32>
    %62 = vector.extract_strided_slice %60 {offsets = [0, 1], sizes = [16, 896], strides = [1, 1]} : vector<16x1024xf32> to vector<16x896xf32>
    %63 = arith.maximumf %61, %62 : vector<16x896xf32>
    %64 = vector.extract_strided_slice %60 {offsets = [0, 30], sizes = [16, 896], strides = [1, 1]} : vector<16x1024xf32> to vector<16x896xf32>
    %65 = vector.extract_strided_slice %60 {offsets = [0, 31], sizes = [16, 896], strides = [1, 1]} : vector<16x1024xf32> to vector<16x896xf32>
    %66 = arith.maximumf %64, %65 : vector<16x896xf32>
    %67 = arith.maximumf %63, %66 : vector<16x896xf32>
    %68 = arith.truncf %67 : vector<16x896xf32> to vector<16x896xbf16>
    %c0_6 = arith.constant 0 : index
    %c0_7 = arith.constant 0 : index
    %69 = vector.load %arg6[%c0_6, %c0_7] : memref<896x384xbf16, #tpu.memory_space<vmem>>, vector<896x384xbf16>
    %cst_8 = arith.constant dense<0.000000e+00> : vector<16x384xf32>
    %70 = tpu.matmul %68, %69, %cst_8 {dimension_numbers = #tpu.dot_dimension_numbers<[1], [0], [0], [1], [0, 0, 1, 1], [], []>} : vector<16x896xbf16>, vector<896x384xbf16>, vector<16x384xf32> -> vector<16x384xf32>
    %71 = arith.truncf %70 : vector<16x384xf32> to vector<16x384xbf16>
    %72 = vector.extract_strided_slice %71 {offsets = [0, 0], sizes = [16, 256], strides = [1, 1]} : vector<16x384xbf16> to vector<16x256xbf16>
    %73 = vector.extract_strided_slice %71 {offsets = [0, 1], sizes = [16, 256], strides = [1, 1]} : vector<16x384xbf16> to vector<16x256xbf16>
    %74 = vector.extract_strided_slice %71 {offsets = [0, 2], sizes = [16, 256], strides = [1, 1]} : vector<16x384xbf16> to vector<16x256xbf16>
    %75 = vector.extract_strided_slice %71 {offsets = [0, 16], sizes = [16, 256], strides = [1, 1]} : vector<16x384xbf16> to vector<16x256xbf16>
    %76 = vector.extract_strided_slice %71 {offsets = [0, 17], sizes = [16, 256], strides = [1, 1]} : vector<16x384xbf16> to vector<16x256xbf16>
    %77 = vector.extract_strided_slice %71 {offsets = [0, 18], sizes = [16, 256], strides = [1, 1]} : vector<16x384xbf16> to vector<16x256xbf16>
    %78 = vector.extract_strided_slice %71 {offsets = [0, 32], sizes = [16, 256], strides = [1, 1]} : vector<16x384xbf16> to vector<16x256xbf16>
    %79 = vector.extract_strided_slice %71 {offsets = [0, 33], sizes = [16, 256], strides = [1, 1]} : vector<16x384xbf16> to vector<16x256xbf16>
    %80 = vector.extract_strided_slice %71 {offsets = [0, 34], sizes = [16, 256], strides = [1, 1]} : vector<16x384xbf16> to vector<16x256xbf16>
    %81 = tpu.concatenate %72, %73, %74, %75, %76, %77, %78, %79, %80 in 0 : vector<16x256xbf16>, vector<16x256xbf16>, vector<16x256xbf16>, vector<16x256xbf16>, vector<16x256xbf16>, vector<16x256xbf16>, vector<16x256xbf16>, vector<16x256xbf16>, vector<16x256xbf16> -> vector<144x256xbf16>
    %c0_9 = arith.constant 0 : index
    %c0_10 = arith.constant 0 : index
    %82 = vector.load %arg4[%c0_9, %c0_10] : memref<32x144xbf16, #tpu.memory_space<vmem>>, vector<32x144xbf16>
    %cst_11 = arith.constant dense<0.000000e+00> : vector<32x256xf32>
    %83 = tpu.matmul %82, %81, %cst_11 {dimension_numbers = #tpu.dot_dimension_numbers<[1], [0], [0], [1], [0, 0, 1, 1], [], []>} : vector<32x144xbf16>, vector<144x256xbf16>, vector<32x256xf32> -> vector<32x256xf32>
    %c0_12 = arith.constant 0 : index
    %c0_13 = arith.constant 0 : index
    %84 = vector.load %arg5[%c0_12, %c0_13] : memref<32x1xf32, #tpu.memory_space<vmem>>, vector<32x1xf32>
    %85 = vector.broadcast %84 : vector<32x1xf32> to vector<32x256xf32>
    %86 = arith.addf %83, %85 : vector<32x256xf32>
    %cst_14 = arith.constant 0.000000e+00 : f32
    %87 = vector.broadcast %cst_14 : f32 to vector<32x256xf32>
    %88 = arith.maximumf %86, %87 : vector<32x256xf32>
    %89 = vector.extract_strided_slice %88 {offsets = [0, 0], sizes = [32, 224], strides = [1, 1]} : vector<32x256xf32> to vector<32x224xf32>
    %90 = vector.extract_strided_slice %88 {offsets = [0, 1], sizes = [32, 224], strides = [1, 1]} : vector<32x256xf32> to vector<32x224xf32>
    %91 = arith.maximumf %89, %90 : vector<32x224xf32>
    %92 = vector.extract_strided_slice %88 {offsets = [0, 16], sizes = [32, 224], strides = [1, 1]} : vector<32x256xf32> to vector<32x224xf32>
    %93 = vector.extract_strided_slice %88 {offsets = [0, 17], sizes = [32, 224], strides = [1, 1]} : vector<32x256xf32> to vector<32x224xf32>
    %94 = arith.maximumf %92, %93 : vector<32x224xf32>
    %95 = arith.maximumf %91, %94 : vector<32x224xf32>
    %96 = arith.truncf %95 : vector<32x224xf32> to vector<32x224xbf16>
    %c0_15 = arith.constant 0 : index
    %c0_16 = arith.constant 0 : index
    %97 = vector.load %arg7[%c0_15, %c0_16] : memref<224x64xbf16, #tpu.memory_space<vmem>>, vector<224x64xbf16>
    %cst_17 = arith.constant dense<0.000000e+00> : vector<32x64xf32>
    %98 = tpu.matmul %96, %97, %cst_17 {dimension_numbers = #tpu.dot_dimension_numbers<[1], [0], [0], [1], [0, 0, 1, 1], [], []>} : vector<32x224xbf16>, vector<224x64xbf16>, vector<32x64xf32> -> vector<32x64xf32>
    %99 = arith.truncf %98 : vector<32x64xf32> to vector<32x64xbf16>
    %c0_18 = arith.constant 0 : index
    %c0_19 = arith.constant 0 : index
    %100 = vector.load %arg9[%c0_18, %c0_19] : memref<1x128xf32, #tpu.memory_space<vmem>>, vector<1x128xf32>
    %101 = vector.extract_strided_slice %99 {offsets = [0, 0], sizes = [1, 64], strides = [1, 1]} : vector<32x64xbf16> to vector<1x64xbf16>
    %c0_20 = arith.constant 0 : index
    %c0_21 = arith.constant 0 : index
    %c0_22 = arith.constant 0 : index
    %102 = vector.load %arg8[%c0_20, %c0_21, %c0_22] : memref<32x64x128xbf16, #tpu.memory_space<vmem>>, vector<1x64x128xbf16>
    %103 = vector.shape_cast %102 : vector<1x64x128xbf16> to vector<64x128xbf16>
    %cst_23 = arith.constant dense<0.000000e+00> : vector<1x128xf32>
    %104 = tpu.matmul %101, %103, %cst_23 {dimension_numbers = #tpu.dot_dimension_numbers<[1], [0], [0], [1], [0, 0, 1, 1], [], []>} : vector<1x64xbf16>, vector<64x128xbf16>, vector<1x128xf32> -> vector<1x128xf32>
    %105 = arith.addf %100, %104 : vector<1x128xf32>
    %106 = vector.extract_strided_slice %99 {offsets = [1, 0], sizes = [1, 64], strides = [1, 1]} : vector<32x64xbf16> to vector<1x64xbf16>
    %c1 = arith.constant 1 : index
    %c0_24 = arith.constant 0 : index
    %c0_25 = arith.constant 0 : index
    %107 = vector.load %arg8[%c1, %c0_24, %c0_25] : memref<32x64x128xbf16, #tpu.memory_space<vmem>>, vector<1x64x128xbf16>
    %108 = vector.shape_cast %107 : vector<1x64x128xbf16> to vector<64x128xbf16>
    %cst_26 = arith.constant dense<0.000000e+00> : vector<1x128xf32>
    %109 = tpu.matmul %106, %108, %cst_26 {dimension_numbers = #tpu.dot_dimension_numbers<[1], [0], [0], [1], [0, 0, 1, 1], [], []>} : vector<1x64xbf16>, vector<64x128xbf16>, vector<1x128xf32> -> vector<1x128xf32>
    %110 = arith.addf %105, %109 : vector<1x128xf32>
    %111 = vector.extract_strided_slice %99 {offsets = [2, 0], sizes = [1, 64], strides = [1, 1]} : vector<32x64xbf16> to vector<1x64xbf16>
    %c2 = arith.constant 2 : index
    %c0_27 = arith.constant 0 : index
    %c0_28 = arith.constant 0 : index
    %112 = vector.load %arg8[%c2, %c0_27, %c0_28] : memref<32x64x128xbf16, #tpu.memory_space<vmem>>, vector<1x64x128xbf16>
    %113 = vector.shape_cast %112 : vector<1x64x128xbf16> to vector<64x128xbf16>
    %cst_29 = arith.constant dense<0.000000e+00> : vector<1x128xf32>
    %114 = tpu.matmul %111, %113, %cst_29 {dimension_numbers = #tpu.dot_dimension_numbers<[1], [0], [0], [1], [0, 0, 1, 1], [], []>} : vector<1x64xbf16>, vector<64x128xbf16>, vector<1x128xf32> -> vector<1x128xf32>
    %115 = arith.addf %110, %114 : vector<1x128xf32>
    %116 = vector.extract_strided_slice %99 {offsets = [3, 0], sizes = [1, 64], strides = [1, 1]} : vector<32x64xbf16> to vector<1x64xbf16>
    %c3 = arith.constant 3 : index
    %c0_30 = arith.constant 0 : index
    %c0_31 = arith.constant 0 : index
    %117 = vector.load %arg8[%c3, %c0_30, %c0_31] : memref<32x64x128xbf16, #tpu.memory_space<vmem>>, vector<1x64x128xbf16>
    %118 = vector.shape_cast %117 : vector<1x64x128xbf16> to vector<64x128xbf16>
    %cst_32 = arith.constant dense<0.000000e+00> : vector<1x128xf32>
    %119 = tpu.matmul %116, %118, %cst_32 {dimension_numbers = #tpu.dot_dimension_numbers<[1], [0], [0], [1], [0, 0, 1, 1], [], []>} : vector<1x64xbf16>, vector<64x128xbf16>, vector<1x128xf32> -> vector<1x128xf32>
    %120 = arith.addf %115, %119 : vector<1x128xf32>
    %121 = vector.extract_strided_slice %99 {offsets = [4, 0], sizes = [1, 64], strides = [1, 1]} : vector<32x64xbf16> to vector<1x64xbf16>
    %c4 = arith.constant 4 : index
    %c0_33 = arith.constant 0 : index
    %c0_34 = arith.constant 0 : index
    %122 = vector.load %arg8[%c4, %c0_33, %c0_34] : memref<32x64x128xbf16, #tpu.memory_space<vmem>>, vector<1x64x128xbf16>
    %123 = vector.shape_cast %122 : vector<1x64x128xbf16> to vector<64x128xbf16>
    %cst_35 = arith.constant dense<0.000000e+00> : vector<1x128xf32>
    %124 = tpu.matmul %121, %123, %cst_35 {dimension_numbers = #tpu.dot_dimension_numbers<[1], [0], [0], [1], [0, 0, 1, 1], [], []>} : vector<1x64xbf16>, vector<64x128xbf16>, vector<1x128xf32> -> vector<1x128xf32>
    %125 = arith.addf %120, %124 : vector<1x128xf32>
    %126 = vector.extract_strided_slice %99 {offsets = [5, 0], sizes = [1, 64], strides = [1, 1]} : vector<32x64xbf16> to vector<1x64xbf16>
    %c5 = arith.constant 5 : index
    %c0_36 = arith.constant 0 : index
    %c0_37 = arith.constant 0 : index
    %127 = vector.load %arg8[%c5, %c0_36, %c0_37] : memref<32x64x128xbf16, #tpu.memory_space<vmem>>, vector<1x64x128xbf16>
    %128 = vector.shape_cast %127 : vector<1x64x128xbf16> to vector<64x128xbf16>
    %cst_38 = arith.constant dense<0.000000e+00> : vector<1x128xf32>
    %129 = tpu.matmul %126, %128, %cst_38 {dimension_numbers = #tpu.dot_dimension_numbers<[1], [0], [0], [1], [0, 0, 1, 1], [], []>} : vector<1x64xbf16>, vector<64x128xbf16>, vector<1x128xf32> -> vector<1x128xf32>
    %130 = arith.addf %125, %129 : vector<1x128xf32>
    %131 = vector.extract_strided_slice %99 {offsets = [6, 0], sizes = [1, 64], strides = [1, 1]} : vector<32x64xbf16> to vector<1x64xbf16>
    %c6 = arith.constant 6 : index
    %c0_39 = arith.constant 0 : index
    %c0_40 = arith.constant 0 : index
    %132 = vector.load %arg8[%c6, %c0_39, %c0_40] : memref<32x64x128xbf16, #tpu.memory_space<vmem>>, vector<1x64x128xbf16>
    %133 = vector.shape_cast %132 : vector<1x64x128xbf16> to vector<64x128xbf16>
    %cst_41 = arith.constant dense<0.000000e+00> : vector<1x128xf32>
    %134 = tpu.matmul %131, %133, %cst_41 {dimension_numbers = #tpu.dot_dimension_numbers<[1], [0], [0], [1], [0, 0, 1, 1], [], []>} : vector<1x64xbf16>, vector<64x128xbf16>, vector<1x128xf32> -> vector<1x128xf32>
    %135 = arith.addf %130, %134 : vector<1x128xf32>
    %136 = vector.extract_strided_slice %99 {offsets = [7, 0], sizes = [1, 64], strides = [1, 1]} : vector<32x64xbf16> to vector<1x64xbf16>
    %c7 = arith.constant 7 : index
    %c0_42 = arith.constant 0 : index
    %c0_43 = arith.constant 0 : index
    %137 = vector.load %arg8[%c7, %c0_42, %c0_43] : memref<32x64x128xbf16, #tpu.memory_space<vmem>>, vector<1x64x128xbf16>
    %138 = vector.shape_cast %137 : vector<1x64x128xbf16> to vector<64x128xbf16>
    %cst_44 = arith.constant dense<0.000000e+00> : vector<1x128xf32>
    %139 = tpu.matmul %136, %138, %cst_44 {dimension_numbers = #tpu.dot_dimension_numbers<[1], [0], [0], [1], [0, 0, 1, 1], [], []>} : vector<1x64xbf16>, vector<64x128xbf16>, vector<1x128xf32> -> vector<1x128xf32>
    %140 = arith.addf %135, %139 : vector<1x128xf32>
    %141 = vector.extract_strided_slice %99 {offsets = [8, 0], sizes = [1, 64], strides = [1, 1]} : vector<32x64xbf16> to vector<1x64xbf16>
    %c8 = arith.constant 8 : index
    %c0_45 = arith.constant 0 : index
    %c0_46 = arith.constant 0 : index
    %142 = vector.load %arg8[%c8, %c0_45, %c0_46] : memref<32x64x128xbf16, #tpu.memory_space<vmem>>, vector<1x64x128xbf16>
    %143 = vector.shape_cast %142 : vector<1x64x128xbf16> to vector<64x128xbf16>
    %cst_47 = arith.constant dense<0.000000e+00> : vector<1x128xf32>
    %144 = tpu.matmul %141, %143, %cst_47 {dimension_numbers = #tpu.dot_dimension_numbers<[1], [0], [0], [1], [0, 0, 1, 1], [], []>} : vector<1x64xbf16>, vector<64x128xbf16>, vector<1x128xf32> -> vector<1x128xf32>
    %145 = arith.addf %140, %144 : vector<1x128xf32>
    %146 = vector.extract_strided_slice %99 {offsets = [9, 0], sizes = [1, 64], strides = [1, 1]} : vector<32x64xbf16> to vector<1x64xbf16>
    %c9 = arith.constant 9 : index
    %c0_48 = arith.constant 0 : index
    %c0_49 = arith.constant 0 : index
    %147 = vector.load %arg8[%c9, %c0_48, %c0_49] : memref<32x64x128xbf16, #tpu.memory_space<vmem>>, vector<1x64x128xbf16>
    %148 = vector.shape_cast %147 : vector<1x64x128xbf16> to vector<64x128xbf16>
    %cst_50 = arith.constant dense<0.000000e+00> : vector<1x128xf32>
    %149 = tpu.matmul %146, %148, %cst_50 {dimension_numbers = #tpu.dot_dimension_numbers<[1], [0], [0], [1], [0, 0, 1, 1], [], []>} : vector<1x64xbf16>, vector<64x128xbf16>, vector<1x128xf32> -> vector<1x128xf32>
    %150 = arith.addf %145, %149 : vector<1x128xf32>
    %151 = vector.extract_strided_slice %99 {offsets = [10, 0], sizes = [1, 64], strides = [1, 1]} : vector<32x64xbf16> to vector<1x64xbf16>
    %c10 = arith.constant 10 : index
    %c0_51 = arith.constant 0 : index
    %c0_52 = arith.constant 0 : index
    %152 = vector.load %arg8[%c10, %c0_51, %c0_52] : memref<32x64x128xbf16, #tpu.memory_space<vmem>>, vector<1x64x128xbf16>
    %153 = vector.shape_cast %152 : vector<1x64x128xbf16> to vector<64x128xbf16>
    %cst_53 = arith.constant dense<0.000000e+00> : vector<1x128xf32>
    %154 = tpu.matmul %151, %153, %cst_53 {dimension_numbers = #tpu.dot_dimension_numbers<[1], [0], [0], [1], [0, 0, 1, 1], [], []>} : vector<1x64xbf16>, vector<64x128xbf16>, vector<1x128xf32> -> vector<1x128xf32>
    %155 = arith.addf %150, %154 : vector<1x128xf32>
    %156 = vector.extract_strided_slice %99 {offsets = [11, 0], sizes = [1, 64], strides = [1, 1]} : vector<32x64xbf16> to vector<1x64xbf16>
    %c11 = arith.constant 11 : index
    %c0_54 = arith.constant 0 : index
    %c0_55 = arith.constant 0 : index
    %157 = vector.load %arg8[%c11, %c0_54, %c0_55] : memref<32x64x128xbf16, #tpu.memory_space<vmem>>, vector<1x64x128xbf16>
    %158 = vector.shape_cast %157 : vector<1x64x128xbf16> to vector<64x128xbf16>
    %cst_56 = arith.constant dense<0.000000e+00> : vector<1x128xf32>
    %159 = tpu.matmul %156, %158, %cst_56 {dimension_numbers = #tpu.dot_dimension_numbers<[1], [0], [0], [1], [0, 0, 1, 1], [], []>} : vector<1x64xbf16>, vector<64x128xbf16>, vector<1x128xf32> -> vector<1x128xf32>
    %160 = arith.addf %155, %159 : vector<1x128xf32>
    %161 = vector.extract_strided_slice %99 {offsets = [12, 0], sizes = [1, 64], strides = [1, 1]} : vector<32x64xbf16> to vector<1x64xbf16>
    %c12 = arith.constant 12 : index
    %c0_57 = arith.constant 0 : index
    %c0_58 = arith.constant 0 : index
    %162 = vector.load %arg8[%c12, %c0_57, %c0_58] : memref<32x64x128xbf16, #tpu.memory_space<vmem>>, vector<1x64x128xbf16>
    %163 = vector.shape_cast %162 : vector<1x64x128xbf16> to vector<64x128xbf16>
    %cst_59 = arith.constant dense<0.000000e+00> : vector<1x128xf32>
    %164 = tpu.matmul %161, %163, %cst_59 {dimension_numbers = #tpu.dot_dimension_numbers<[1], [0], [0], [1], [0, 0, 1, 1], [], []>} : vector<1x64xbf16>, vector<64x128xbf16>, vector<1x128xf32> -> vector<1x128xf32>
    %165 = arith.addf %160, %164 : vector<1x128xf32>
    %166 = vector.extract_strided_slice %99 {offsets = [13, 0], sizes = [1, 64], strides = [1, 1]} : vector<32x64xbf16> to vector<1x64xbf16>
    %c13 = arith.constant 13 : index
    %c0_60 = arith.constant 0 : index
    %c0_61 = arith.constant 0 : index
    %167 = vector.load %arg8[%c13, %c0_60, %c0_61] : memref<32x64x128xbf16, #tpu.memory_space<vmem>>, vector<1x64x128xbf16>
    %168 = vector.shape_cast %167 : vector<1x64x128xbf16> to vector<64x128xbf16>
    %cst_62 = arith.constant dense<0.000000e+00> : vector<1x128xf32>
    %169 = tpu.matmul %166, %168, %cst_62 {dimension_numbers = #tpu.dot_dimension_numbers<[1], [0], [0], [1], [0, 0, 1, 1], [], []>} : vector<1x64xbf16>, vector<64x128xbf16>, vector<1x128xf32> -> vector<1x128xf32>
    %170 = arith.addf %165, %169 : vector<1x128xf32>
    %171 = vector.extract_strided_slice %99 {offsets = [14, 0], sizes = [1, 64], strides = [1, 1]} : vector<32x64xbf16> to vector<1x64xbf16>
    %c14 = arith.constant 14 : index
    %c0_63 = arith.constant 0 : index
    %c0_64 = arith.constant 0 : index
    %172 = vector.load %arg8[%c14, %c0_63, %c0_64] : memref<32x64x128xbf16, #tpu.memory_space<vmem>>, vector<1x64x128xbf16>
    %173 = vector.shape_cast %172 : vector<1x64x128xbf16> to vector<64x128xbf16>
    %cst_65 = arith.constant dense<0.000000e+00> : vector<1x128xf32>
    %174 = tpu.matmul %171, %173, %cst_65 {dimension_numbers = #tpu.dot_dimension_numbers<[1], [0], [0], [1], [0, 0, 1, 1], [], []>} : vector<1x64xbf16>, vector<64x128xbf16>, vector<1x128xf32> -> vector<1x128xf32>
    %175 = arith.addf %170, %174 : vector<1x128xf32>
    %176 = vector.extract_strided_slice %99 {offsets = [15, 0], sizes = [1, 64], strides = [1, 1]} : vector<32x64xbf16> to vector<1x64xbf16>
    %c15 = arith.constant 15 : index
    %c0_66 = arith.constant 0 : index
    %c0_67 = arith.constant 0 : index
    %177 = vector.load %arg8[%c15, %c0_66, %c0_67] : memref<32x64x128xbf16, #tpu.memory_space<vmem>>, vector<1x64x128xbf16>
    %178 = vector.shape_cast %177 : vector<1x64x128xbf16> to vector<64x128xbf16>
    %cst_68 = arith.constant dense<0.000000e+00> : vector<1x128xf32>
    %179 = tpu.matmul %176, %178, %cst_68 {dimension_numbers = #tpu.dot_dimension_numbers<[1], [0], [0], [1], [0, 0, 1, 1], [], []>} : vector<1x64xbf16>, vector<64x128xbf16>, vector<1x128xf32> -> vector<1x128xf32>
    %180 = arith.addf %175, %179 : vector<1x128xf32>
    %181 = vector.extract_strided_slice %99 {offsets = [16, 0], sizes = [1, 64], strides = [1, 1]} : vector<32x64xbf16> to vector<1x64xbf16>
    %c16 = arith.constant 16 : index
    %c0_69 = arith.constant 0 : index
    %c0_70 = arith.constant 0 : index
    %182 = vector.load %arg8[%c16, %c0_69, %c0_70] : memref<32x64x128xbf16, #tpu.memory_space<vmem>>, vector<1x64x128xbf16>
    %183 = vector.shape_cast %182 : vector<1x64x128xbf16> to vector<64x128xbf16>
    %cst_71 = arith.constant dense<0.000000e+00> : vector<1x128xf32>
    %184 = tpu.matmul %181, %183, %cst_71 {dimension_numbers = #tpu.dot_dimension_numbers<[1], [0], [0], [1], [0, 0, 1, 1], [], []>} : vector<1x64xbf16>, vector<64x128xbf16>, vector<1x128xf32> -> vector<1x128xf32>
    %185 = arith.addf %180, %184 : vector<1x128xf32>
    %186 = vector.extract_strided_slice %99 {offsets = [17, 0], sizes = [1, 64], strides = [1, 1]} : vector<32x64xbf16> to vector<1x64xbf16>
    %c17 = arith.constant 17 : index
    %c0_72 = arith.constant 0 : index
    %c0_73 = arith.constant 0 : index
    %187 = vector.load %arg8[%c17, %c0_72, %c0_73] : memref<32x64x128xbf16, #tpu.memory_space<vmem>>, vector<1x64x128xbf16>
    %188 = vector.shape_cast %187 : vector<1x64x128xbf16> to vector<64x128xbf16>
    %cst_74 = arith.constant dense<0.000000e+00> : vector<1x128xf32>
    %189 = tpu.matmul %186, %188, %cst_74 {dimension_numbers = #tpu.dot_dimension_numbers<[1], [0], [0], [1], [0, 0, 1, 1], [], []>} : vector<1x64xbf16>, vector<64x128xbf16>, vector<1x128xf32> -> vector<1x128xf32>
    %190 = arith.addf %185, %189 : vector<1x128xf32>
    %191 = vector.extract_strided_slice %99 {offsets = [18, 0], sizes = [1, 64], strides = [1, 1]} : vector<32x64xbf16> to vector<1x64xbf16>
    %c18 = arith.constant 18 : index
    %c0_75 = arith.constant 0 : index
    %c0_76 = arith.constant 0 : index
    %192 = vector.load %arg8[%c18, %c0_75, %c0_76] : memref<32x64x128xbf16, #tpu.memory_space<vmem>>, vector<1x64x128xbf16>
    %193 = vector.shape_cast %192 : vector<1x64x128xbf16> to vector<64x128xbf16>
    %cst_77 = arith.constant dense<0.000000e+00> : vector<1x128xf32>
    %194 = tpu.matmul %191, %193, %cst_77 {dimension_numbers = #tpu.dot_dimension_numbers<[1], [0], [0], [1], [0, 0, 1, 1], [], []>} : vector<1x64xbf16>, vector<64x128xbf16>, vector<1x128xf32> -> vector<1x128xf32>
    %195 = arith.addf %190, %194 : vector<1x128xf32>
    %196 = vector.extract_strided_slice %99 {offsets = [19, 0], sizes = [1, 64], strides = [1, 1]} : vector<32x64xbf16> to vector<1x64xbf16>
    %c19 = arith.constant 19 : index
    %c0_78 = arith.constant 0 : index
    %c0_79 = arith.constant 0 : index
    %197 = vector.load %arg8[%c19, %c0_78, %c0_79] : memref<32x64x128xbf16, #tpu.memory_space<vmem>>, vector<1x64x128xbf16>
    %198 = vector.shape_cast %197 : vector<1x64x128xbf16> to vector<64x128xbf16>
    %cst_80 = arith.constant dense<0.000000e+00> : vector<1x128xf32>
    %199 = tpu.matmul %196, %198, %cst_80 {dimension_numbers = #tpu.dot_dimension_numbers<[1], [0], [0], [1], [0, 0, 1, 1], [], []>} : vector<1x64xbf16>, vector<64x128xbf16>, vector<1x128xf32> -> vector<1x128xf32>
    %200 = arith.addf %195, %199 : vector<1x128xf32>
    %201 = vector.extract_strided_slice %99 {offsets = [20, 0], sizes = [1, 64], strides = [1, 1]} : vector<32x64xbf16> to vector<1x64xbf16>
    %c20 = arith.constant 20 : index
    %c0_81 = arith.constant 0 : index
    %c0_82 = arith.constant 0 : index
    %202 = vector.load %arg8[%c20, %c0_81, %c0_82] : memref<32x64x128xbf16, #tpu.memory_space<vmem>>, vector<1x64x128xbf16>
    %203 = vector.shape_cast %202 : vector<1x64x128xbf16> to vector<64x128xbf16>
    %cst_83 = arith.constant dense<0.000000e+00> : vector<1x128xf32>
    %204 = tpu.matmul %201, %203, %cst_83 {dimension_numbers = #tpu.dot_dimension_numbers<[1], [0], [0], [1], [0, 0, 1, 1], [], []>} : vector<1x64xbf16>, vector<64x128xbf16>, vector<1x128xf32> -> vector<1x128xf32>
    %205 = arith.addf %200, %204 : vector<1x128xf32>
    %206 = vector.extract_strided_slice %99 {offsets = [21, 0], sizes = [1, 64], strides = [1, 1]} : vector<32x64xbf16> to vector<1x64xbf16>
    %c21 = arith.constant 21 : index
    %c0_84 = arith.constant 0 : index
    %c0_85 = arith.constant 0 : index
    %207 = vector.load %arg8[%c21, %c0_84, %c0_85] : memref<32x64x128xbf16, #tpu.memory_space<vmem>>, vector<1x64x128xbf16>
    %208 = vector.shape_cast %207 : vector<1x64x128xbf16> to vector<64x128xbf16>
    %cst_86 = arith.constant dense<0.000000e+00> : vector<1x128xf32>
    %209 = tpu.matmul %206, %208, %cst_86 {dimension_numbers = #tpu.dot_dimension_numbers<[1], [0], [0], [1], [0, 0, 1, 1], [], []>} : vector<1x64xbf16>, vector<64x128xbf16>, vector<1x128xf32> -> vector<1x128xf32>
    %210 = arith.addf %205, %209 : vector<1x128xf32>
    %211 = vector.extract_strided_slice %99 {offsets = [22, 0], sizes = [1, 64], strides = [1, 1]} : vector<32x64xbf16> to vector<1x64xbf16>
    %c22 = arith.constant 22 : index
    %c0_87 = arith.constant 0 : index
    %c0_88 = arith.constant 0 : index
    %212 = vector.load %arg8[%c22, %c0_87, %c0_88] : memref<32x64x128xbf16, #tpu.memory_space<vmem>>, vector<1x64x128xbf16>
    %213 = vector.shape_cast %212 : vector<1x64x128xbf16> to vector<64x128xbf16>
    %cst_89 = arith.constant dense<0.000000e+00> : vector<1x128xf32>
    %214 = tpu.matmul %211, %213, %cst_89 {dimension_numbers = #tpu.dot_dimension_numbers<[1], [0], [0], [1], [0, 0, 1, 1], [], []>} : vector<1x64xbf16>, vector<64x128xbf16>, vector<1x128xf32> -> vector<1x128xf32>
    %215 = arith.addf %210, %214 : vector<1x128xf32>
    %216 = vector.extract_strided_slice %99 {offsets = [23, 0], sizes = [1, 64], strides = [1, 1]} : vector<32x64xbf16> to vector<1x64xbf16>
    %c23 = arith.constant 23 : index
    %c0_90 = arith.constant 0 : index
    %c0_91 = arith.constant 0 : index
    %217 = vector.load %arg8[%c23, %c0_90, %c0_91] : memref<32x64x128xbf16, #tpu.memory_space<vmem>>, vector<1x64x128xbf16>
    %218 = vector.shape_cast %217 : vector<1x64x128xbf16> to vector<64x128xbf16>
    %cst_92 = arith.constant dense<0.000000e+00> : vector<1x128xf32>
    %219 = tpu.matmul %216, %218, %cst_92 {dimension_numbers = #tpu.dot_dimension_numbers<[1], [0], [0], [1], [0, 0, 1, 1], [], []>} : vector<1x64xbf16>, vector<64x128xbf16>, vector<1x128xf32> -> vector<1x128xf32>
    %220 = arith.addf %215, %219 : vector<1x128xf32>
    %221 = vector.extract_strided_slice %99 {offsets = [24, 0], sizes = [1, 64], strides = [1, 1]} : vector<32x64xbf16> to vector<1x64xbf16>
    %c24 = arith.constant 24 : index
    %c0_93 = arith.constant 0 : index
    %c0_94 = arith.constant 0 : index
    %222 = vector.load %arg8[%c24, %c0_93, %c0_94] : memref<32x64x128xbf16, #tpu.memory_space<vmem>>, vector<1x64x128xbf16>
    %223 = vector.shape_cast %222 : vector<1x64x128xbf16> to vector<64x128xbf16>
    %cst_95 = arith.constant dense<0.000000e+00> : vector<1x128xf32>
    %224 = tpu.matmul %221, %223, %cst_95 {dimension_numbers = #tpu.dot_dimension_numbers<[1], [0], [0], [1], [0, 0, 1, 1], [], []>} : vector<1x64xbf16>, vector<64x128xbf16>, vector<1x128xf32> -> vector<1x128xf32>
    %225 = arith.addf %220, %224 : vector<1x128xf32>
    %226 = vector.extract_strided_slice %99 {offsets = [25, 0], sizes = [1, 64], strides = [1, 1]} : vector<32x64xbf16> to vector<1x64xbf16>
    %c25 = arith.constant 25 : index
    %c0_96 = arith.constant 0 : index
    %c0_97 = arith.constant 0 : index
    %227 = vector.load %arg8[%c25, %c0_96, %c0_97] : memref<32x64x128xbf16, #tpu.memory_space<vmem>>, vector<1x64x128xbf16>
    %228 = vector.shape_cast %227 : vector<1x64x128xbf16> to vector<64x128xbf16>
    %cst_98 = arith.constant dense<0.000000e+00> : vector<1x128xf32>
    %229 = tpu.matmul %226, %228, %cst_98 {dimension_numbers = #tpu.dot_dimension_numbers<[1], [0], [0], [1], [0, 0, 1, 1], [], []>} : vector<1x64xbf16>, vector<64x128xbf16>, vector<1x128xf32> -> vector<1x128xf32>
    %230 = arith.addf %225, %229 : vector<1x128xf32>
    %231 = vector.extract_strided_slice %99 {offsets = [26, 0], sizes = [1, 64], strides = [1, 1]} : vector<32x64xbf16> to vector<1x64xbf16>
    %c26 = arith.constant 26 : index
    %c0_99 = arith.constant 0 : index
    %c0_100 = arith.constant 0 : index
    %232 = vector.load %arg8[%c26, %c0_99, %c0_100] : memref<32x64x128xbf16, #tpu.memory_space<vmem>>, vector<1x64x128xbf16>
    %233 = vector.shape_cast %232 : vector<1x64x128xbf16> to vector<64x128xbf16>
    %cst_101 = arith.constant dense<0.000000e+00> : vector<1x128xf32>
    %234 = tpu.matmul %231, %233, %cst_101 {dimension_numbers = #tpu.dot_dimension_numbers<[1], [0], [0], [1], [0, 0, 1, 1], [], []>} : vector<1x64xbf16>, vector<64x128xbf16>, vector<1x128xf32> -> vector<1x128xf32>
    %235 = arith.addf %230, %234 : vector<1x128xf32>
    %236 = vector.extract_strided_slice %99 {offsets = [27, 0], sizes = [1, 64], strides = [1, 1]} : vector<32x64xbf16> to vector<1x64xbf16>
    %c27 = arith.constant 27 : index
    %c0_102 = arith.constant 0 : index
    %c0_103 = arith.constant 0 : index
    %237 = vector.load %arg8[%c27, %c0_102, %c0_103] : memref<32x64x128xbf16, #tpu.memory_space<vmem>>, vector<1x64x128xbf16>
    %238 = vector.shape_cast %237 : vector<1x64x128xbf16> to vector<64x128xbf16>
    %cst_104 = arith.constant dense<0.000000e+00> : vector<1x128xf32>
    %239 = tpu.matmul %236, %238, %cst_104 {dimension_numbers = #tpu.dot_dimension_numbers<[1], [0], [0], [1], [0, 0, 1, 1], [], []>} : vector<1x64xbf16>, vector<64x128xbf16>, vector<1x128xf32> -> vector<1x128xf32>
    %240 = arith.addf %235, %239 : vector<1x128xf32>
    %241 = vector.extract_strided_slice %99 {offsets = [28, 0], sizes = [1, 64], strides = [1, 1]} : vector<32x64xbf16> to vector<1x64xbf16>
    %c28 = arith.constant 28 : index
    %c0_105 = arith.constant 0 : index
    %c0_106 = arith.constant 0 : index
    %242 = vector.load %arg8[%c28, %c0_105, %c0_106] : memref<32x64x128xbf16, #tpu.memory_space<vmem>>, vector<1x64x128xbf16>
    %243 = vector.shape_cast %242 : vector<1x64x128xbf16> to vector<64x128xbf16>
    %cst_107 = arith.constant dense<0.000000e+00> : vector<1x128xf32>
    %244 = tpu.matmul %241, %243, %cst_107 {dimension_numbers = #tpu.dot_dimension_numbers<[1], [0], [0], [1], [0, 0, 1, 1], [], []>} : vector<1x64xbf16>, vector<64x128xbf16>, vector<1x128xf32> -> vector<1x128xf32>
    %245 = arith.addf %240, %244 : vector<1x128xf32>
    %246 = vector.extract_strided_slice %99 {offsets = [29, 0], sizes = [1, 64], strides = [1, 1]} : vector<32x64xbf16> to vector<1x64xbf16>
    %c29 = arith.constant 29 : index
    %c0_108 = arith.constant 0 : index
    %c0_109 = arith.constant 0 : index
    %247 = vector.load %arg8[%c29, %c0_108, %c0_109] : memref<32x64x128xbf16, #tpu.memory_space<vmem>>, vector<1x64x128xbf16>
    %248 = vector.shape_cast %247 : vector<1x64x128xbf16> to vector<64x128xbf16>
    %cst_110 = arith.constant dense<0.000000e+00> : vector<1x128xf32>
    %249 = tpu.matmul %246, %248, %cst_110 {dimension_numbers = #tpu.dot_dimension_numbers<[1], [0], [0], [1], [0, 0, 1, 1], [], []>} : vector<1x64xbf16>, vector<64x128xbf16>, vector<1x128xf32> -> vector<1x128xf32>
    %250 = arith.addf %245, %249 : vector<1x128xf32>
    %251 = vector.extract_strided_slice %99 {offsets = [30, 0], sizes = [1, 64], strides = [1, 1]} : vector<32x64xbf16> to vector<1x64xbf16>
    %c30 = arith.constant 30 : index
    %c0_111 = arith.constant 0 : index
    %c0_112 = arith.constant 0 : index
    %252 = vector.load %arg8[%c30, %c0_111, %c0_112] : memref<32x64x128xbf16, #tpu.memory_space<vmem>>, vector<1x64x128xbf16>
    %253 = vector.shape_cast %252 : vector<1x64x128xbf16> to vector<64x128xbf16>
    %cst_113 = arith.constant dense<0.000000e+00> : vector<1x128xf32>
    %254 = tpu.matmul %251, %253, %cst_113 {dimension_numbers = #tpu.dot_dimension_numbers<[1], [0], [0], [1], [0, 0, 1, 1], [], []>} : vector<1x64xbf16>, vector<64x128xbf16>, vector<1x128xf32> -> vector<1x128xf32>
    %255 = arith.addf %250, %254 : vector<1x128xf32>
    %256 = vector.extract_strided_slice %99 {offsets = [31, 0], sizes = [1, 64], strides = [1, 1]} : vector<32x64xbf16> to vector<1x64xbf16>
    %c31 = arith.constant 31 : index
    %c0_114 = arith.constant 0 : index
    %c0_115 = arith.constant 0 : index
    %257 = vector.load %arg8[%c31, %c0_114, %c0_115] : memref<32x64x128xbf16, #tpu.memory_space<vmem>>, vector<1x64x128xbf16>
    %258 = vector.shape_cast %257 : vector<1x64x128xbf16> to vector<64x128xbf16>
    %cst_116 = arith.constant dense<0.000000e+00> : vector<1x128xf32>
    %259 = tpu.matmul %256, %258, %cst_116 {dimension_numbers = #tpu.dot_dimension_numbers<[1], [0], [0], [1], [0, 0, 1, 1], [], []>} : vector<1x64xbf16>, vector<64x128xbf16>, vector<1x128xf32> -> vector<1x128xf32>
    %260 = arith.addf %255, %259 : vector<1x128xf32>
    %cst_117 = arith.constant 0.000000e+00 : f32
    %261 = vector.broadcast %cst_117 : f32 to vector<1x128xf32>
    %262 = arith.maximumf %260, %261 : vector<1x128xf32>
    %263 = arith.truncf %262 : vector<1x128xf32> to vector<1x128xbf16>
    %c0_118 = arith.constant 0 : index
    %c0_119 = arith.constant 0 : index
    %264 = vector.load %arg10[%c0_118, %c0_119] : memref<128x128xbf16, #tpu.memory_space<vmem>>, vector<128x128xbf16>
    %cst_120 = arith.constant dense<0.000000e+00> : vector<1x128xf32>
    %265 = tpu.matmul %263, %264, %cst_120 {dimension_numbers = #tpu.dot_dimension_numbers<[1], [0], [0], [1], [0, 0, 1, 1], [], []>} : vector<1x128xbf16>, vector<128x128xbf16>, vector<1x128xf32> -> vector<1x128xf32>
    %c0_121 = arith.constant 0 : index
    %c0_122 = arith.constant 0 : index
    %266 = vector.load %arg11[%c0_121, %c0_122] : memref<1x128xf32, #tpu.memory_space<vmem>>, vector<1x128xf32>
    %267 = arith.addf %265, %266 : vector<1x128xf32>
    %c0_123 = arith.constant 0 : index
    %c0_124 = arith.constant 0 : index
    %c0_125 = arith.constant 0 : index
    %268 = vector.load %arg12[%c0_123, %c0_124, %c0_125] : memref<1x1x128xf32, #tpu.memory_space<vmem>>, vector<1x1x128xf32>
    %269 = vector.shape_cast %268 : vector<1x1x128xf32> to vector<1x128xf32>
    %270 = vector.shape_cast %267 : vector<1x128xf32> to vector<1x1x128xf32>
    tpu.vector_store %arg12[%c0_123, %c0_124, %c0_125], %270 {strides = array<i32>} : memref<1x1x128xf32, #tpu.memory_space<vmem>>, vector<1x1x128xf32>,
    return
  }
  func.func @transform_0(%arg0: i32) -> (i32, i32, i32) {
    %c0_i32 = arith.constant 0 : i32
    %c0_i32_0 = arith.constant 0 : i32
    %c0_i32_1 = arith.constant 0 : i32
    return %arg0, %c0_i32, %c0_i32_0 : i32, i32, i32
  }
  func.func @transform_1(%arg0: i32) -> (i32, i32) {
    %c0_i32 = arith.constant 0 : i32
    %c0_i32_0 = arith.constant 0 : i32
    %c0_i32_1 = arith.constant 0 : i32
    return %c0_i32, %c0_i32_0 : i32, i32
  }
  func.func @transform_2(%arg0: i32) -> (i32, i32) {
    %c0_i32 = arith.constant 0 : i32
    %c0_i32_0 = arith.constant 0 : i32
    %c0_i32_1 = arith.constant 0 : i32
    return %c0_i32, %c0_i32_0 : i32, i32
  }
  func.func @transform_3(%arg0: i32) -> (i32, i32) {
    %c0_i32 = arith.constant 0 : i32
    %c0_i32_0 = arith.constant 0 : i32
    %c0_i32_1 = arith.constant 0 : i32
    return %c0_i32, %c0_i32_0 : i32, i32
  }
  func.func @transform_4(%arg0: i32) -> (i32, i32) {
    %c0_i32 = arith.constant 0 : i32
    %c0_i32_0 = arith.constant 0 : i32
    %c0_i32_1 = arith.constant 0 : i32
    return %c0_i32, %c0_i32_0 : i32, i32
  }
  func.func @transform_5(%arg0: i32) -> (i32, i32) {
    %c0_i32 = arith.constant 0 : i32
    %c0_i32_0 = arith.constant 0 : i32
    %c0_i32_1 = arith.constant 0 : i32
    return %c0_i32, %c0_i32_0 : i32, i32
  }
  func.func @transform_6(%arg0: i32) -> (i32, i32) {
    %c0_i32 = arith.constant 0 : i32
    %c0_i32_0 = arith.constant 0 : i32
    %c0_i32_1 = arith.constant 0 : i32
    return %c0_i32, %c0_i32_0 : i32, i32
  }
  func.func @transform_7(%arg0: i32) -> (i32, i32, i32) {
    %c0_i32 = arith.constant 0 : i32
    %c0_i32_0 = arith.constant 0 : i32
    %c0_i32_1 = arith.constant 0 : i32
    %c0_i32_2 = arith.constant 0 : i32
    return %c0_i32, %c0_i32_0, %c0_i32_1 : i32, i32, i32
  }
  func.func @transform_8(%arg0: i32) -> (i32, i32) {
    %c0_i32 = arith.constant 0 : i32
    %c0_i32_0 = arith.constant 0 : i32
    %c0_i32_1 = arith.constant 0 : i32
    return %c0_i32, %c0_i32_0 : i32, i32
  }
  func.func @transform_9(%arg0: i32) -> (i32, i32) {
    %c0_i32 = arith.constant 0 : i32
    %c0_i32_0 = arith.constant 0 : i32
    %c0_i32_1 = arith.constant 0 : i32
    return %c0_i32, %c0_i32_0 : i32, i32
  }
  func.func @transform_10(%arg0: i32) -> (i32, i32) {
    %c0_i32 = arith.constant 0 : i32
    %c0_i32_0 = arith.constant 0 : i32
    %c0_i32_1 = arith.constant 0 : i32
    return %c0_i32, %c0_i32_0 : i32, i32
  }
  func.func @transform_11(%arg0: i32) -> (i32, i32, i32) {
    %c0_i32 = arith.constant 0 : i32
    %c0_i32_0 = arith.constant 0 : i32
    %c0_i32_1 = arith.constant 0 : i32
    return %arg0, %c0_i32, %c0_i32_0 : i32, i32, i32
  }
}

</mosaic_0001>

<bundles_post_ra>
// kernel: cnn_forward.1
= control target key start
LH: loop header
LB: loop body
LE: loop exit
PB: predicated region body
PF: predicated region fallthrough
CT: control target
= control target key end

     0   :  { %16 = vsyncpa [#allocation3], 0  ;;  %s10289_s0 = inlined_call_operand.vmem [shape: f32[2,1,1152], index: 0, kind: input, shape index: {}]   ;;  %s10290_s1 = inlined_call_operand.vmem [shape: f32[16,9], index: 1, kind: input, shape index: {}]   ;;  %s10291_s2 = inlined_call_operand.vmem [shape: f32[16,1], index: 2, kind: input, shape index: {}]   ;;  %s10292_s3 = inlined_call_operand.vmem [shape: bf16[32,144], index: 3, kind: input, shape index: {}]   ;;  %s10293_s4 = inlined_call_operand.vmem [shape: f32[32,1], index: 4, kind: input, shape index: {}]   ;;  %s10294_s5 = inlined_call_operand.hbm [shape: bf16[896,384], index: 5, kind: input, shape index: {}]   ;;  %s10295_s6 = inlined_call_operand.vmem [shape: bf16[224,64], index: 6, kind: input, shape index: {}]   ;;  %s10296_s7 = inlined_call_operand.hbm [shape: bf16[32,64,128], index: 7, kind: input, shape index: {}]   ;;  %s10297_s8 = inlined_call_operand.vmem [shape: f32[1,128], index: 8, kind: input, shape index: {}]   ;;  %s10298_s9 = inlined_call_operand.vmem [shape: bf16[128,128], index: 9, kind: input, shape index: {}]   ;;  %s10299_s10 = inlined_call_operand.vmem [shape: f32[1,128], index: 10, kind: input, shape index: {}]   ;;  %s10300_s11 = inlined_call_operand.hbm [shape: f32[2,1,128], index: 11, kind: output, shape index: {}]  }
   0x1   :  { %17 = vsyncpa [#allocation6], 0 }
   0x2   :  { %18 = vsyncpa [#allocation4], 0 }
   0x3   :  { %20 = vsyncpa [#allocation4 + $0x1], 0  ;;  %s8233_s17 = smov 0   ;;  %s8235_s18 = smov 0  }
   0x4   :  { %s8237_s19 = smov 0   ;;  %s8239_s20 = smov 0  }
   0x5 LB: > { %10360 = sst [smem:[#allocation11_spill]] %s8136_s19  ;;  %s8254_s21 = sadd.s32 4294967295, %s8140_s20   ;;  %s8140_s20 = sphi %s8239_s20, %s10475_s20   ;;  %s8136_s19 = sphi %s8237_s19, %s10477_s19   ;;  %s8132_s18 = sphi %s8235_s18, %s10479_s18   ;;  %s8128_s17 = sphi %s8233_s17, %s10478_s17  }
   0x6   : > { %s6379_s22 = sadd.s32 4294967294, %s8140_s20   ;;  %s8258_s23 = sadd.s32 1, %s8140_s20  }
   0x7   : > { %10361 = sst [smem:[#allocation12_spill]] %s8258_s23  ;;  %s269_s24 = sadd.s32 1, %s8136_s19 }
   0x8   : > { %s266_s25 = ssub.s32 %s8140_s20, %s8258_s23  ;;  %p279_p0 = scmp.ne.s32.totalorder %s8136_s19, %s8132_s18 }
   0x9   : > { %p267_p1 = scmp.eq.s32.totalorder %s266_s25, 0  ;;  %p280_p2 = scmp.eq.s32.totalorder %s8254_s21, 1 }
   0xa   : > { %p285_p3 = scmp.ne.s32.totalorder %s8132_s18, %s8128_s17  ;;  %p286_p4 = scmp.eq.s32.totalorder %s6379_s22, 1 }
   0xb   : > { %s8269_s26 = scalar_select %p267_p1, %s8136_s19, %s269_s24  }
   0xc   : > { %p8271_p5 = por %p280_p2, %p279_p0  ;;  %p8275_p6 = por %p286_p4, %p285_p3 }
   0xd   : > { %10362 = sst [smem:[#allocation13_spill]] %s8269_s26  ;;  %p6380_p7 = scmp.ge.s32.totalorder %s8140_s20, 1 }
   0xe   : > { %s10364_s28 = scalar_select %p8275_p6, 1, 0 }
   0xf   : > { %p293_p8 = scmp.lt.s32.totalorder %s8140_s20, 3  ;;  %p10301_p9 = scmp.eq.s32.totalorder %s8254_s21, 0 }
  0x10   : > { %s8142_s30 = smov [#allocation2]   ;;  %s8143_s14 = smov [#allocation5]  }
  0x11   : > { %p8282_p10 = pnand %p6380_p7, %p293_p8  ;;  %s317_s12 = sshll.u32 %s8142_s30, 4  ;;  %s318_s12 = int_to_ptr.vmem [resolvable:$true] %s317_s12 }
  0x12   : > { %s333_s15 = sshll.u32 %s8143_s14, 4  ;;  %s8031_s16 = scalar_lea.vmem %s318_s12, 21504  ;;  %s334_s15 = int_to_ptr.vmem [resolvable:$true] %s333_s15 }
  0x13   : > { %p7428_p11 = pneg %p8282_p10  ;;  %p8032_p0 = scmp.ne.s32.totalorder %s318_s12, %s8031_s16 }
  0x14   : > { %p8039_p3 = scmp.lt.s32.totalorder %s318_s12, %s318_s12  ;;  %p8040_p4 = scmp.lt.s32.totalorder %s8031_s16, %s8031_s16 }
  0x15   : > { %p8290_p12 = pnand %p10301_p9, %p7428_p11 }
  0x16   : > { %p8041_p7 = por %p8040_p4, %p8039_p3 }
  0x17   : > { %p8022_p13 = pneg %p8290_p12 }
  0x19   : > { %p8034_p1 = pnand %p8032_p0, %p8022_p13 }
  0x1b   : > { %p8035_p2 = pneg %p8034_p1 }
  0x1d   : > { %p8042_p8 = pnand %p8041_p7, %p8035_p2 }
  0x1f   : > { %8045 = shalt.err (!%p8042_p8)
}
  0x20   : > { %s8144_s22 = smov 192   ;;  %s8145_s24 = smov 12  }
  0x21   : > { %7431 = dma.hbm_to_vmem [thread:$0]  (!%p8290_p12), %s10294_s5, 21504, %s318_s12, [#allocation3], %s8144_s22, %s8144_s22, %s8145_s24  }
  0x22   : > { %s8057_s14 = scalar_lea.vmem %s334_s15, 16384  ;;  %p8065_p9 = scmp.lt.s32.totalorder %s334_s15, %s334_s15 }
  0x23   : > { %p8058_p11 = scmp.ne.s32.totalorder %s334_s15, %s8057_s14  ;;  %p8066_p6 = scmp.lt.s32.totalorder %s8057_s14, %s8057_s14 }
  0x25   : > { %p8060_p0 = pnand %p8058_p11, %p8022_p13  ;;  %p8067_p3 = por %p8066_p6, %p8065_p9 }
  0x27   : > { %p8061_p1 = pneg %p8060_p0 }
  0x29   : > { %p8068_p2 = pnand %p8067_p3, %p8061_p1 }
  0x2b   : > { %8071 = shalt.err (!%p8068_p2)
}
  0x2c   : > { %s8146_s16 = smov 64   ;;  %s8147_s26 = smov 4  }
  0x2d   : > { %7434 = dma.hbm_to_vmem [thread:$0]  (!%p8290_p12), %s10296_s7, 16384, %s334_s15, [#allocation6], %s8146_s16, %s8146_s16, %s8147_s26  }
  0x2e   : > { %365 = sbr.rel (%p8282_p10) target bundleno = 2700 (0xa8c), region = 64 }
  0x33   : > { %p10367_p4 = scmp.eq.s32.totalorder %s8254_s21, 0 }
  0x35   : > { %8115 = dma.done.wait (%p10367_p4), [#allocation3], 21504   ;;  %p10368_p13 = pmov %p10367_p4 }
  0x36   : > { %p10369_p6 = pmov %p10367_p4 }
  0x37   : > { %8117 = vsyncadd (%p10368_p13), [#allocation3], 4294945792 }
  0x38   : > { %8119 = dma.done.wait (%p10369_p6), [#allocation6], 16384   ;;  %p10370_p9 = pmov %p10367_p4 }
  0x39   : > { %v8148_v0 = vmov 1   ;;  %v8149_v1 = vmov 2   ;;  %p407_p12 = scmp.lt.s32.totalorder %s8254_s21, 1  ;;  %v417_v2 = vlaneseq  ;;  %v414_v4 = vld [vmem:[%s10290_s1] sm:$0xff]  ;;  %v415_v8 = vld [vmem:[%s10290_s1 + $0x8] sm:$0xff]  ;;  %v8150_v13 = vmov 3  }
  0x3a   : > { %8121 = vsyncadd (%p10370_p9), [#allocation6], 4294950912  ;;  %7506 = vset.pattern.permute.xlu0 %v8148_v0  ;;  %7507 = vset.pattern.permute.xlu1 %v8149_v1  ;;  %v8151_v14 = vmov 4   ;;  %v8152_v15 = vmov 5   ;;  %v8153_v16 = vmov 6   ;;  %v8154_v17 = vmov 7  }
  0x3b   : > { %s408_s19 = scalar_select %p407_p12, %s8254_s21, 1  ;;  %v8324_v3 = vshrl.u32 %v417_v2, 7  ;;  %490 = vperm.xlu0 %7506, %v414_v4   ;;  %619 = vperm.xlu1 %7507, %v414_v4   ;;  %v10305_v18 = vmov 0   ;;  %v8156_v19 = vmov 8   ;;  %vm569_vm0 = vcmask 1039360  }
  0x3c   : > { %s8157_s25 = smov 127   ;;  %s8158_s30 = smov 126   ;;  %vm698_vm1 = vcmask 1031168   ;;  %vm827_vm2 = vcmask 801792   ;;  %vm956_vm3 = vcmask 793600   ;;  %vm1085_vm4 = vcmask 785408  }
  0x3d   : > { %s7417_s23 = smul.u32 9, %s408_s19  ;;  %v443_v5 = vsub.s32 6, %v8324_v3  ;;  %v439_v6 = vsub.s32 5, %v8324_v3  ;;  %v447_v7 = vsub.s32 7, %v8324_v3  ;;  %v427_v20 = vsub.s32 2, %v8324_v3  ;;  %s8159_s14 = smov 98  }
  0x3e   : > { %v423_v21 = vsub.s32 1, %v8324_v3  ;;  %v435_v22 = vsub.s32 4, %v8324_v3  ;;  %v431_v23 = vsub.s32 3, %v8324_v3  ;;  %v419_v36 = vsub.s32 0, %v8324_v3  ;;  %s8160_s16 = smov 97   ;;  %s8161_s19 = smov 96  }
  0x3f   : > { %s8332_s15 = scalar_lea.vmem %s10289_s0, %s7417_s23  ;;  %494 = vperm.xlu0 %7506, %v415_v8   ;;  %623 = vperm.xlu1 %7507, %v415_v8   ;;  %s8162_s23 = smov 68   ;;  %vm1214_vm5 = vcmask 556032   ;;  %vm1343_vm6 = vcmask 547840   ;;  %vm1472_vm7 = vcmask 539648   ;;  %vm8166_vm8 = vmmov 0  }
  0x40   : > { %v8341_v9 = vld [vmem:[%s8332_s15] sm:$0xff]  ;;  %s8163_s26 = smov 67   ;;  %s8164_s24 = smov 66   ;;  %vm3352_vm9 = vcmask 130048   ;;  %vm3290_vm10 = vcmask 777216   ;;  %vm3268_vm11 = vcmask 900096  }
  0x41   : > { %v8344_v10 = vrot.slane %v8341_v9, %v443_v5  ;;  %v8347_v11 = vrot.slane %v8341_v9, %v439_v6  ;;  %v8350_v12 = vrot.slane %v8341_v9, %v447_v7  ;;  %v8359_v24 = vrot.slane %v8341_v9, %v427_v20  ;;  %s8171_s29 = smov 94   ;;  %s405_s12 = sand.u32 1, %s8132_s18  }
  0x42   : > { %v8362_v25 = vrot.slane %v8341_v9, %v423_v21  ;;  %v8371_v29 = vrot.slane %v8341_v9, %v435_v22  ;;  %v8374_v30 = vrot.slane %v8341_v9, %v431_v23  ;;  %v8398_v39 = vrot.slane %v8341_v9, %v419_v36 }
  0x43   : > { %10371 = vst [vmem:[#allocation14_spill] sm:$0xff] %v8344_v10  ;;  %10372 = vst [vmem:[#allocation15_spill] sm:$0xff] %v8347_v11  ;;  %7508 = vset.pattern.permute.xlu0 %v8150_v13  ;;  %7509 = vset.pattern.permute.xlu1 %v8150_v13  ;;  %vm3257_vm12 = vcmask 908288   ;;  %vm3246_vm13 = vcmask 916480   ;;  %vm3301_vm14 = vcmask 769024   ;;  %vm3715_vm15 = vcmask 523264  }
  0x44   : > { %748 = vperm.xlu0 %7508, %v414_v4   ;;  %752 = vperm.xlu1 %7509, %v415_v8   ;;  %10373 = vst [vmem:[#allocation16_spill] sm:$0xff] %v8371_v29 }
  0x48   : > { %7510 = vset.pattern.permute.xlu1 %v8151_v14  ;;  %7511 = vset.pattern.permute.xlu0 %v8151_v14 }
  0x49   : > { %877 = vperm.xlu1 %7510, %v414_v4   ;;  %881 = vperm.xlu0 %7511, %v415_v8  }
  0x4d   : > { %7512 = vset.pattern.permute.xlu1 %v8152_v15  ;;  %7513 = vset.pattern.permute.xlu0 %v8153_v16 }
  0x4e   : > { %1006 = vperm.xlu1 %7512, %v414_v4   ;;  %1135 = vperm.xlu0 %7513, %v414_v4  }
  0x52   : > { %1010 = vperm.xlu1 %7512, %v415_v8   ;;  %7516 = vset.pattern.permute.xlu0 %v8154_v17 }
  0x53   : > { %1268 = vperm.xlu0 %7516, %v415_v8  }
  0x56   : > { %7514 = vset.pattern.permute.xlu1 %v8153_v16 }
  0x57   : > { %1139 = vperm.xlu1 %7514, %v415_v8   ;;  %7518 = vset.pattern.permute.xlu0 %v10305_v18 }
  0x58   : > { %459 = vperm.xlu0 %7518, %v414_v4  }
  0x5b   : > { %7515 = vset.pattern.permute.xlu1 %v8154_v17 }
  0x5c   : > { %1264 = vperm.xlu1 %7515, %v414_v4  }
  0x60   : > { %7517 = vset.pattern.permute.xlu1 %v8156_v19 }
  0x61   : > { %1393 = vperm.xlu1 %7517, %v414_v4  }
  0x65   : > { %1397 = vperm.xlu1 %7517, %v415_v8  }
  0x69   : > { %7519 = vset.pattern.permute.xlu1 %v10305_v18 }
  0x6a   : > { %464 = vperm.xlu1 %7519, %v415_v8  }
  0xb6   : > { %v8364_v26 = vpop.permute.xlu0 %490  ;;  %v8406_v42 = vpop.permute.xlu1 %619 }
  0xb7   : > { %v499_v27 = vmul.f32 %v8364_v26, %v8359_v24  ;;  %v498_v28 = vmul.f32 %v8364_v26, %v8362_v25  ;;  %v501_v31 = vmul.f32 %v8364_v26, %v8371_v29  ;;  %v500_v32 = vmul.f32 %v8364_v26, %v8374_v30 }
  0xb8   : > { %v497_v41 = vmul.f32 %v8364_v26, %v8398_v39  ;;  %v628_v43 = vmul.f32 %v8406_v42, %v8359_v24  ;;  %v627_v44 = vmul.f32 %v8406_v42, %v8362_v25  ;;  %v630_v45 = vmul.f32 %v8406_v42, %v8371_v29 }
  0xb9   : > { %537 = vrot.lane.b32.xlu0 %v499_v27, %s8157_s25  ;;  %535 = vrot.lane.b32.xlu1 %v498_v28, %s8157_s25  ;;  %v629_v46 = vmul.f32 %v8406_v42, %v8374_v30  ;;  %v626_v54 = vmul.f32 %v8406_v42, %v8398_v39 }
  0xba   : > { %v8382_v33 = vpop.permute.xlu0 %494  ;;  %v8420_v47 = vpop.permute.xlu1 %623 }
  0xbb   : > { %v508_v34 = vmul.f32 %v8382_v33, %v8359_v24  ;;  %v507_v35 = vmul.f32 %v8382_v33, %v8362_v25  ;;  %v510_v37 = vmul.f32 %v8382_v33, %v8371_v29  ;;  %v509_v38 = vmul.f32 %v8382_v33, %v8374_v30 }
  0xbc   : > { %v506_v40 = vmul.f32 %v8382_v33, %v8398_v39  ;;  %v637_v48 = vmul.f32 %v8420_v47, %v8359_v24  ;;  %v636_v49 = vmul.f32 %v8420_v47, %v8362_v25  ;;  %v639_v50 = vmul.f32 %v8420_v47, %v8371_v29 }
  0xbd   : > { %541 = vrot.lane.b32.xlu0 %v501_v31, %s8157_s25  ;;  %539 = vrot.lane.b32.xlu1 %v500_v32, %s8157_s25  ;;  %v638_v51 = vmul.f32 %v8420_v47, %v8374_v30  ;;  %v635_v53 = vmul.f32 %v8420_v47, %v8398_v39 }
  0xbf   : > { %v8436_v52 = vpop.permute.xlu0 %748  ;;  %v8450_v57 = vpop.permute.xlu1 %752 }
  0xc0   : > { %v757_v55 = vmul.f32 %v8436_v52, %v8359_v24  ;;  %v756_v56 = vmul.f32 %v8436_v52, %v8362_v25  ;;  %v759_v58 = vmul.f32 %v8436_v52, %v8371_v29  ;;  %v758_v59 = vmul.f32 %v8436_v52, %v8374_v30 }
  0xc1   : > { %555 = vrot.lane.b32.xlu0 %v508_v34, %s8157_s25  ;;  %553 = vrot.lane.b32.xlu1 %v507_v35, %s8157_s25  ;;  %v766_v60 = vmul.f32 %v8450_v57, %v8359_v24  ;;  %v765_v61 = vmul.f32 %v8450_v57, %v8362_v25  ;;  %v768_v62 = vmul.f32 %v8450_v57, %v8371_v29 }
  0xc2   : > { %v767_v63 = vmul.f32 %v8450_v57, %v8374_v30  ;;  %v764_v1 = vmul.f32 %v8450_v57, %v8398_v39  ;;  %v755_v2 = vmul.f32 %v8436_v52, %v8398_v39 }
  0xc4   : > { %v8470_v0 = vpop.permute.xlu1 %877  ;;  %v8484_v5 = vpop.permute.xlu0 %881 }
  0xc5   : > { %559 = vrot.lane.b32.xlu0 %v510_v37, %s8157_s25  ;;  %557 = vrot.lane.b32.xlu1 %v509_v38, %s8157_s25  ;;  %v886_v3 = vmul.f32 %v8470_v0, %v8359_v24  ;;  %v885_v4 = vmul.f32 %v8470_v0, %v8362_v25  ;;  %v888_v6 = vmul.f32 %v8470_v0, %v8371_v29 }
  0xc6   : > { %v887_v7 = vmul.f32 %v8470_v0, %v8374_v30  ;;  %v895_v8 = vmul.f32 %v8484_v5, %v8359_v24  ;;  %v894_v9 = vmul.f32 %v8484_v5, %v8362_v25  ;;  %v897_v13 = vmul.f32 %v8484_v5, %v8371_v29 }
  0xc7   : > { %v896_v14 = vmul.f32 %v8484_v5, %v8374_v30  ;;  %v893_v16 = vmul.f32 %v8484_v5, %v8398_v39  ;;  %v884_v17 = vmul.f32 %v8470_v0, %v8398_v39 }
  0xc9   : > { %551 = vrot.lane.b32.xlu0 %v506_v40, %s8157_s25  ;;  %533 = vrot.lane.b32.xlu1 %v497_v41, %s8157_s25  ;;  %v8504_v15 = vpop.permute.xlu1 %1006  ;;  %v8542_v36 = vpop.permute.xlu0 %1135 }
  0xca   : > { %v1015_v19 = vmul.f32 %v8504_v15, %v8359_v24  ;;  %v1014_v20 = vmul.f32 %v8504_v15, %v8362_v25  ;;  %v1017_v22 = vmul.f32 %v8504_v15, %v8371_v29  ;;  %v1016_v23 = vmul.f32 %v8504_v15, %v8374_v30 }
  0xcb   : > { %v1013_v38 = vmul.f32 %v8504_v15, %v8398_v39  ;;  %v1144_v40 = vmul.f32 %v8542_v36, %v8359_v24  ;;  %v1143_v41 = vmul.f32 %v8542_v36, %v8362_v25 }
  0xcd   : > { %666 = vrot.lane.b32.xlu0 %v628_v43, %s8158_s30  ;;  %664 = vrot.lane.b32.xlu1 %v627_v44, %s8158_s30  ;;  %v8516_v21 = vpop.permute.xlu1 %1010  ;;  %v1146_v44 = vmul.f32 %v8542_v36, %v8371_v29 }
  0xce   : > { %v1024_v28 = vmul.f32 %v8516_v21, %v8359_v24  ;;  %v1023_v31 = vmul.f32 %v8516_v21, %v8362_v25  ;;  %v1026_v32 = vmul.f32 %v8516_v21, %v8371_v29  ;;  %v1025_v34 = vmul.f32 %v8516_v21, %v8374_v30 }
  0xcf   : > { %v1022_v37 = vmul.f32 %v8516_v21, %v8398_v39 }
  0xd1   : > { %670 = vrot.lane.b32.xlu0 %v630_v45, %s8158_s30  ;;  %668 = vrot.lane.b32.xlu1 %v629_v46, %s8158_s30  ;;  %v1145_v45 = vmul.f32 %v8542_v36, %v8374_v30 }
  0xd2   : > { %v8526_v27 = vpop.permute.xlu1 %1139 }
  0xd5   : > { %684 = vrot.lane.b32.xlu0 %v637_v48, %s8158_s30  ;;  %682 = vrot.lane.b32.xlu1 %v636_v49, %s8158_s30  ;;  %v8564_v48 = vpop.permute.xlu0 %1268  ;;  %v1153_v49 = vmul.f32 %v8526_v27, %v8359_v24 }
  0xd7   : > { %v8538_v35 = vpop.permute.xlu1 %1264 }
  0xd9   : > { %688 = vrot.lane.b32.xlu0 %v639_v50, %s8158_s30  ;;  %686 = vrot.lane.b32.xlu1 %v638_v51, %s8158_s30  ;;  %v1152_v50 = vmul.f32 %v8526_v27, %v8362_v25 }
  0xdc   : > { %v8554_v43 = vpop.permute.xlu1 %1393 }
  0xdd   : > { %680 = vrot.lane.b32.xlu0 %v635_v53, %s8158_s30  ;;  %662 = vrot.lane.b32.xlu1 %v626_v54, %s8158_s30  ;;  %10374 = vst [vmem:[#allocation17_spill] sm:$0xff] %v8554_v43  ;;  %v8576_v53 = vpop.permute.xlu0 %459  ;;  %v1155_v54 = vmul.f32 %v8526_v27, %v8371_v29 }
  0xde   : > { %10377 = vst [vmem:[#allocation20_spill] sm:$0xff] %v8576_v53 }
  0xe0   : > { %v8562_v46 = vpop.permute.xlu1 %1397 }
  0xe1   : > { %795 = vrot.lane.b32.xlu0 %v757_v55, %s8159_s14  ;;  %793 = vrot.lane.b32.xlu1 %v756_v56, %s8159_s14  ;;  %10375 = vst [vmem:[#allocation18_spill] sm:$0xff] %v8562_v46  ;;  %v1154_v55 = vmul.f32 %v8526_v27, %v8374_v30 }
  0xe5   : > { %799 = vrot.lane.b32.xlu0 %v759_v58, %s8159_s14  ;;  %797 = vrot.lane.b32.xlu1 %v758_v59, %s8159_s14  ;;  %v8574_v51 = vpop.permute.xlu1 %464  ;;  %v1151_v59 = vmul.f32 %v8526_v27, %v8398_v39 }
  0xe6   : > { %10376 = vst [vmem:[#allocation19_spill] sm:$0xff] %v8574_v51 }
  0xe9   : > { %813 = vrot.lane.b32.xlu0 %v766_v60, %s8159_s14  ;;  %811 = vrot.lane.b32.xlu1 %v765_v61, %s8159_s14  ;;  %v1142_v60 = vmul.f32 %v8542_v36, %v8398_v39 }
  0xed   : > { %817 = vrot.lane.b32.xlu0 %v768_v62, %s8159_s14  ;;  %815 = vrot.lane.b32.xlu1 %v767_v63, %s8159_s14  ;;  %v1273_v63 = vmul.f32 %v8538_v35, %v8359_v24 }
  0xf1   : > { %809 = vrot.lane.b32.xlu0 %v764_v1, %s8159_s14  ;;  %791 = vrot.lane.b32.xlu1 %v755_v2, %s8159_s14  ;;  %v1272_v1 = vmul.f32 %v8538_v35, %v8362_v25 }
  0xf5   : > { %924 = vrot.lane.b32.xlu0 %v886_v3, %s8160_s16  ;;  %922 = vrot.lane.b32.xlu1 %v885_v4, %s8160_s16  ;;  %v1275_v4 = vmul.f32 %v8538_v35, %v8371_v29 }
  0xf9   : > { %928 = vrot.lane.b32.xlu0 %v888_v6, %s8160_s16  ;;  %926 = vrot.lane.b32.xlu1 %v887_v7, %s8160_s16  ;;  %v1274_v6 = vmul.f32 %v8538_v35, %v8374_v30 }
  0xfd   : > { %942 = vrot.lane.b32.xlu0 %v895_v8, %s8160_s16  ;;  %940 = vrot.lane.b32.xlu1 %v894_v9, %s8160_s16  ;;  %v1282_v9 = vmul.f32 %v8564_v48, %v8359_v24 }
 0x101   : > { %946 = vrot.lane.b32.xlu0 %v897_v13, %s8160_s16  ;;  %944 = vrot.lane.b32.xlu1 %v896_v14, %s8160_s16  ;;  %v1281_v13 = vmul.f32 %v8564_v48, %v8362_v25 }
 0x105   : > { %938 = vrot.lane.b32.xlu0 %v893_v16, %s8160_s16  ;;  %920 = vrot.lane.b32.xlu1 %v884_v17, %s8160_s16  ;;  %v1284_v17 = vmul.f32 %v8564_v48, %v8371_v29 }
 0x109   : > { %1053 = vrot.lane.b32.xlu0 %v1015_v19, %s8161_s19  ;;  %1051 = vrot.lane.b32.xlu1 %v1014_v20, %s8161_s19  ;;  %v1283_v19 = vmul.f32 %v8564_v48, %v8374_v30  ;;  %v1522_v20 = vld [vmem:[%s10291_s2 + $0x8] sm:$0xff] }
 0x10d   : > { %1057 = vrot.lane.b32.xlu0 %v1017_v22, %s8161_s19  ;;  %1055 = vrot.lane.b32.xlu1 %v1016_v23, %s8161_s19  ;;  %v1521_v22 = vld [vmem:[%s10291_s2] sm:$0xff] }
 0x111   : > { %1071 = vrot.lane.b32.xlu0 %v1024_v28, %s8161_s19  ;;  %1069 = vrot.lane.b32.xlu1 %v1023_v31, %s8161_s19 }
 0x115   : > { %1075 = vrot.lane.b32.xlu0 %v1026_v32, %s8161_s19  ;;  %1073 = vrot.lane.b32.xlu1 %v1025_v34, %s8161_s19  ;;  %v1280_v34 = vmul.f32 %v8564_v48, %v8398_v39 }
 0x119   : > { %1067 = vrot.lane.b32.xlu0 %v1022_v37, %s8161_s19  ;;  %1049 = vrot.lane.b32.xlu1 %v1013_v38, %s8161_s19  ;;  %v1271_v37 = vmul.f32 %v8538_v35, %v8398_v39 }
 0x11d   : > { %1182 = vrot.lane.b32.xlu0 %v1144_v40, %s8162_s23  ;;  %1180 = vrot.lane.b32.xlu1 %v1143_v41, %s8162_s23  ;;  %v1402_v41 = vmul.f32 %v8554_v43, %v8359_v24 }
 0x121   : > { %1186 = vrot.lane.b32.xlu0 %v1146_v44, %s8162_s23  ;;  %1184 = vrot.lane.b32.xlu1 %v1145_v45, %s8162_s23  ;;  %v1401_v44 = vmul.f32 %v8554_v43, %v8362_v25 }
 0x125   : > { %1200 = vrot.lane.b32.xlu0 %v1153_v49, %s8162_s23  ;;  %1198 = vrot.lane.b32.xlu1 %v1152_v50, %s8162_s23  ;;  %v1404_v50 = vmul.f32 %v8554_v43, %v8371_v29 }
 0x129   : > { %1204 = vrot.lane.b32.xlu0 %v1155_v54, %s8162_s23  ;;  %1202 = vrot.lane.b32.xlu1 %v1154_v55, %s8162_s23  ;;  %v1403_v54 = vmul.f32 %v8554_v43, %v8374_v30 }
 0x12b   : > { %v8584_v56 = vpop.permute.xlu0 %537  ;;  %v8586_v58 = vpop.permute.xlu1 %535 }
 0x12d   : > { %1196 = vrot.lane.b32.xlu0 %v1151_v59, %s8162_s23  ;;  %1178 = vrot.lane.b32.xlu1 %v1142_v60, %s8162_s23  ;;  %v1411_v60 = vmul.f32 %v8562_v46, %v8359_v24 }
 0x12f   : > { %v8594_v61 = vpop.permute.xlu0 %541  ;;  %v8596_v62 = vpop.permute.xlu1 %539 }
 0x130   : > { %10378 = vst [vmem:[#allocation21_spill] sm:$0xff] %v8594_v61 }
 0x131   : > { %1311 = vrot.lane.b32.xlu0 %v1273_v63, %s8163_s26  ;;  %1309 = vrot.lane.b32.xlu1 %v1272_v1, %s8163_s26  ;;  %v1410_v63 = vmul.f32 %v8562_v46, %v8362_v25 }
 0x133   : > { %v8604_v2 = vpop.permute.xlu0 %555  ;;  %v8606_v3 = vpop.permute.xlu1 %553 }
 0x135   : > { %1315 = vrot.lane.b32.xlu0 %v1275_v4, %s8163_s26  ;;  %1313 = vrot.lane.b32.xlu1 %v1274_v6, %s8163_s26  ;;  %v1413_v6 = vmul.f32 %v8562_v46, %v8371_v29 }
 0x137   : > { %v8614_v7 = vpop.permute.xlu0 %559  ;;  %v8616_v8 = vpop.permute.xlu1 %557 }
 0x139   : > { %1329 = vrot.lane.b32.xlu0 %v1282_v9, %s8163_s26  ;;  %1327 = vrot.lane.b32.xlu1 %v1281_v13, %s8163_s26  ;;  %v1412_v9 = vmul.f32 %v8562_v46, %v8374_v30 }
 0x13b   : > { %v8624_v14 = vpop.permute.xlu0 %551  ;;  %v8626_v16 = vpop.permute.xlu1 %533 }
 0x13d   : > { %1333 = vrot.lane.b32.xlu0 %v1284_v17, %s8163_s26  ;;  %1331 = vrot.lane.b32.xlu1 %v1283_v19, %s8163_s26  ;;  %v1409_v19 = vmul.f32 %v8562_v46, %v8398_v39 }
 0x13f   : > { %v8640_v23 = vpop.permute.xlu0 %666  ;;  %v8642_v28 = vpop.permute.xlu1 %664 }
 0x141   : > { %1530 = vperm.xlu0 %7518, %v1522_v20   ;;  %1525 = vperm.xlu1 %7519, %v1521_v22   ;;  %v1400_v20 = vmul.f32 %v8554_v43, %v8398_v39 }
 0x143   : > { %v8644_v31 = vpop.permute.xlu0 %670  ;;  %v8646_v32 = vpop.permute.xlu1 %668 }
 0x145   : > { %1325 = vrot.lane.b32.xlu0 %v1280_v34, %s8163_s26  ;;  %1307 = vrot.lane.b32.xlu1 %v1271_v37, %s8163_s26  ;;  %v503_v37 = vmul.f32 %v8364_v26, %v8344_v10 }
 0x147   : > { %v8654_v38 = vpop.permute.xlu0 %684  ;;  %v8656_v40 = vpop.permute.xlu1 %682 }
 0x149   : > { %1440 = vrot.lane.b32.xlu0 %v1402_v41, %s8164_s24  ;;  %1438 = vrot.lane.b32.xlu1 %v1401_v44, %s8164_s24  ;;  %v502_v41 = vmul.f32 %v8364_v26, %v8347_v11 }
 0x14b   : > { %v8664_v45 = vpop.permute.xlu0 %688  ;;  %v8666_v49 = vpop.permute.xlu1 %686 }
 0x14d   : > { %1444 = vrot.lane.b32.xlu0 %v1404_v50, %s8164_s24  ;;  %1442 = vrot.lane.b32.xlu1 %v1403_v54, %s8164_s24  ;;  %v512_v54 = vmul.f32 %v8382_v33, %v8344_v10 }
 0x14f   : > { %v8674_v55 = vpop.permute.xlu0 %680  ;;  %v8676_v59 = vpop.permute.xlu1 %662 }
 0x151   : > { %1458 = vrot.lane.b32.xlu0 %v1411_v60, %s8164_s24  ;;  %1456 = vrot.lane.b32.xlu1 %v1410_v63, %s8164_s24  ;;  %v511_v60 = vmul.f32 %v8382_v33, %v8347_v11 }
 0x153   : > { %v8684_v1 = vpop.permute.xlu0 %795  ;;  %v8686_v4 = vpop.permute.xlu1 %793 }
 0x155   : > { %1462 = vrot.lane.b32.xlu0 %v1413_v6, %s8164_s24  ;;  %1460 = vrot.lane.b32.xlu1 %v1412_v9, %s8164_s24  ;;  %v632_v9 = vmul.f32 %v8406_v42, %v8344_v10 }
 0x157   : > { %v8694_v13 = vpop.permute.xlu0 %799  ;;  %v8696_v17 = vpop.permute.xlu1 %797 }
 0x159   : > { %1454 = vrot.lane.b32.xlu0 %v1409_v19, %s8164_s24  ;;  %1436 = vrot.lane.b32.xlu1 %v1400_v20, %s8164_s24  ;;  %v631_v19 = vmul.f32 %v8406_v42, %v8347_v11 }
 0x15b   : > { %v8704_v22 = vpop.permute.xlu0 %813  ;;  %v8706_v34 = vpop.permute.xlu1 %811 }
 0x15d   : > { %545 = vrot.lane.b32.xlu0 %v503_v37, %s8157_s25  ;;  %543 = vrot.lane.b32.xlu1 %v502_v41, %s8157_s25  ;;  %v641_v41 = vmul.f32 %v8420_v47, %v8344_v10 }
 0x15f   : > { %v8714_v44 = vpop.permute.xlu0 %817  ;;  %v8716_v50 = vpop.permute.xlu1 %815 }
 0x161   : > { %563 = vrot.lane.b32.xlu0 %v512_v54, %s8157_s25  ;;  %561 = vrot.lane.b32.xlu1 %v511_v60, %s8157_s25  ;;  %v640_v54 = vmul.f32 %v8420_v47, %v8347_v11 }
 0x163   : > { %v8724_v63 = vpop.permute.xlu0 %809  ;;  %v8726_v6 = vpop.permute.xlu1 %791 }
 0x165   : > { %674 = vrot.lane.b32.xlu0 %v632_v9, %s8158_s30  ;;  %672 = vrot.lane.b32.xlu1 %v631_v19, %s8158_s30  ;;  %v761_v9 = vmul.f32 %v8436_v52, %v8344_v10  ;;  %v760_v19 = vmul.f32 %v8436_v52, %v8347_v11 }
 0x167   : > { %v8734_v20 = vpop.permute.xlu0 %924  ;;  %v8736_v37 = vpop.permute.xlu1 %922 }
 0x168   : > { %10379 = vst [vmem:[#allocation22_spill] sm:$0xff] %v8736_v37 }
 0x169   : > { %692 = vrot.lane.b32.xlu0 %v641_v41, %s8158_s30  ;;  %690 = vrot.lane.b32.xlu1 %v640_v54, %s8158_s30  ;;  %v770_v41 = vmul.f32 %v8450_v57, %v8344_v10  ;;  %v769_v54 = vmul.f32 %v8450_v57, %v8347_v11 }
 0x16b   : > { %v8744_v60 = vpop.permute.xlu0 %928  ;;  %v8746_v18 = vpop.permute.xlu1 %926 }
 0x16c   : > { %10380 = vst [vmem:[#allocation23_spill] sm:$0xff] %v8744_v60  ;;  %10381 = vst [vmem:[#allocation24_spill] sm:$0xff] %v8746_v18 }
 0x16d   : > { %803 = vrot.lane.b32.xlu0 %v761_v9, %s8159_s14  ;;  %801 = vrot.lane.b32.xlu1 %v760_v19, %s8159_s14  ;;  %v890_v9 = vmul.f32 %v8470_v0, %v8344_v10  ;;  %v889_v19 = vmul.f32 %v8470_v0, %v8347_v11 }
 0x16f   : > { %v8754_v29 = vpop.permute.xlu0 %942  ;;  %v8756_v37 = vpop.permute.xlu1 %940 }
 0x170   : > { %10382 = vst [vmem:[#allocation25_spill] sm:$0xff] %v8754_v29  ;;  %10383 = vst [vmem:[#allocation26_spill] sm:$0xff] %v8756_v37 }
 0x171   : > { %821 = vrot.lane.b32.xlu0 %v770_v41, %s8159_s14  ;;  %819 = vrot.lane.b32.xlu1 %v769_v54, %s8159_s14  ;;  %v899_v41 = vmul.f32 %v8484_v5, %v8344_v10  ;;  %v898_v54 = vmul.f32 %v8484_v5, %v8347_v11 }
 0x173   : > { %v8764_v60 = vpop.permute.xlu0 %946  ;;  %v8766_v18 = vpop.permute.xlu1 %944 }
 0x174   : > { %10384 = vst [vmem:[#allocation27_spill] sm:$0xff] %v8764_v60  ;;  %10385 = vst [vmem:[#allocation28_spill] sm:$0xff] %v8766_v18 }
 0x175   : > { %932 = vrot.lane.b32.xlu0 %v890_v9, %s8160_s16  ;;  %930 = vrot.lane.b32.xlu1 %v889_v19, %s8160_s16  ;;  %v1019_v9 = vmul.f32 %v8504_v15, %v8344_v10  ;;  %v1018_v19 = vmul.f32 %v8504_v15, %v8347_v11 }
 0x177   : > { %v8774_v37 = vpop.permute.xlu0 %938  ;;  %v8776_v29 = vpop.permute.xlu1 %920 }
 0x178   : > { %10386 = vst [vmem:[#allocation29_spill] sm:$0xff] %v8774_v37  ;;  %10387 = vst [vmem:[#allocation30_spill] sm:$0xff] %v8776_v29 }
 0x179   : > { %950 = vrot.lane.b32.xlu0 %v899_v41, %s8160_s16  ;;  %948 = vrot.lane.b32.xlu1 %v898_v54, %s8160_s16  ;;  %v1028_v41 = vmul.f32 %v8516_v21, %v8344_v10  ;;  %v1027_v54 = vmul.f32 %v8516_v21, %v8347_v11 }
 0x17b   : > { %v8784_v60 = vpop.permute.xlu0 %1053  ;;  %v8786_v18 = vpop.permute.xlu1 %1051 }
 0x17c   : > { %10388 = vst [vmem:[#allocation31_spill] sm:$0xff] %v8784_v60  ;;  %10389 = vst [vmem:[#allocation32_spill] sm:$0xff] %v8786_v18 }
 0x17d   : > { %1061 = vrot.lane.b32.xlu0 %v1019_v9, %s8161_s19  ;;  %1059 = vrot.lane.b32.xlu1 %v1018_v19, %s8161_s19  ;;  %v1148_v9 = vmul.f32 %v8542_v36, %v8344_v10  ;;  %v1147_v19 = vmul.f32 %v8542_v36, %v8347_v11 }
 0x17f   : > { %v8794_v29 = vpop.permute.xlu0 %1057  ;;  %v8796_v37 = vpop.permute.xlu1 %1055 }
 0x180   : > { %10390 = vst [vmem:[#allocation33_spill] sm:$0xff] %v8794_v29  ;;  %10391 = vst [vmem:[#allocation34_spill] sm:$0xff] %v8796_v37 }
 0x181   : > { %1079 = vrot.lane.b32.xlu0 %v1028_v41, %s8161_s19  ;;  %1077 = vrot.lane.b32.xlu1 %v1027_v54, %s8161_s19  ;;  %v1157_v41 = vmul.f32 %v8526_v27, %v8344_v10  ;;  %v1156_v54 = vmul.f32 %v8526_v27, %v8347_v11 }
 0x183   : > { %v8804_v18 = vpop.permute.xlu0 %1071  ;;  %v8806_v60 = vpop.permute.xlu1 %1069 }
 0x184   : > { %10392 = vst [vmem:[#allocation35_spill] sm:$0xff] %v8804_v18  ;;  %10393 = vst [vmem:[#allocation36_spill] sm:$0xff] %v8806_v60 }
 0x185   : > { %1190 = vrot.lane.b32.xlu0 %v1148_v9, %s8162_s23  ;;  %1188 = vrot.lane.b32.xlu1 %v1147_v19, %s8162_s23  ;;  %v1277_v9 = vmul.f32 %v8538_v35, %v8344_v10  ;;  %v1276_v19 = vmul.f32 %v8538_v35, %v8347_v11 }
 0x187   : > { %v8814_v29 = vpop.permute.xlu0 %1075  ;;  %v8816_v37 = vpop.permute.xlu1 %1073 }
 0x188   : > { %10394 = vst [vmem:[#allocation37_spill] sm:$0xff] %v8814_v29  ;;  %10395 = vst [vmem:[#allocation38_spill] sm:$0xff] %v8816_v37 }
 0x189   : > { %1208 = vrot.lane.b32.xlu0 %v1157_v41, %s8162_s23  ;;  %1206 = vrot.lane.b32.xlu1 %v1156_v54, %s8162_s23  ;;  %v1286_v54 = vmul.f32 %v8564_v48, %v8344_v10 }
 0x18b   : > { %v8824_v60 = vpop.permute.xlu0 %1067  ;;  %v8826_v18 = vpop.permute.xlu1 %1049 }
 0x18c   : > { %10396 = vst [vmem:[#allocation39_spill] sm:$0xff] %v8824_v60  ;;  %10397 = vst [vmem:[#allocation40_spill] sm:$0xff] %v8826_v18  ;;  %v1285_v18 = vmul.f32 %v8564_v48, %v8347_v11 }
 0x18d   : > { %1319 = vrot.lane.b32.xlu0 %v1277_v9, %s8163_s26  ;;  %1317 = vrot.lane.b32.xlu1 %v1276_v19, %s8163_s26  ;;  %v1406_v19 = vmul.f32 %v8554_v43, %v8344_v10 }
 0x18f   : > { %v8834_v29 = vpop.permute.xlu0 %1182  ;;  %v8836_v41 = vpop.permute.xlu1 %1180 }
 0x190   : > { %10398 = vst [vmem:[#allocation41_spill] sm:$0xff] %v8834_v29  ;;  %10399 = vst [vmem:[#allocation42_spill] sm:$0xff] %v8836_v41  ;;  %v1405_v41 = vmul.f32 %v8554_v43, %v8347_v11 }
 0x191   : > { %1337 = vrot.lane.b32.xlu0 %v1286_v54, %s8163_s26  ;;  %1335 = vrot.lane.b32.xlu1 %v1285_v18, %s8163_s26  ;;  %v1415_v18 = vmul.f32 %v8562_v46, %v8344_v10  ;;  %v1414_v54 = vmul.f32 %v8562_v46, %v8347_v11 }
 0x193   : > { %v8844_v60 = vpop.permute.xlu0 %1186  ;;  %v8846_v9 = vpop.permute.xlu1 %1184 }
 0x194   : > { %10400 = vst [vmem:[#allocation43_spill] sm:$0xff] %v8844_v60  ;;  %v8863_v60 = vld [vmem:[%s8332_s15 + $0x8] ss:$0 sm:$0xff]  ;;  %s8167_s15 = smov 95  }
 0x195   : > { %1448 = vrot.lane.b32.xlu0 %v1406_v19, %s8164_s24  ;;  %1446 = vrot.lane.b32.xlu1 %v1405_v41, %s8164_s24  ;;  %10402 = vst [vmem:[#allocation45_spill] sm:$0xff] %v8863_v60  ;;  %v505_v41 = vmul.f32 %v8863_v60, %v8364_v26  ;;  %v514_v10 = vmul.f32 %v8863_v60, %v8382_v33 }
 0x196   : > { %v643_v46 = vmul.f32 %v8863_v60, %v8420_v47 }
 0x197   : > { %v8854_v29 = vpop.permute.xlu0 %1200  ;;  %v8856_v37 = vpop.permute.xlu1 %1198 }
 0x198   : > { %10401 = vst [vmem:[#allocation44_spill] sm:$0xff] %v8856_v37  ;;  %v504_v37 = vmul.f32 %v8364_v26, %v8350_v12  ;;  %v634_v26 = vmul.f32 %v8863_v60, %v8406_v42 }
 0x199   : > { %1466 = vrot.lane.b32.xlu0 %v1415_v18, %s8164_s24  ;;  %1464 = vrot.lane.b32.xlu1 %v1414_v54, %s8164_s24  ;;  %v513_v18 = vmul.f32 %v8382_v33, %v8350_v12 }
 0x19b   : > { %v8867_v43 = vpop.permute.xlu0 %1204  ;;  %v8869_v19 = vpop.permute.xlu1 %1202 }
 0x19c   : > { %10403 = vst [vmem:[#allocation46_spill] sm:$0xff] %v8867_v43  ;;  %10404 = vst [vmem:[#allocation47_spill] sm:$0xff] %v8869_v19  ;;  %v8963_v43 = vmul.f32 %v8863_v60, %v8526_v27  ;;  %v8967_v19 = vmul.f32 %v8526_v27, %v8350_v12  ;;  %v572_v27 = vsel %vm569_vm0, %v8584_v56, %v8596_v62 }
 0x19d   : > { %549 = vrot.lane.b32.xlu0 %v505_v41, %s8157_s25  ;;  %547 = vrot.lane.b32.xlu1 %v504_v37, %s8157_s25  ;;  %v633_v37 = vmul.f32 %v8406_v42, %v8350_v12  ;;  %v763_v42 = vmul.f32 %v8863_v60, %v8436_v52 }
 0x19e   : > { %10411 = vst [vmem:[#allocation54_spill] sm:$0xff] %v8963_v43  ;;  %v571_v43 = vsel %vm569_vm0, %v8586_v58, %v8584_v56  ;;  %v475_v56 = vmul.f32 %v8574_v51, %v8398_v39 }
 0x19f   : > { %v8881_v54 = vpop.permute.xlu0 %1196  ;;  %v8883_v11 = vpop.permute.xlu1 %1178 }
 0x1a0   : > { %10405 = vst [vmem:[#allocation48_spill] sm:$0xff] %v8881_v54  ;;  %10406 = vst [vmem:[#allocation49_spill] sm:$0xff] %v8883_v11 }
 0x1a1   : > { %567 = vrot.lane.b32.xlu0 %v514_v10, %s8157_s25  ;;  %565 = vrot.lane.b32.xlu1 %v513_v18, %s8157_s25  ;;  %v642_v10 = vmul.f32 %v8420_v47, %v8350_v12  ;;  %v762_v18 = vmul.f32 %v8436_v52, %v8350_v12  ;;  %v892_v47 = vmul.f32 %v8863_v60, %v8470_v0 }
 0x1a2   : > { %v8925_v52 = vmul.f32 %v8484_v5, %v8350_v12 }
 0x1a3   : > { %v8893_v41 = vpop.permute.xlu0 %1311  ;;  %v8895_v33 = vpop.permute.xlu1 %1309 }
 0x1a4   : > { %10407 = vst [vmem:[#allocation50_spill] sm:$0xff] %v8893_v41  ;;  %10408 = vst [vmem:[#allocation51_spill] sm:$0xff] %v8895_v33  ;;  %v8949_v33 = vmul.f32 %v8516_v21, %v8350_v12  ;;  %v8955_v41 = vmul.f32 %v8863_v60, %v8542_v36 }
 0x1a5   : > { %678 = vrot.lane.b32.xlu0 %v634_v26, %s8158_s30  ;;  %676 = vrot.lane.b32.xlu1 %v633_v37, %s8158_s30  ;;  %v772_v26 = vmul.f32 %v8863_v60, %v8450_v57  ;;  %v771_v37 = vmul.f32 %v8450_v57, %v8350_v12  ;;  %v8931_v57 = vmul.f32 %v8863_v60, %v8504_v15 }
 0x1a7   : > { %v8911_v11 = vpop.permute.xlu0 %1315  ;;  %v8913_v54 = vpop.permute.xlu1 %1313 }
 0x1a8   : > { %10409 = vst [vmem:[#allocation52_spill] sm:$0xff] %v8911_v11  ;;  %10410 = vst [vmem:[#allocation53_spill] sm:$0xff] %v8913_v54  ;;  %v8939_v11 = vmul.f32 %v8863_v60, %v8516_v21  ;;  %v8959_v54 = vmul.f32 %v8542_v36, %v8350_v12  ;;  %v8971_v21 = vmul.f32 %v8863_v60, %v8538_v35 }
 0x1a9   : > { %696 = vrot.lane.b32.xlu0 %v643_v46, %s8158_s30  ;;  %694 = vrot.lane.b32.xlu1 %v642_v10, %s8158_s30  ;;  %v891_v46 = vmul.f32 %v8470_v0, %v8350_v12  ;;  %v8921_v10 = vmul.f32 %v8863_v60, %v8484_v5  ;;  %v8935_v0 = vmul.f32 %v8504_v15, %v8350_v12 }
 0x1aa   : > { %v468_v5 = vmul.f32 %v8576_v53, %v8362_v25  ;;  %v467_v15 = vmul.f32 %v8576_v53, %v8398_v39  ;;  %10412 = vst [vmem:[#allocation55_spill] sm:$0xff] %v8971_v21  ;;  %v8979_v36 = vmul.f32 %v8564_v48, %v8350_v12 }
 0x1ab   : > { %v9001_v21 = vpop.permute.xlu0 %1329 }
 0x1ac   : > { %10414 = vst [vmem:[#allocation57_spill] sm:$0xff] %v8979_v36  ;;  %v477_v36 = vmul.f32 %v8574_v51, %v8359_v24  ;;  %v603_v39 = vadd.f32 %v571_v43, %v468_v5  ;;  %v702_v43 = vsel %vm698_vm1, %v8646_v32, %v8644_v31  ;;  %v708_v5 = vsel %vm698_vm1, %v8656_v40, %v8654_v38 }
 0x1ad   : > { %807 = vrot.lane.b32.xlu0 %v763_v42, %s8159_s14  ;;  %805 = vrot.lane.b32.xlu1 %v762_v18, %s8159_s14  ;;  %v469_v42 = vmul.f32 %v8576_v53, %v8359_v24  ;;  %v470_v18 = vmul.f32 %v8576_v53, %v8374_v30  ;;  %v8975_v53 = vmul.f32 %v8863_v60, %v8564_v48 }
 0x1ae   : > { %v8991_v60 = vmul.f32 %v8538_v35, %v8350_v12  ;;  %v476_v48 = vmul.f32 %v8574_v51, %v8362_v25  ;;  %v573_v35 = vsel %vm569_vm0, %v8596_v62, %v8594_v61  ;;  %v579_v25 = vsel %vm569_vm0, %v8606_v3, %v8604_v2 }
 0x1af   : > { %10413 = vst [vmem:[#allocation56_spill] sm:$0xff] %v8975_v53  ;;  %v478_v53 = vmul.f32 %v8574_v51, %v8374_v30  ;;  %v580_v24 = vsel %vm569_vm0, %v8604_v2, %v8616_v8  ;;  %v581_v30 = vsel %vm569_vm0, %v8616_v8, %v8614_v7  ;;  %v578_v51 = vsel %vm569_vm0, %v8624_v14, %v8606_v3 }
 0x1b0   : > { %v570_v62 = vsel %vm569_vm0, %v8626_v16, %v8586_v58  ;;  %v700_v61 = vsel %vm698_vm1, %v8642_v28, %v8640_v23  ;;  %v701_v2 = vsel %vm698_vm1, %v8640_v23, %v8646_v32  ;;  %v605_v3 = vadd.f32 %v573_v35, %v470_v18 }
 0x1b1   : > { %825 = vrot.lane.b32.xlu0 %v772_v26, %s8159_s14  ;;  %823 = vrot.lane.b32.xlu1 %v771_v37, %s8159_s14  ;;  %v9003_v26 = vpop.permute.xlu1 %1327  ;;  %v604_v37 = vadd.f32 %v572_v27, %v469_v42  ;;  %v611_v8 = vadd.f32 %v579_v25, %v476_v48  ;;  %v612_v58 = vadd.f32 %v580_v24, %v477_v36  ;;  %v9043_v27 = vpop.permute.xlu0 %1333  ;;  %v10415_v24 = vld [vmem:[#allocation22_spill] sm:$0xff] }
 0x1b2   : > { %v613_v14 = vadd.f32 %v581_v30, %v478_v53  ;;  %v610_v16 = vadd.f32 %v578_v51, %v475_v56  ;;  %v709_v23 = vsel %vm698_vm1, %v8654_v38, %v8666_v49  ;;  %v710_v32 = vsel %vm698_vm1, %v8666_v49, %v8664_v45 }
 0x1b3   : > { %v732_v42 = vadd.f32 %v700_v61, %v603_v39  ;;  %v734_v18 = vadd.f32 %v702_v43, %v605_v3  ;;  %v707_v51 = vsel %vm698_vm1, %v8674_v55, %v8656_v40  ;;  %v699_v38 = vsel %vm698_vm1, %v8676_v59, %v8642_v28  ;;  %v10418_v43 = vld [vmem:[#allocation25_spill] sm:$0xff]  ;;  %v10419_v3 = vld [vmem:[#allocation26_spill] sm:$0xff] }
 0x1b4   : > { %v829_v49 = vsel %vm827_vm2, %v8686_v4, %v8684_v1  ;;  %v740_v61 = vadd.f32 %v708_v5, %v611_v8  ;;  %v742_v36 = vadd.f32 %v710_v32, %v613_v14  ;;  %v830_v40 = vsel %vm827_vm2, %v8684_v1, %v8696_v17  ;;  %v10422_v32 = vld [vmem:[#allocation29_spill] sm:$0xff] }
 0x1b5   : > { %936 = vrot.lane.b32.xlu0 %v892_v47, %s8160_s16  ;;  %934 = vrot.lane.b32.xlu1 %v891_v46, %s8160_s16  ;;  %v602_v47 = vadd.f32 %v570_v62, %v467_v15  ;;  %v733_v46 = vadd.f32 %v701_v2, %v604_v37  ;;  %v9045_v53 = vpop.permute.xlu1 %1331  ;;  %v741_v15 = vadd.f32 %v709_v23, %v612_v58  ;;  %v10416_v62 = vld [vmem:[#allocation24_spill] sm:$0xff] }
 0x1b6   : > { %v831_v28 = vsel %vm827_vm2, %v8696_v17, %v8694_v13  ;;  %v837_v55 = vsel %vm827_vm2, %v8706_v34, %v8704_v22  ;;  %v838_v59 = vsel %vm827_vm2, %v8704_v22, %v8716_v50  ;;  %v861_v56 = vadd.f32 %v829_v49, %v732_v42  ;;  %v10423_v42 = vld [vmem:[#allocation30_spill] sm:$0xff] }
 0x1b7   : > { %v731_v48 = vadd.f32 %v699_v38, %v602_v47  ;;  %v836_v1 = vsel %vm827_vm2, %v8724_v63, %v8706_v34  ;;  %v862_v25 = vadd.f32 %v830_v40, %v733_v46  ;;  %v828_v22 = vsel %vm827_vm2, %v8726_v6, %v8686_v4  ;;  %v10417_v6 = vld [vmem:[#allocation23_spill] sm:$0xff] }
 0x1b8   : > { %v863_v34 = vadd.f32 %v831_v28, %v734_v18  ;;  %v869_v63 = vadd.f32 %v837_v55, %v740_v61  ;;  %v870_v30 = vadd.f32 %v838_v59, %v741_v15  ;;  %v959_v4 = vsel %vm956_vm3, %v8734_v20, %v10416_v62  ;;  %v10424_v18 = vld [vmem:[#allocation31_spill] sm:$0xff]  ;;  %v10427_v55 = vld [vmem:[#allocation33_spill] sm:$0xff] }
 0x1b9   : > { %954 = vrot.lane.b32.xlu0 %v8921_v10, %s8160_s16  ;;  %952 = vrot.lane.b32.xlu1 %v8925_v52, %s8160_s16  ;;  %v839_v10 = vsel %vm827_vm2, %v8716_v50, %v8714_v44  ;;  %v739_v52 = vadd.f32 %v707_v51, %v610_v16  ;;  %v958_v50 = vsel %vm956_vm3, %v10415_v24, %v8734_v20  ;;  %v10421_v16 = vld [vmem:[#allocation27_spill] sm:$0xff]  ;;  %v10425_v51 = vld [vmem:[#allocation32_spill] sm:$0xff]  ;;  %s8169_s16 = smov 111  }
 0x1ba   : > { %v871_v39 = vadd.f32 %v839_v10, %v742_v36  ;;  %v960_v2 = vsel %vm956_vm3, %v10416_v62, %v10417_v6  ;;  %v860_v8 = vadd.f32 %v828_v22, %v731_v48  ;;  %v990_v58 = vadd.f32 %v958_v50, %v861_v56  ;;  %v10426_v36 = vld [vmem:[#allocation34_spill] sm:$0xff]  ;;  %v10428_v10 = vld [vmem:[#allocation35_spill] sm:$0xff] }
 0x1bb   : > { %v868_v37 = vadd.f32 %v836_v1, %v739_v52  ;;  %v965_v47 = vsel %vm956_vm3, %v10422_v32, %v10419_v3  ;;  %v957_v46 = vsel %vm956_vm3, %v10423_v42, %v10415_v24  ;;  %v1087_v38 = vsel %vm1085_vm4, %v10425_v51, %v10424_v18  ;;  %v10429_v52 = vld [vmem:[#allocation36_spill] sm:$0xff]  ;;  %v10432_v62 = vld [vmem:[#allocation39_spill] sm:$0xff] }
 0x1bc   : > { %v9078_v17 = vpop.permute.xlu0 %1530  ;;  %v9080_v35 = vpop.permute.xlu1 %1525  ;;  %v991_v49 = vadd.f32 %v959_v4, %v862_v25  ;;  %v992_v61 = vadd.f32 %v960_v2, %v863_v34  ;;  %v1088_v40 = vsel %vm1085_vm4, %v10424_v18, %v10426_v36  ;;  %v1089_v59 = vsel %vm1085_vm4, %v10426_v36, %v10427_v55  ;;  %v10438_v42 = vld [vmem:[#allocation40_spill] sm:$0xff]  ;;  %v10439_v18 = vld [vmem:[#allocation46_spill] sm:$0xff] }
 0x1bd   : > { %1065 = vrot.lane.b32.xlu0 %v8931_v57, %s8161_s19  ;;  %1063 = vrot.lane.b32.xlu1 %v8935_v0, %s8161_s19  ;;  %v966_v57 = vsel %vm956_vm3, %v10419_v3, %v10418_v43  ;;  %v10420_v0 = vld [vmem:[#allocation28_spill] sm:$0xff]  ;;  %v1095_v48 = vsel %vm1085_vm4, %v10429_v52, %v10428_v10  ;;  %v997_v1 = vadd.f32 %v965_v47, %v868_v37  ;;  %v10434_v3 = vld [vmem:[#allocation42_spill] sm:$0xff] }
 0x1be   : > { %v967_v14 = vsel %vm956_vm3, %v10418_v43, %v10420_v0  ;;  %v968_v5 = vsel %vm956_vm3, %v10420_v0, %v10421_v16  ;;  %v998_v15 = vadd.f32 %v966_v57, %v869_v63  ;;  %v989_v25 = vadd.f32 %v957_v46, %v860_v8  ;;  %v10431_v63 = vld [vmem:[#allocation37_spill] sm:$0xff]  ;;  %v10441_v36 = vld [vmem:[#allocation50_spill] sm:$0xff] }
 0x1bf   : > { %v999_v28 = vadd.f32 %v967_v14, %v870_v30  ;;  %v1000_v56 = vadd.f32 %v968_v5, %v871_v39  ;;  %v1119_v22 = vadd.f32 %v1087_v38, %v990_v58  ;;  %v1120_v34 = vadd.f32 %v1088_v40, %v991_v49  ;;  %v10433_v43 = vld [vmem:[#allocation41_spill] sm:$0xff]  ;;  %v10435_v58 = vld [vmem:[#allocation43_spill] sm:$0xff] }
 0x1c0   : > { %v9107_v23 = vpop.permute.xlu0 %1325  ;;  %v9109_v20 = vpop.permute.xlu1 %1307  ;;  %v1094_v4 = vsel %vm1085_vm4, %v10432_v62, %v10429_v52  ;;  %v1121_v39 = vadd.f32 %v1089_v59, %v992_v61  ;;  %v1127_v37 = vadd.f32 %v1095_v48, %v998_v15  ;;  %v1216_v57 = vsel %vm1214_vm5, %v10434_v3, %v10433_v43  ;;  %v10440_v15 = vld [vmem:[#allocation53_spill] sm:$0xff] }
 0x1c1   : > { %1083 = vrot.lane.b32.xlu0 %v8939_v11, %s8161_s19  ;;  %1081 = vrot.lane.b32.xlu1 %v8949_v33, %s8161_s19  ;;  %v10430_v11 = vld [vmem:[#allocation38_spill] sm:$0xff]  ;;  %v1217_v8 = vsel %vm1214_vm5, %v10433_v43, %v8846_v9  ;;  %v1218_v0 = vsel %vm1214_vm5, %v8846_v9, %v10435_v58  ;;  %v1126_v47 = vadd.f32 %v1094_v4, %v997_v1 }
 0x1c2   : > { %v1096_v33 = vsel %vm1085_vm4, %v10428_v10, %v10430_v11  ;;  %v1097_v30 = vsel %vm1085_vm4, %v10430_v11, %v10431_v63  ;;  %v1086_v46 = vsel %vm1085_vm4, %v10438_v42, %v10425_v51  ;;  %v1248_v61 = vadd.f32 %v1216_v57, %v1119_v22  ;;  %v10443_v11 = vld [vmem:[#allocation51_spill] sm:$0xff] }
 0x1c3   : > { %v1128_v2 = vadd.f32 %v1096_v33, %v999_v28  ;;  %v1129_v32 = vadd.f32 %v1097_v30, %v1000_v56  ;;  %v1346_v40 = vsel %vm1343_vm6, %v10441_v36, %v10440_v15  ;;  %v10442_v28 = vld [vmem:[#allocation54_spill] sm:$0xff]  ;;  %v1249_v51 = vadd.f32 %v1217_v8, %v1120_v34  ;;  %v10444_v56 = vld [vmem:[#allocation52_spill] sm:$0xff]  ;;  %v10445_v57 = vld [vmem:[#allocation55_spill] sm:$0xff] }
 0x1c4   : > { %v1441_v24 = vpop.permute.xlu0 %1440  ;;  %v9136_v50 = vpop.permute.xlu1 %1438  ;;  %v1250_v59 = vadd.f32 %v1218_v0, %v1121_v39  ;;  %v1345_v33 = vsel %vm1343_vm6, %v10443_v11, %v10441_v36  ;;  %v1347_v1 = vsel %vm1343_vm6, %v10440_v15, %v10444_v56  ;;  %v1355_v34 = vsel %vm1343_vm6, %v9045_v53, %v9043_v27 }
 0x1c5   : > { %1194 = vrot.lane.b32.xlu0 %v8955_v41, %s8162_s23  ;;  %1192 = vrot.lane.b32.xlu1 %v8959_v54, %s8162_s23  ;;  %v10436_v41 = vld [vmem:[#allocation44_spill] sm:$0xff]  ;;  %v10437_v54 = vld [vmem:[#allocation47_spill] sm:$0xff]  ;;  %v1378_v30 = vadd.f32 %v1346_v40, %v1249_v51  ;;  %v10449_v40 = vld [vmem:[#allocation57_spill] sm:$0xff] }
 0x1c6   : > { %v1224_v14 = vsel %vm1214_vm5, %v10436_v41, %v8854_v29  ;;  %v1225_v5 = vsel %vm1214_vm5, %v8854_v29, %v10437_v54  ;;  %v1226_v38 = vsel %vm1214_vm5, %v10437_v54, %v10439_v18  ;;  %v1353_v29 = vsel %vm1343_vm6, %v9003_v26, %v9001_v21  ;;  %v10446_v54 = vld [vmem:[#allocation48_spill] sm:$0xff] }
 0x1c7   : > { %v1256_v10 = vadd.f32 %v1224_v14, %v1127_v37  ;;  %v1257_v52 = vadd.f32 %v1225_v5, %v1128_v2  ;;  %v1258_v48 = vadd.f32 %v1226_v38, %v1129_v32  ;;  %v1474_v37 = vsel %vm1472_vm7, %v9136_v50, %v1441_v24  ;;  %v10447_v5 = vld [vmem:[#allocation49_spill] sm:$0xff] }
 0x1c8   : > { %v9169_v49 = vpop.permute.xlu0 %1444  ;;  %v1443_v9 = vpop.permute.xlu1 %1442  ;;  %v1379_v8 = vadd.f32 %v1347_v1, %v1250_v59  ;;  %v1118_v14 = vadd.f32 %v1086_v46, %v989_v25  ;;  %v1215_v32 = vsel %vm1214_vm5, %v10447_v5, %v10434_v3  ;;  %v1344_v25 = vsel %vm1343_vm6, %v9109_v20, %v10443_v11  ;;  %v10448_v46 = vld [vmem:[#allocation56_spill] sm:$0xff]  ;;  %v10450_v59 = vld [vmem:[#allocation17_spill] sm:$0xff] }
 0x1c9   : > { %1212 = vrot.lane.b32.xlu0 %v10442_v28, %s8162_s23  ;;  %1210 = vrot.lane.b32.xlu1 %v8967_v19, %s8162_s23  ;;  %v1475_v22 = vsel %vm1472_vm7, %v1441_v24, %v1443_v9  ;;  %v1385_v62 = vadd.f32 %v1353_v29, %v1256_v10  ;;  %v1354_v19 = vsel %vm1343_vm6, %v9001_v21, %v9045_v53  ;;  %v10451_v10 = vld [vmem:[#allocation45_spill] sm:$0xff]  ;;  %s8170_s23 = smov 112  }
 0x1ca   : > { %v1476_v2 = vsel %vm1472_vm7, %v1443_v9, %v9169_v49  ;;  %v1377_v21 = vadd.f32 %v1345_v33, %v1248_v61  ;;  %v1507_v0 = vadd.f32 %v1475_v22, %v1378_v30  ;;  %v1223_v24 = vsel %vm1214_vm5, %v10446_v54, %v10436_v41 }
 0x1cb   : > { %v1386_v42 = vadd.f32 %v1354_v19, %v1257_v52  ;;  %v1387_v38 = vadd.f32 %v1355_v34, %v1258_v48  ;;  %v1352_v9 = vsel %vm1343_vm6, %v9107_v23, %v9003_v26  ;;  %v1508_v61 = vadd.f32 %v1476_v2, %v1379_v8 }
 0x1cc   : > { %v1459_v4 = vpop.permute.xlu0 %1458  ;;  %v1457_v39 = vpop.permute.xlu1 %1456  ;;  %v1255_v26 = vadd.f32 %v1223_v24, %v1126_v47  ;;  %v1247_v23 = vadd.f32 %v1215_v32, %v1118_v14  ;;  %v9225_v29 = vadd.f32 %v9080_v35, %v1507_v0  ;;  %v1408_v52 = vmul.f32 %v10451_v10, %v10450_v59 }
 0x1cd   : > { %v1482_v43 = vsel %vm1472_vm7, %v1457_v39, %v1459_v4  ;;  %1323 = vrot.lane.b32.xlu0 %v10445_v57, %s8163_s26  ;;  %1321 = vrot.lane.b32.xlu1 %v8991_v60, %s8163_s26  ;;  %v1506_v60 = vadd.f32 %v1474_v37, %v1377_v21  ;;  %v1407_v48 = vmul.f32 %v10450_v59, %v8350_v12 }
 0x1ce   : > { %v1514_v53 = vadd.f32 %v1482_v43, %v1385_v62  ;;  %v1384_v11 = vadd.f32 %v1352_v9, %v1255_v26  ;;  %v1376_v33 = vadd.f32 %v1344_v25, %v1247_v23  ;;  %v9238_v47 = vadd.f32 %v9080_v35, %v1508_v61 }
 0x1cf   : > { %v9235_v1 = vadd.f32 %v9080_v35, %v1506_v60  ;;  %v10356_v34 = vmax.f32 %v9225_v29, 0.0 }
 0x1d0   : > { %v9212_v15 = vpop.permute.xlu0 %1462  ;;  %v1461_v36 = vpop.permute.xlu1 %1460  ;;  %v9228_v28 = vadd.f32 %v9078_v17, %v1514_v53  ;;  %10452 = vst [vmem:[#allocation22_spill] sm:$0xff] %v9238_v47  ;;  %v10350_v0 = vmax.f32 %v9238_v47, 0.0 }
 0x1d1   : > { %v1483_v41 = vsel %vm1472_vm7, %v1459_v4, %v1461_v36  ;;  %v1484_v3 = vsel %vm1472_vm7, %v1461_v36, %v9212_v15  ;;  %1341 = vrot.lane.b32.xlu0 %v10448_v46, %s8163_s26  ;;  %1339 = vrot.lane.b32.xlu1 %v10449_v40, %s8163_s26  ;;  %v10355_v8 = vmax.f32 %v9235_v1, 0.0 }
 0x1d2   : > { %v1515_v20 = vadd.f32 %v1483_v41, %v1386_v42  ;;  %v1516_v51 = vadd.f32 %v1484_v3, %v1387_v38  ;;  %v10354_v4 = vmax.f32 %v9228_v28, 0.0 }
 0x1d3   : > { %v7520_v5 = vpack.i.bf16 %v10356_v34, %v10355_v8  ;;  %v10460_v34 = vld [vmem:[#allocation19_spill] sm:$0xff] }
 0x1d4   : > { %v1455_v22 = vpop.permute.xlu0 %1454  ;;  %v1437_v30 = vpop.permute.xlu1 %1436  ;;  %v9248_v43 = vadd.f32 %v9078_v17, %v1515_v20  ;;  %v9251_v57 = vadd.f32 %v9078_v17, %v1516_v51  ;;  %v7525_v32 = vpack.i.bf16 %v10354_v4, %v10350_v0 }
 0x1d5   : > { %v1481_v62 = vsel %vm1472_vm7, %v1455_v22, %v1457_v39  ;;  %v1473_v19 = vsel %vm1472_vm7, %v1437_v30, %v9136_v50  ;;  %1452 = vrot.lane.b32.xlu0 %v1408_v52, %s8164_s24  ;;  %1450 = vrot.lane.b32.xlu1 %v1407_v48, %s8164_s24  ;;  %v10454_v39 = vld [vmem:[#allocation18_spill] sm:$0xff] }
 0x1d6   : > { %v1513_v37 = vadd.f32 %v1481_v62, %v1384_v11  ;;  %v1505_v2 = vadd.f32 %v1473_v19, %v1376_v33  ;;  %10453 = vst [vmem:[#allocation24_spill] sm:$0xff] %v9251_v57  ;;  %v1417_v21 = vmul.f32 %v10451_v10, %v10454_v39  ;;  %v1416_v50 = vmul.f32 %v10454_v39, %v8350_v12 }
 0x1d7   : > { %v10353_v42 = vmax.f32 %v9248_v43, 0.0  ;;  %v10349_v38 = vmax.f32 %v9251_v57, 0.0 }
 0x1d8   : > { %v9260_v53 = vadd.f32 %v9078_v17, %v1513_v37  ;;  %v9263_v14 = vadd.f32 %v9080_v35, %v1505_v2  ;;  %v9265_v54 = vpop.permute.xlu0 %545  ;;  %v544_v24 = vpop.permute.xlu1 %543  ;;  %v10456_v2 = vld [vmem:[#allocation21_spill] sm:$0xff] }
 0x1d9   : > { %1470 = vrot.lane.b32.xlu0 %v1417_v21, %s8164_s24  ;;  %1468 = vrot.lane.b32.xlu1 %v1416_v50, %s8164_s24  ;;  %v7530_v41 = vpack.i.bf16 %v10349_v38, %v10353_v42  ;;  %v574_v39 = vsel %vm569_vm0, %v10456_v2, %v544_v24  ;;  %v575_v21 = vsel %vm569_vm0, %v544_v24, %v9265_v54  ;;  %v10457_v50 = vld [vmem:[#allocation16_spill] sm:$0xff]  ;;  %s6746_s24 = sshll.u32 %s8254_s21, 4  ;;  %s8172_s21 = smov [#allocation7]  }
 0x1da   : > { %10455 = vst [vmem:[#allocation23_spill] sm:$0xff] %v9263_v14  ;;  %v10352_v9 = vmax.f32 %v9260_v53, 0.0  ;;  %v10351_v60 = vmax.f32 %v9263_v14, 0.0 }
 0x1dc   : > { %v9281_v61 = vpop.permute.xlu0 %563  ;;  %v562_v36 = vpop.permute.xlu1 %561  ;;  %v7535_v25 = vpack.i.bf16 %v10352_v9, %v10351_v60 }
 0x1dd   : > { %7521 = vrot.lane.b32.xlu1 %v7520_v5, %s8157_s25  ;;  %7526 = vrot.lane.b32.xlu0 %v7525_v32, %s8157_s25  ;;  %v10458_v5 = vld [vmem:[#allocation20_spill] sm:$0xff]  ;;  %v582_v24 = vsel %vm569_vm0, %v8614_v7, %v562_v36  ;;  %v583_v4 = vsel %vm569_vm0, %v562_v36, %v9281_v61 }
 0x1de   : > { %v471_v32 = vmul.f32 %v10458_v5, %v10457_v50 }
 0x1e0   : > { %v9293_v3 = vpop.permute.xlu0 %674  ;;  %v673_v46 = vpop.permute.xlu1 %672  ;;  %v606_v60 = vadd.f32 %v574_v39, %v471_v32 }
 0x1e1   : > { %7531 = vrot.lane.b32.xlu1 %v7530_v41, %s8157_s25  ;;  %7536 = vrot.lane.b32.xlu0 %v7535_v25, %s8157_s25  ;;  %v10459_v25 = vld [vmem:[#allocation15_spill] sm:$0xff]  ;;  %v703_v38 = vsel %vm698_vm1, %v8644_v31, %v673_v46  ;;  %v704_v0 = vsel %vm698_vm1, %v673_v46, %v9293_v3  ;;  %v479_v46 = vmul.f32 %v10460_v34, %v10457_v50 }
 0x1e2   : > { %v472_v41 = vmul.f32 %v10458_v5, %v10459_v25  ;;  %v480_v39 = vmul.f32 %v10460_v34, %v10459_v25 }
 0x1e4   : > { %v9297_v40 = vpop.permute.xlu0 %692  ;;  %v691_v26 = vpop.permute.xlu1 %690  ;;  %v607_v9 = vadd.f32 %v575_v21, %v472_v41  ;;  %v735_v21 = vadd.f32 %v703_v38, %v606_v60  ;;  %v614_v41 = vadd.f32 %v582_v24, %v479_v46  ;;  %v615_v57 = vadd.f32 %v583_v4, %v480_v39 }
 0x1e5   : > { %v711_v7 = vsel %vm698_vm1, %v8664_v45, %v691_v26  ;;  %v712_v36 = vsel %vm698_vm1, %v691_v26, %v9297_v40 }
 0x1e6   : > { %v736_v32 = vadd.f32 %v704_v0, %v607_v9  ;;  %v743_v60 = vadd.f32 %v711_v7, %v614_v41  ;;  %v744_v26 = vadd.f32 %v712_v36, %v615_v57 }
 0x1e8   : > { %v9299_v23 = vpop.permute.xlu0 %803  ;;  %v802_v20 = vpop.permute.xlu1 %801 }
 0x1e9   : > { %v832_v8 = vsel %vm827_vm2, %v8694_v13, %v802_v20  ;;  %v833_v31 = vsel %vm827_vm2, %v802_v20, %v9299_v23 }
 0x1ea   : > { %v864_v50 = vadd.f32 %v832_v8, %v735_v21  ;;  %v865_v47 = vadd.f32 %v833_v31, %v736_v32 }
 0x1ec   : > { %v9301_v51 = vpop.permute.xlu0 %821  ;;  %v820_v59 = vpop.permute.xlu1 %819 }
 0x1ed   : > { %v840_v0 = vsel %vm827_vm2, %v8714_v44, %v820_v59  ;;  %v841_v45 = vsel %vm827_vm2, %v820_v59, %v9301_v51 }
 0x1ee   : > { %v873_v24 = vadd.f32 %v841_v45, %v744_v26 }
 0x1f0   : > { %v9303_v10 = vpop.permute.xlu0 %932  ;;  %v931_v52 = vpop.permute.xlu1 %930 }
 0x1f1   : > { %v961_v13 = vsel %vm956_vm3, %v10417_v6, %v931_v52  ;;  %v962_v20 = vsel %vm956_vm3, %v931_v52, %v9303_v10 }
 0x1f2   : > { %v993_v4 = vadd.f32 %v961_v13, %v864_v50  ;;  %v994_v8 = vadd.f32 %v962_v20, %v865_v47 }
 0x1f4   : > { %v9305_v48 = vpop.permute.xlu0 %950  ;;  %v949_v11 = vpop.permute.xlu1 %948 }
 0x1f5   : > { %v969_v52 = vsel %vm956_vm3, %v10421_v16, %v949_v11  ;;  %v970_v25 = vsel %vm956_vm3, %v949_v11, %v9305_v48 }
 0x1f6   : > { %v1002_v39 = vadd.f32 %v970_v25, %v873_v24 }
 0x1f8   : > { %v9307_v33 = vpop.permute.xlu0 %1061  ;;  %v1060_v22 = vpop.permute.xlu1 %1059 }
 0x1f9   : > { %v1090_v9 = vsel %vm1085_vm4, %v10427_v55, %v1060_v22  ;;  %v1091_v6 = vsel %vm1085_vm4, %v1060_v22, %v9307_v33  ;;  %v872_v55 = vadd.f32 %v840_v0, %v743_v60 }
 0x1fa   : > { %v1122_v31 = vadd.f32 %v1090_v9, %v993_v4  ;;  %v1123_v22 = vadd.f32 %v1091_v6, %v994_v8 }
 0x1fc   : > { %v9309_v30 = vpop.permute.xlu0 %1079  ;;  %v1078_v62 = vpop.permute.xlu1 %1077 }
 0x1fd   : > { %v1098_v47 = vsel %vm1085_vm4, %v10431_v63, %v1078_v62  ;;  %v1099_v16 = vsel %vm1085_vm4, %v1078_v62, %v9309_v30 }
 0x1fe   : > { %v1131_v13 = vadd.f32 %v1099_v16, %v1002_v39  ;;  %v7640_v16 = vld [vmem:[#allocation2 + $0xac] ss:$12 sps:$4 sm:$0xff]  }
 0x1ff   : > { %2876 = vmatprep.subr.bf16.mxu0 %v7640_v16 }
 0x200   : > { %v9311_v19 = vpop.permute.xlu0 %1190  ;;  %v1189_v37 = vpop.permute.xlu1 %1188 }
 0x201   : > { %v1219_v44 = vsel %vm1214_vm5, %v10435_v58, %v1189_v37  ;;  %v1220_v59 = vsel %vm1214_vm5, %v1189_v37, %v9311_v19  ;;  %v1001_v37 = vadd.f32 %v969_v52, %v872_v55 }
 0x202   : > { %v1251_v21 = vadd.f32 %v1219_v44, %v1122_v31  ;;  %v1252_v32 = vadd.f32 %v1220_v59, %v1123_v22 }
 0x203   : > { %v1130_v63 = vadd.f32 %v1098_v47, %v1001_v37 }
 0x204   : > { %v9325_v42 = vpop.permute.xlu0 %1208  ;;  %v1207_v2 = vpop.permute.xlu1 %1206 }
 0x205   : > { %v1227_v7 = vsel %vm1214_vm5, %v10439_v18, %v1207_v2  ;;  %v1228_v36 = vsel %vm1214_vm5, %v1207_v2, %v9325_v42 }
 0x206   : > { %v1259_v2 = vadd.f32 %v1227_v7, %v1130_v63  ;;  %v1260_v45 = vadd.f32 %v1228_v36, %v1131_v13  ;;  %v7646_v63 = vld [vmem:[#allocation2 + $0x7c] ss:$12 sps:$4 sm:$0xff]   ;;  %v7648_v13 = vld [vmem:[#allocation2 + $0x78] ss:$12 sps:$4 sm:$0xff]  }
 0x208   : > { %v9347_v14 = vpop.permute.xlu0 %1319  ;;  %v1318_v38 = vpop.permute.xlu1 %1317 }
 0x209   : > { %v1348_v11 = vsel %vm1343_vm6, %v10444_v56, %v1318_v38  ;;  %v1349_v58 = vsel %vm1343_vm6, %v1318_v38, %v9347_v14 }
 0x20a   : > { %v1380_v20 = vadd.f32 %v1348_v11, %v1251_v21  ;;  %v1381_v62 = vadd.f32 %v1349_v58, %v1252_v32  ;;  %v7642_v11 = vld [vmem:[#allocation2 + $0xa8] ss:$12 sps:$4 sm:$0xff]   ;;  %v7645_v21 = vld [vmem:[#allocation2 + $0x90] ss:$12 sps:$4 sm:$0xff]  }
 0x20b   : > { %v7643_v58 = vld [vmem:[#allocation2 + $0x94] ss:$12 sps:$4 sm:$0xff]   ;;  %2877 = vmatpush1.bf16.msra.mxu0 %v7642_v11 }
 0x20c   : > { %v9365_v46 = vpop.permute.xlu0 %1337  ;;  %v1336_v57 = vpop.permute.xlu1 %1335  ;;  %2878 = vmatprep.subr.bf16.mxu0 %v7643_v58  ;;  %v7663_v11 = vld [vmem:[#allocation2] ss:$12 sps:$4 sm:$0xff]  }
 0x20d   : > { %v1356_v50 = vsel %vm1343_vm6, %v9043_v27, %v1336_v57  ;;  %v1357_v38 = vsel %vm1343_vm6, %v1336_v57, %v9365_v46  ;;  %v10461_v58 = vld [vmem:[#allocation14_spill] sm:$0xff] }
 0x20e   : > { %v1388_v60 = vadd.f32 %v1356_v50, %v1259_v2  ;;  %v1389_v26 = vadd.f32 %v1357_v38, %v1260_v45  ;;  %v7651_v50 = vld [vmem:[#allocation2 + $0x60] ss:$12 sps:$4 sm:$0xff]   ;;  %v7654_v2 = vld [vmem:[#allocation2 + $0x48] ss:$12 sps:$4 sm:$0xff]  }
 0x20f   : > { %2879 = vmatpush1.bf16.msra.mxu0 %v7645_v21  ;;  %v481_v21 = vmul.f32 %v10460_v34, %v10461_v58 }
 0x210   : > { %v9379_v41 = vpop.permute.xlu0 %1448  ;;  %v1447_v56 = vpop.permute.xlu1 %1446  ;;  %2880 = vmatprep.subr.bf16.mxu0 %v7646_v63 }
 0x211   : > { %v1477_v0 = vsel %vm1472_vm7, %v9169_v49, %v1447_v56  ;;  %v1478_v18 = vsel %vm1472_vm7, %v1447_v56, %v9379_v41  ;;  %v7649_v56 = vld [vmem:[#allocation2 + $0x64] ss:$12 sps:$4 sm:$0xff]  }
 0x212   : > { %v1509_v9 = vadd.f32 %v1477_v0, %v1380_v20  ;;  %v1510_v6 = vadd.f32 %v1478_v18, %v1381_v62  ;;  %v7652_v18 = vld [vmem:[#allocation2 + $0x4c] ss:$12 sps:$4 sm:$0xff]  }
 0x213   : > { %2881 = vmatpush1.bf16.msra.mxu0 %v7648_v13  ;;  %v7664_v13 = vld [vmem:[#allocation2 + $0x16c] ss:$12 sps:$4 sm:$0xff]  }
 0x214   : > { %v9390_v4 = vadd.f32 %v9080_v35, %v1509_v9  ;;  %v9393_v27 = vadd.f32 %v9080_v35, %v1510_v6  ;;  %v9395_v8 = vpop.permute.xlu0 %1466  ;;  %v1465_v52 = vpop.permute.xlu1 %1464  ;;  %2882 = vmatprep.subr.bf16.mxu0 %v7649_v56  ;;  %v7655_v6 = vld [vmem:[#allocation2 + $0x34] ss:$12 sps:$4 sm:$0xff]  }
 0x215   : > { %v1485_v49 = vsel %vm1472_vm7, %v9212_v15, %v1465_v52  ;;  %v1486_v25 = vsel %vm1472_vm7, %v1465_v52, %v9395_v8 }
 0x216   : > { %v1553_v44 = vmax.f32 %v9390_v4, 0.0  ;;  %v1554_v59 = vmax.f32 %v9393_v27, 0.0  ;;  %v1517_v55 = vadd.f32 %v1485_v49, %v1388_v60  ;;  %v1518_v24 = vadd.f32 %v1486_v25, %v1389_v26  ;;  %v7657_v60 = vld [vmem:[#allocation2 + $0x30] ss:$12 sps:$4 sm:$0xff]   ;;  %v7660_v25 = vld [vmem:[#allocation2 + $0x18] ss:$12 sps:$4 sm:$0xff]  }
 0x217   : > { %2883 = vmatpush1.bf16.msra.mxu0 %v7651_v50  ;;  %v7658_v49 = vld [vmem:[#allocation2 + $0x1c] ss:$12 sps:$4 sm:$0xff]  }
 0x218   : > { %v7540_v31 = vpack.i.bf16 %v1554_v59, %v1553_v44  ;;  %v9408_v22 = vadd.f32 %v9078_v17, %v1517_v55  ;;  %v9411_v57 = vadd.f32 %v9078_v17, %v1518_v24  ;;  %v9413_v15 = vpop.permute.xlu0 %549  ;;  %v9415_v47 = vpop.permute.xlu1 %547  ;;  %2884 = vmatprep.subr.bf16.mxu0 %v7652_v18 }
 0x219   : > { %v576_v56 = vsel %vm569_vm0, %v9265_v54, %v9415_v47 }
 0x21a   : > { %v1561_v37 = vmax.f32 %v9408_v22, 0.0  ;;  %v1562_v39 = vmax.f32 %v9411_v57, 0.0  ;;  %7541 = vrot.lane.b32.xlu1 %v7540_v31, %s8157_s25  ;;  %v7661_v31 = vld [vmem:[#allocation2 + $0x4] ss:$12 sps:$4 sm:$0xff]  }
 0x21b   : > { %2885 = vmatpush1.bf16.msra.mxu0 %v7654_v2 }
 0x21c   : > { %v7545_v32 = vpack.i.bf16 %v1562_v39, %v1561_v37  ;;  %v9424_v7 = vpop.permute.xlu0 %567  ;;  %v9426_v36 = vpop.permute.xlu1 %565  ;;  %2886 = vmatprep.subr.bf16.mxu0 %v7655_v6 }
 0x21d   : > { %v584_v16 = vsel %vm569_vm0, %v9281_v61, %v9426_v36  ;;  %v473_v61 = vmul.f32 %v10458_v5, %v10461_v58 }
 0x21e   : > { %7546 = vrot.lane.b32.xlu0 %v7545_v32, %s8157_s25  ;;  %v616_v18 = vadd.f32 %v584_v16, %v481_v21 }
 0x21f   : > { %2887 = vmatpush1.bf16.msra.mxu0 %v7657_v60  ;;  %v7666_v60 = vld [vmem:[#allocation2 + $0x168] ss:$12 sps:$4 sm:$0xff]  }
 0x220   : > { %v9429_v20 = vpop.permute.xlu0 %678  ;;  %v9431_v62 = vpop.permute.xlu1 %676  ;;  %2888 = vmatprep.subr.bf16.mxu0 %v7658_v49  ;;  %v608_v49 = vadd.f32 %v576_v56, %v473_v61 }
 0x221   : > { %v705_v2 = vsel %vm698_vm1, %v9293_v3, %v9431_v62 }
 0x222   : > { %v737_v58 = vadd.f32 %v705_v2, %v608_v49  ;;  %v7672_v49 = vld [vmem:[#allocation2 + $0x138] ss:$12 sps:$4 sm:$0xff]  }
 0x223   : > { %2889 = vmatpush1.bf16.msra.mxu0 %v7660_v25 }
 0x224   : > { %v9433_v38 = vpop.permute.xlu0 %696  ;;  %v9435_v0 = vpop.permute.xlu1 %694  ;;  %2890 = vmatprep.subr.bf16.mxu0 %v7661_v31 }
 0x225   : > { %v713_v50 = vsel %vm698_vm1, %v9297_v40, %v9435_v0  ;;  %v7667_v40 = vld [vmem:[#allocation2 + $0x154] ss:$12 sps:$4 sm:$0xff]  }
 0x226   : > { %v745_v54 = vadd.f32 %v713_v50, %v616_v18  ;;  %v7670_v18 = vld [vmem:[#allocation2 + $0x13c] ss:$12 sps:$4 sm:$0xff]  }
 0x227   : > { %2891 = vmatpush1.bf16.msra.mxu0 %v7663_v11  ;;  %v7669_v11 = vld [vmem:[#allocation2 + $0x150] ss:$12 sps:$4 sm:$0xff]  }
 0x228   : > { %v9437_v45 = vpop.permute.xlu0 %807  ;;  %v9439_v9 = vpop.permute.xlu1 %805  ;;  %2892 = vmatprep.subr.bf16.mxu0 %v7664_v13 }
 0x229   : > { %v834_v16 = vsel %vm827_vm2, %v9299_v23, %v9439_v9 }
 0x22a   : > { %v866_v56 = vadd.f32 %v834_v16, %v737_v58  ;;  %v7673_v16 = vld [vmem:[#allocation2 + $0x124] ss:$12 sps:$4 sm:$0xff]   ;;  %v706_v58 = vsel %vm698_vm1, %v9431_v62, %v9429_v20 }
 0x22b   : > { %2893 = vmatpush2.bf16.msra.mxu0 %v7666_v60 }
 0x22c   : > { %v9441_v26 = vpop.permute.xlu0 %825  ;;  %v9443_v52 = vpop.permute.xlu1 %823  ;;  %2894 = vmatprep.subr.bf16.mxu0 %v7667_v40  ;;  %v577_v40 = vsel %vm569_vm0, %v9415_v47, %v9413_v15  ;;  %v585_v15 = vsel %vm569_vm0, %v9426_v36, %v9424_v7  ;;  %v482_v47 = vmul.f32 %v10460_v34, %v8350_v12 }
 0x22d   : > { %v842_v6 = vsel %vm827_vm2, %v9301_v51, %v9443_v52 }
 0x22e   : > { %v874_v21 = vadd.f32 %v842_v6, %v745_v54  ;;  %v617_v36 = vadd.f32 %v585_v15, %v482_v47 }
 0x22f   : > { %2895 = vmatpush2.bf16.msra.mxu0 %v7669_v11 }
 0x230   : > { %v9445_v55 = vpop.permute.xlu0 %936  ;;  %v9447_v24 = vpop.permute.xlu1 %934  ;;  %2896 = vmatprep.subr.bf16.mxu0 %v7670_v18 }
 0x231   : > { %v963_v51 = vsel %vm956_vm3, %v9303_v10, %v9447_v24  ;;  %v964_v7 = vsel %vm956_vm3, %v9447_v24, %v9445_v55 }
 0x232   : > { %v995_v2 = vadd.f32 %v963_v51, %v866_v56 }
 0x233   : > { %2897 = vmatpush2.bf16.msra.mxu0 %v7672_v49 }
 0x234   : > { %v9454_v32 = vpop.permute.xlu0 %954  ;;  %v9456_v63 = vpop.permute.xlu1 %952  ;;  %2898 = vmatprep.subr.bf16.mxu0 %v7673_v16 }
 0x235   : > { %v971_v3 = vsel %vm956_vm3, %v9305_v48, %v9456_v63  ;;  %v972_v55 = vsel %vm956_vm3, %v9456_v63, %v9454_v32 }
 0x236   : > { %v1003_v50 = vadd.f32 %v971_v3, %v874_v21  ;;  %v7675_v21 = vld [vmem:[#allocation2 + $0x120] ss:$12 sps:$4 sm:$0xff]  }
 0x237   : > { %2899 = vmatpush2.bf16.msra.mxu0 %v7675_v21 }
 0x238   : > { %v1066_v25 = vpop.permute.xlu0 %1065  ;;  %v1064_v31 = vpop.permute.xlu1 %1063 }
 0x239   : > { %v1092_v23 = vsel %vm1085_vm4, %v9307_v33, %v1064_v31  ;;  %v474_v33 = vmul.f32 %v10458_v5, %v8350_v12  ;;  %v1093_v12 = vsel %vm1085_vm4, %v1064_v31, %v1066_v25 }
 0x23a   : > { %v1124_v54 = vadd.f32 %v1092_v23, %v995_v2 }
 0x23b   : > { %v609_v51 = vadd.f32 %v577_v40, %v474_v33 }
 0x23c   : > { %v1084_v13 = vpop.permute.xlu0 %1083  ;;  %v1082_v61 = vpop.permute.xlu1 %1081 }
 0x23d   : > { %v1100_v48 = vsel %vm1085_vm4, %v9309_v30, %v1082_v61  ;;  %v738_v20 = vadd.f32 %v706_v58, %v609_v51  ;;  %v7678_v58 = vld [vmem:[#allocation2 + $0x108] ss:$12 sps:$4 sm:$0xff]  }
 0x23e   : > { %v1132_v6 = vadd.f32 %v1100_v48, %v1003_v50  ;;  %v714_v50 = vsel %vm698_vm1, %v9435_v0, %v9433_v38 }
 0x23f   : > { %v746_v23 = vadd.f32 %v714_v50, %v617_v36  ;;  %v7679_v50 = vld [vmem:[#allocation2 + $0xf4] ss:$12 sps:$4 sm:$0xff]   ;;  %v7683_v36 = vld [vmem:[#allocation2 + $0xf0] ss:$12 sps:$4 sm:$0xff]  }
 0x240   : > { %v1195_v10 = vpop.permute.xlu0 %1194  ;;  %v1193_v60 = vpop.permute.xlu1 %1192 }
 0x241   : > { %v1221_v3 = vsel %vm1214_vm5, %v9311_v19, %v1193_v60  ;;  %v835_v19 = vsel %vm827_vm2, %v9439_v9, %v9437_v45  ;;  %v1222_v24 = vsel %vm1214_vm5, %v1193_v60, %v1195_v10 }
 0x242   : > { %v1253_v30 = vadd.f32 %v1221_v3, %v1124_v54  ;;  %v867_v18 = vadd.f32 %v835_v19, %v738_v20 }
 0x244   : > { %v1213_v11 = vpop.permute.xlu0 %1212  ;;  %v1211_v56 = vpop.permute.xlu1 %1210  ;;  %v996_v38 = vadd.f32 %v964_v7, %v867_v18  ;;  %v7681_v7 = vld [vmem:[#allocation2 + $0x22c] ss:$12 sps:$4 sm:$0xff]  }
 0x245   : > { %v1229_v5 = vsel %vm1214_vm5, %v9325_v42, %v1211_v56  ;;  %v843_v42 = vsel %vm827_vm2, %v9443_v52, %v9441_v26  ;;  %v1101_v26 = vsel %vm1085_vm4, %v1082_v61, %v1084_v13  ;;  %v1230_v16 = vsel %vm1214_vm5, %v1211_v56, %v1213_v11  ;;  %2919 = vmatprep.subr.bf16.mxu1 %v7681_v7 }
 0x246   : > { %v1261_v62 = vadd.f32 %v1229_v5, %v1132_v6  ;;  %v875_v48 = vadd.f32 %v843_v42, %v746_v23  ;;  %v1125_v2 = vadd.f32 %v1093_v12, %v996_v38  ;;  %v7685_v38 = vld [vmem:[#allocation2 + $0xdc] ss:$12 sps:$4 sm:$0xff]  }
 0x248   : > { %v1324_v45 = vpop.permute.xlu0 %1323  ;;  %v1322_v9 = vpop.permute.xlu1 %1321  ;;  %v1004_v25 = vadd.f32 %v972_v55, %v875_v48  ;;  %v1254_v31 = vadd.f32 %v1222_v24, %v1125_v2  ;;  %v7689_v55 = vld [vmem:[#allocation2 + $0xd8] ss:$12 sps:$4 sm:$0xff]  }
 0x249   : > { %v1350_v34 = vsel %vm1343_vm6, %v9347_v14, %v1322_v9  ;;  %v1351_v52 = vsel %vm1343_vm6, %v1322_v9, %v1324_v45  ;;  %v7691_v2 = vld [vmem:[#allocation2 + $0xc4] ss:$12 sps:$4 sm:$0xff]  }
 0x24a   : > { %v1382_v0 = vadd.f32 %v1350_v34, %v1253_v30  ;;  %v1133_v40 = vadd.f32 %v1101_v26, %v1004_v25  ;;  %v1383_v32 = vadd.f32 %v1351_v52, %v1254_v31  ;;  %v7693_v26 = vld [vmem:[#allocation2 + $0x1fc] ss:$12 sps:$4 sm:$0xff]   ;;  %v10462_v25 = vmax.f32 %v9225_v29, 0.0 }
 0x24c   : > { %v1342_v6 = vpop.permute.xlu0 %1341  ;;  %v1340_v49 = vpop.permute.xlu1 %1339  ;;  %v1262_v61 = vadd.f32 %v1230_v16, %v1133_v40 }
 0x24d   : > { %v1358_v14 = vsel %vm1343_vm6, %v9365_v46, %v1340_v49  ;;  %v1359_v60 = vsel %vm1343_vm6, %v1340_v49, %v1342_v6  ;;  %v7676_v46 = vld [vmem:[#allocation2 + $0x10c] ss:$12 sps:$4 sm:$0xff]  }
 0x24e   : > { %v1390_v54 = vadd.f32 %v1358_v14, %v1261_v62  ;;  %v1391_v21 = vadd.f32 %v1359_v60, %v1262_v61  ;;  %2900 = vmatprep.subr.bf16.mxu0 %v7676_v46  ;;  %v7696_v61 = vld [vmem:[#allocation2 + $0x1f8] ss:$12 sps:$4 sm:$0xff]  }
 0x24f   : > { %2901 = vmatpush2.bf16.msra.mxu0 %v7678_v58  ;;  %v7697_v58 = vld [vmem:[#allocation2 + $0x1e4] ss:$12 sps:$4 sm:$0xff]  }
 0x250   : > { %v1453_v63 = vpop.permute.xlu0 %1452  ;;  %v1451_v10 = vpop.permute.xlu1 %1450  ;;  %2902 = vmatprep.subr.bf16.mxu0 %v7679_v50 }
 0x251   : > { %v1479_v3 = vsel %vm1472_vm7, %v9379_v41, %v1451_v10  ;;  %v1480_v13 = vsel %vm1472_vm7, %v1451_v10, %v1453_v63 }
 0x252   : > { %v1511_v33 = vadd.f32 %v1479_v3, %v1382_v0  ;;  %v1512_v30 = vadd.f32 %v1480_v13, %v1383_v32  ;;  %v7687_v0 = vld [vmem:[#allocation2 + $0x214] ss:$12 sps:$4 sm:$0xff]  }
 0x253   : > { %2903 = vmatpush2.bf16.msra.mxu0 %v7683_v36  ;;  %v7695_v13 = vld [vmem:[#allocation2 + $0xc0] ss:$12 sps:$4 sm:$0xff]  }
 0x254   : > { %v9531_v51 = vadd.f32 %v9080_v35, %v1511_v33  ;;  %v9534_v11 = vadd.f32 %v9080_v35, %v1512_v30  ;;  %v1471_v56 = vpop.permute.xlu0 %1470  ;;  %v1469_v15 = vpop.permute.xlu1 %1468  ;;  %v7684_v35 = vld [vmem:[#allocation2 + $0x228] ss:$12 sps:$4 sm:$0xff]   ;;  %2904 = vmatprep.subr.bf16.mxu0 %v7685_v38  ;;  %v7699_v36 = vld [vmem:[#allocation2 + $0x1e0] ss:$12 sps:$4 sm:$0xff]   ;;  %v7709_v38 = vld [vmem:[#allocation2 + $0x184] ss:$12 sps:$4 sm:$0xff]  }
 0x255   : > { %v1487_v41 = vsel %vm1472_vm7, %v9395_v8, %v1469_v15  ;;  %v1488_v19 = vsel %vm1472_vm7, %v1469_v15, %v1471_v56  ;;  %2920 = vmatpush1.bf16.msra.mxu1 %v7684_v35  ;;  %v10465_v15 = vmax.f32 %v9248_v43, 0.0  ;;  %v7700_v35 = vld [vmem:[#allocation2 + $0x1cc] ss:$12 sps:$4 sm:$0xff]  }
 0x256   : > { %v1555_v5 = vmax.f32 %v9531_v51, 0.0  ;;  %v1556_v47 = vmax.f32 %v9534_v11, 0.0  ;;  %v1519_v20 = vadd.f32 %v1487_v41, %v1390_v54  ;;  %v1520_v62 = vadd.f32 %v1488_v19, %v1391_v21  ;;  %2921 = vmatprep.subr.bf16.mxu1 %v7687_v0  ;;  %v7711_v0 = vld [vmem:[#allocation2 + $0x180] ss:$12 sps:$4 sm:$0xff]  }
 0x257   : > { %v10463_v54 = vmax.f32 %v9235_v1, 0.0  ;;  %2905 = vmatpush2.bf16.msra.mxu0 %v7689_v55  ;;  %v10464_v21 = vmax.f32 %v9228_v28, 0.0  ;;  %v10466_v19 = vmax.f32 %v9260_v53, 0.0  ;;  %v7702_v53 = vld [vmem:[#allocation2 + $0x1c8] ss:$12 sps:$4 sm:$0xff]  }
 0x258   : > { %v7550_v18 = vpack.i.bf16 %v1556_v47, %v1555_v5  ;;  %v9546_v8 = vadd.f32 %v9078_v17, %v1519_v20  ;;  %v9549_v45 = vadd.f32 %v9078_v17, %v1520_v62  ;;  %v9551_v9 = vpop.permute.xlu0 %7526  ;;  %v7522_v42 = vpop.permute.xlu1 %7521  ;;  %v7690_v17 = vld [vmem:[#allocation2 + $0x210] ss:$12 sps:$4 sm:$0xff]   ;;  %2906 = vmatprep.subr.bf16.mxu0 %v7691_v2  ;;  %v7712_v55 = vld [vmem:[#allocation2 + $0x2ec] ss:$12 sps:$4 sm:$0xff]   ;;  %v7715_v2 = vld [vmem:[#allocation2 + $0x2d4] ss:$12 sps:$4 sm:$0xff]  }
 0x259   : > { %v7528_v12 = vunpack.i.l.bf16 %v9551_v9  ;;  %v7524_v34 = vunpack.i.h.bf16 %v7522_v42  ;;  %v7523_v23 = vunpack.i.l.bf16 %v7522_v42  ;;  %v7529_v14 = vunpack.i.h.bf16 %v9551_v9  ;;  %2922 = vmatpush1.bf16.msra.mxu1 %v7690_v17  ;;  %v10467_v62 = vld [vmem:[#allocation23_spill] sm:$0xff] }
 0x25a   : > { %v1563_v24 = vmax.f32 %v9546_v8, 0.0  ;;  %v1564_v48 = vmax.f32 %v9549_v45, 0.0  ;;  %7551 = vrot.lane.b32.xlu1 %v7550_v18, %s8157_s25  ;;  %2923 = vmatprep.subr.bf16.mxu1 %v7693_v26  ;;  %v10468_v50 = vmax.f32 %v10467_v62, 0.0  ;;  %v7703_v18 = vld [vmem:[#allocation2 + $0x1b4] ss:$12 sps:$4 sm:$0xff]  }
 0x25b   : > { %v1615_v6 = vsel %vm569_vm0, %v7524_v34, %v7528_v12  ;;  %v1614_v49 = vsel %vm569_vm0, %v7523_v23, %v7524_v34  ;;  %2907 = vmatpush2.bf16.msra.mxu0 %v7695_v13  ;;  %v7705_v42 = vld [vmem:[#allocation2 + $0x1b0] ss:$12 sps:$4 sm:$0xff]   ;;  %v7714_v17 = vld [vmem:[#allocation2 + $0x2e8] ss:$12 sps:$4 sm:$0xff]   ;;  %v7720_v26 = vld [vmem:[#allocation2 + $0x2b8] ss:$12 sps:$4 sm:$0xff]  }
 0x25c   : > { %v7555_v52 = vpack.i.bf16 %v1564_v48, %v1563_v24  ;;  %v9568_v31 = vmax.f32 %v10462_v25, %v1615_v6  ;;  %v9572_v16 = vmax.f32 %v10463_v54, %v1614_v49  ;;  %v9574_v40 = vpop.permute.xlu1 %7531  ;;  %v7537_v32 = vpop.permute.xlu0 %7536  ;;  %v7706_v34 = vld [vmem:[#allocation2 + $0x19c] ss:$12 sps:$4 sm:$0xff]   ;;  %v7724_v25 = vld [vmem:[#allocation2 + $0x28c] ss:$12 sps:$4 sm:$0xff]  }
 0x25d   : > { %v7534_v63 = vunpack.i.h.bf16 %v9574_v40  ;;  %v7533_v10 = vunpack.i.l.bf16 %v9574_v40  ;;  %v7539_v60 = vunpack.i.h.bf16 %v7537_v32  ;;  %v7538_v3 = vunpack.i.l.bf16 %v7537_v32  ;;  %2924 = vmatpush1.bf16.msra.mxu1 %v7696_v61  ;;  %v7717_v6 = vld [vmem:[#allocation2 + $0x2d0] ss:$12 sps:$4 sm:$0xff]   ;;  %v7726_v54 = vld [vmem:[#allocation2 + $0x288] ss:$12 sps:$4 sm:$0xff]   ;;  %v7762_v40 = vld [vmem:[#allocation2 + $0x52c] ss:$12 sps:$4 sm:$0xff]  }
 0x25e   : > { %7556 = vrot.lane.b32.xlu0 %v7555_v52, %s8157_s25  ;;  %v7560_v29 = vpack.i.bf16 %v9568_v31, %v9572_v16  ;;  %2925 = vmatprep.subr.bf16.mxu1 %v7697_v58  ;;  %v7718_v49 = vld [vmem:[#allocation2 + $0x2bc] ss:$12 sps:$4 sm:$0xff]   ;;  %v7721_v52 = vld [vmem:[#allocation2 + $0x2a4] ss:$12 sps:$4 sm:$0xff]   ;;  %v7727_v32 = vld [vmem:[#allocation2 + $0x274] ss:$12 sps:$4 sm:$0xff]  }
 0x25f   : > { %v1621_v1 = vsel %vm569_vm0, %v7529_v14, %v7533_v10  ;;  %v1622_v33 = vsel %vm569_vm0, %v7533_v10, %v7534_v63  ;;  %v1620_v30 = vsel %vm569_vm0, %v7539_v60, %v7529_v14  ;;  %v1613_v46 = vsel %vm569_vm0, %v7538_v3, %v7523_v23  ;;  %v7708_v23 = vld [vmem:[#allocation2 + $0x198] ss:$12 sps:$4 sm:$0xff]   ;;  %v7723_v14 = vld [vmem:[#allocation2 + $0x2a0] ss:$12 sps:$4 sm:$0xff]   ;;  %v7729_v10 = vld [vmem:[#allocation2 + $0x270] ss:$12 sps:$4 sm:$0xff]  }
 0x260   : > { %v9589_v56 = vmax.f32 %v10464_v21, %v1621_v1  ;;  %v9593_v41 = vmax.f32 %v10465_v15, %v1622_v33  ;;  %v9597_v20 = vmax.f32 %v10466_v19, %v1620_v30  ;;  %v9601_v7 = vmax.f32 %v10468_v50, %v1613_v46  ;;  %7561 = vrot.lane.b32.xlu1 %v7560_v29, %s8159_s14  ;;  %v7730_v61 = vld [vmem:[#allocation2 + $0x25c] ss:$12 sps:$4 sm:$0xff]   ;;  %v7732_v29 = vld [vmem:[#allocation2 + $0x258] ss:$12 sps:$4 sm:$0xff]  }
 0x261   : > { %2926 = vmatpush1.bf16.msra.mxu1 %v7699_v36  ;;  %v7733_v1 = vld [vmem:[#allocation2 + $0x244] ss:$12 sps:$4 sm:$0xff]   ;;  %v7735_v36 = vld [vmem:[#allocation2 + $0x240] ss:$12 sps:$4 sm:$0xff]  }
 0x262   : > { %v7565_v28 = vpack.i.bf16 %v9593_v41, %v9589_v56  ;;  %v7570_v43 = vpack.i.bf16 %v9597_v20, %v9601_v7  ;;  %2927 = vmatprep.subr.bf16.mxu1 %v7700_v35  ;;  %v10469_v46 = vld [vmem:[#allocation22_spill] sm:$0xff]  ;;  %v10471_v35 = vld [vmem:[#allocation24_spill] sm:$0xff] }
 0x263   : > { %v10470_v58 = vmax.f32 %v10469_v46, 0.0  ;;  %v10472_v4 = vmax.f32 %v10471_v35, 0.0  ;;  %v7739_v46 = vld [vmem:[#allocation2 + $0x390] ss:$12 sps:$4 sm:$0xff]   ;;  %v7763_v35 = vld [vmem:[#allocation2 + $0x468] ss:$12 sps:$4 sm:$0xff]  }
 0x264   : > { %7566 = vrot.lane.b32.xlu0 %v7565_v28, %s8159_s14  ;;  %7571 = vrot.lane.b32.xlu1 %v7570_v43, %s8159_s14 }
 0x265   : > { %2928 = vmatpush1.bf16.msra.mxu1 %v7702_v53 }
 0x266   : > { %2929 = vmatprep.subr.bf16.mxu1 %v7703_v18 }
 0x269   : > { %2930 = vmatpush1.bf16.msra.mxu1 %v7705_v42 }
 0x26a   : > { %2931 = vmatprep.subr.bf16.mxu1 %v7706_v34 }
 0x26d   : > { %2932 = vmatpush1.bf16.msra.mxu1 %v7708_v23 }
 0x26e   : > { %2933 = vmatprep.subr.bf16.mxu1 %v7709_v38 }
 0x271   : > { %2934 = vmatpush1.bf16.msra.mxu1 %v7711_v0 }
 0x272   : > { %2935 = vmatprep.subr.bf16.mxu1 %v7712_v55 }
 0x275   : > { %2936 = vmatpush2.bf16.msra.mxu1 %v7714_v17 }
 0x276   : > { %2937 = vmatprep.subr.bf16.mxu1 %v7715_v2 }
 0x279   : > { %2938 = vmatpush2.bf16.msra.mxu1 %v7717_v6 }
 0x27a   : > { %2939 = vmatprep.subr.bf16.mxu1 %v7718_v49 }
 0x27d   : > { %2940 = vmatpush2.bf16.msra.mxu1 %v7720_v26 }
 0x27e   : > { %2941 = vmatprep.subr.bf16.mxu1 %v7721_v52 }
 0x281   : > { %2942 = vmatpush2.bf16.msra.mxu1 %v7723_v14 }
 0x282   : > { %2943 = vmatprep.subr.bf16.mxu1 %v7724_v25 }
 0x285   : > { %2944 = vmatpush2.bf16.msra.mxu1 %v7726_v54 }
 0x286   : > { %2945 = vmatprep.subr.bf16.mxu1 %v7727_v32 }
 0x289   : > { %2946 = vmatpush2.bf16.msra.mxu1 %v7729_v10 }
 0x28a   : > { %2947 = vmatprep.subr.bf16.mxu1 %v7730_v61 }
 0x28c   : > { %v7542_v60 = vpop.permute.xlu1 %7541 }
 0x28d   : > { %v7544_v3 = vunpack.i.h.bf16 %v7542_v60  ;;  %v7543_v13 = vunpack.i.l.bf16 %v7542_v60  ;;  %2948 = vmatpush2.bf16.msra.mxu1 %v7732_v29 }
 0x28e   : > { %2949 = vmatprep.subr.bf16.mxu1 %v7733_v1 }
 0x28f   : > { %v1616_v33 = vsel %vm569_vm0, %v7528_v12, %v7543_v13  ;;  %v1617_v30 = vsel %vm569_vm0, %v7543_v13, %v7544_v3  ;;  %v7738_v12 = vld [vmem:[#allocation2 + $0x3ac] ss:$12 sps:$4 sm:$0xff]  }
 0x290   : > { %v9616_v21 = vmax.f32 %v10470_v58, %v1616_v33  ;;  %v9620_v15 = vmax.f32 %v1553_v44, %v1617_v30  ;;  %v7547_v19 = vpop.permute.xlu0 %7546  ;;  %2962 = vmatprep.subr.bf16.mxu0 %v7738_v12  ;;  %v7736_v33 = vld [vmem:[#allocation2 + $0x3a8] ss:$12 sps:$4 sm:$0xff]   ;;  %v7750_v58 = vld [vmem:[#allocation2 + $0x34c] ss:$12 sps:$4 sm:$0xff]   ;;  %v7759_v12 = vld [vmem:[#allocation2 + $0x304] ss:$12 sps:$4 sm:$0xff]  }
 0x291   : > { %v7549_v62 = vunpack.i.h.bf16 %v7547_v19  ;;  %v7548_v50 = vunpack.i.l.bf16 %v7547_v19  ;;  %2950 = vmatpush2.bf16.msra.mxu1 %v7735_v36  ;;  %v7741_v30 = vld [vmem:[#allocation2 + $0x394] ss:$12 sps:$4 sm:$0xff]   ;;  %v7756_v36 = vld [vmem:[#allocation2 + $0x31c] ss:$12 sps:$4 sm:$0xff]  }
 0x292   : > { %v7575_v9 = vpack.i.bf16 %v9620_v15, %v9616_v21  ;;  %3005 = vmatprep.subr.bf16.mxu1 %v7762_v40  ;;  %v7748_v19 = vld [vmem:[#allocation2 + $0x348] ss:$12 sps:$4 sm:$0xff]  }
 0x293   : > { %v1623_v28 = vsel %vm569_vm0, %v7534_v63, %v7548_v50  ;;  %v1624_v43 = vsel %vm569_vm0, %v7548_v50, %v7549_v62  ;;  %v7751_v50 = vld [vmem:[#allocation2 + $0x330] ss:$12 sps:$4 sm:$0xff]  }
 0x294   : > { %v9630_v44 = vmax.f32 %v10472_v4, %v1623_v28  ;;  %v9634_v53 = vmax.f32 %v1561_v37, %v1624_v43  ;;  %7576 = vrot.lane.b32.xlu0 %v7575_v9, %s8159_s14  ;;  %v7754_v9 = vld [vmem:[#allocation2 + $0x318] ss:$12 sps:$4 sm:$0xff]   ;;  %v7757_v28 = vld [vmem:[#allocation2 + $0x300] ss:$12 sps:$4 sm:$0xff]   ;;  %v7777_v40 = vld [vmem:[#allocation2 + $0x43c] ss:$12 sps:$4 sm:$0xff]  }
 0x295   : > { %v7765_v43 = vld [vmem:[#allocation2 + $0x46c] ss:$12 sps:$4 sm:$0xff]   ;;  %v7771_v4 = vld [vmem:[#allocation2 + $0x454] ss:$12 sps:$4 sm:$0xff]  }
 0x296   : > { %v7580_v18 = vpack.i.bf16 %v9634_v53, %v9630_v44 }
 0x298   : > { %7581 = vrot.lane.b32.xlu1 %v7580_v18, %s8159_s14  ;;  %v7769_v18 = vld [vmem:[#allocation2 + $0x450] ss:$12 sps:$4 sm:$0xff]  }
 0x2cc   : > { %v7552_v63 = vpop.permute.xlu1 %7551 }
 0x2cd   : > { %v7554_v42 = vunpack.i.h.bf16 %v7552_v63  ;;  %v7553_v34 = vunpack.i.l.bf16 %v7552_v63  ;;  %v7775_v63 = vld [vmem:[#allocation2 + $0x438] ss:$12 sps:$4 sm:$0xff]  }
 0x2cf   : > { %v1657_v23 = vmax.f32 %v1556_v47, %v7554_v42  ;;  %v1619_v22 = vsel %vm569_vm0, %v7553_v34, %v7554_v42  ;;  %v1618_v0 = vsel %vm569_vm0, %v7544_v3, %v7553_v34  ;;  %v7783_v42 = vld [vmem:[#allocation2 + $0x424] ss:$12 sps:$4 sm:$0xff]  }
 0x2d0   : > { %v9645_v37 = vmax.f32 %v1555_v5, %v1619_v22  ;;  %v7557_v38 = vpop.permute.xlu0 %7556  ;;  %v9658_v5 = vmax.f32 %v1554_v59, %v1618_v0  ;;  %v7789_v0 = vld [vmem:[#allocation2 + $0x40c] ss:$12 sps:$4 sm:$0xff]  }
 0x2d1   : > { %v7559_v55 = vunpack.i.h.bf16 %v7557_v38  ;;  %v7558_v17 = vunpack.i.l.bf16 %v7557_v38  ;;  %v7781_v38 = vld [vmem:[#allocation2 + $0x420] ss:$12 sps:$4 sm:$0xff]  }
 0x2d2   : > { %v7585_v2 = vpack.i.bf16 %v1657_v23, %v9645_v37  ;;  %v9649_v6 = vpop.permute.xlu1 %7561 }
 0x2d3   : > { %v1658_v49 = vmax.f32 %v1564_v48, %v7559_v55  ;;  %v1626_v11 = vsel %vm569_vm0, %v7558_v17, %v7559_v55  ;;  %v1625_v47 = vsel %vm569_vm0, %v7549_v62, %v7558_v17  ;;  %v7564_v51 = vunpack.i.h.bf16 %v9649_v6  ;;  %v7753_v62 = vld [vmem:[#allocation2 + $0x334] ss:$12 sps:$4 sm:$0xff]  }
 0x2d4   : > { %v9662_v26 = vmax.f32 %v1563_v24, %v1626_v11  ;;  %v9666_v52 = vmax.f32 %v1562_v39, %v1625_v47  ;;  %v7563_v45 = vunpack.i.l.bf16 %v9649_v6  ;;  %7586 = vrot.lane.b32.xlu0 %v7585_v2, %s8159_s14  ;;  %v7787_v47 = vld [vmem:[#allocation2 + $0x408] ss:$12 sps:$4 sm:$0xff]  }
 0x2d6   : > { %v7590_v48 = vpack.i.bf16 %v1658_v49, %v9662_v26  ;;  %v9671_v14 = vpop.permute.xlu0 %7566  ;;  %v7572_v25 = vpop.permute.xlu1 %7571  ;;  %v7595_v27 = vpack.i.bf16 %v9666_v52, %v9658_v5  ;;  %v1708_v59 = vsel %vm827_vm2, %v7563_v45, %v7564_v51 }
 0x2d7   : > { %v7569_v57 = vunpack.i.h.bf16 %v9671_v14  ;;  %v7568_v39 = vunpack.i.l.bf16 %v9671_v14  ;;  %v7574_v8 = vunpack.i.h.bf16 %v7572_v25  ;;  %v7573_v24 = vunpack.i.l.bf16 %v7572_v25  ;;  %v7760_v14 = vld [vmem:[#allocation2 + $0x528] ss:$12 sps:$4 sm:$0xff]  }
 0x2d8   : > { %7596 = vrot.lane.b32.xlu0 %v7595_v27, %s8159_s14  ;;  %7591 = vrot.lane.b32.xlu1 %v7590_v48, %s8159_s14  ;;  %v1736_v60 = vmax.f32 %v9572_v16, %v1708_v59  ;;  %v7744_v16 = vld [vmem:[#allocation2 + $0x37c] ss:$12 sps:$4 sm:$0xff]   ;;  %s8168_s14 = smov 110  }
 0x2d9   : > { %v1714_v54 = vsel %vm827_vm2, %v7574_v8, %v7568_v39  ;;  %v1707_v32 = vsel %vm827_vm2, %v7573_v24, %v7563_v45  ;;  %v1715_v10 = vsel %vm827_vm2, %v7568_v39, %v7569_v57  ;;  %v7768_v24 = vld [vmem:[#allocation2 + $0x514] ss:$12 sps:$4 sm:$0xff]  }
 0x2da   : > { %v1743_v3 = vmax.f32 %v9589_v56, %v1715_v10  ;;  %v1735_v13 = vmax.f32 %v9601_v7, %v1707_v32  ;;  %v1742_v61 = vmax.f32 %v9597_v20, %v1714_v54  ;;  %v7742_v56 = vld [vmem:[#allocation2 + $0x378] ss:$12 sps:$4 sm:$0xff]   ;;  %v7745_v20 = vld [vmem:[#allocation2 + $0x360] ss:$12 sps:$4 sm:$0xff]   ;;  %v7801_v54 = vld [vmem:[#allocation2 + $0x3dc] ss:$12 sps:$4 sm:$0xff]  }
 0x2db   : > { %v7747_v7 = vld [vmem:[#allocation2 + $0x364] ss:$12 sps:$4 sm:$0xff]   ;;  %v10473_v32 = vmov 0  }
 0x2dc   : > { %v9691_v29 = vpack.c.bf16 %v1743_v3, %v1736_v60  ;;  %v9693_v1 = vpack.c.bf16 %v1742_v61, %v1735_v13  ;;  %v7772_v10 = vld [vmem:[#allocation2 + $0x4f8] ss:$12 sps:$4 sm:$0xff]   ;;  %v7805_v60 = vld [vmem:[#allocation2 + $0x3c0] ss:$12 sps:$4 sm:$0xff]   ;;  %v7810_v13 = vld [vmem:[#allocation2 + $0x2f0] ss:$12 sps:$4 sm:$0xff]  }
 0x2dd   : > { %v7780_v3 = vld [vmem:[#allocation2 + $0x4e4] ss:$12 sps:$4 sm:$0xff]   ;;  %v7778_v61 = vld [vmem:[#allocation2 + $0x4e0] ss:$12 sps:$4 sm:$0xff]  }
 0x2de   : > { %2908 = vmatprep.mubr.bf16.mxu0 %v9691_v29 }
 0x2df   : > { %2909 = vmatmul.mubr.bf16.vlgmr.msra.gmra.mxu0 %v9693_v1 }
 0x2e0   : > { %2963 = vmatpush1.bf16.msra.mxu0 %v7736_v33  ;;  %v7786_v33 = vld [vmem:[#allocation2 + $0x4cc] ss:$12 sps:$4 sm:$0xff]  }
 0x2e1   : > { %2964 = vmatprep.subr.bf16.mxu0 %v7741_v30  ;;  %v7784_v30 = vld [vmem:[#allocation2 + $0x4c8] ss:$12 sps:$4 sm:$0xff]  }
 0x2e4   : > { %2965 = vmatpush1.bf16.msra.mxu0 %v7739_v46  ;;  %v7792_v46 = vld [vmem:[#allocation2 + $0x4b4] ss:$12 sps:$4 sm:$0xff]  }
 0x2e5   : > { %2966 = vmatprep.subr.bf16.mxu0 %v7744_v16  ;;  %v7790_v16 = vld [vmem:[#allocation2 + $0x4b0] ss:$12 sps:$4 sm:$0xff]  }
 0x2e8   : > { %2967 = vmatpush1.bf16.msra.mxu0 %v7742_v56  ;;  %v7798_v56 = vld [vmem:[#allocation2 + $0x49c] ss:$12 sps:$4 sm:$0xff]  }
 0x2e9   : > { %2968 = vmatprep.subr.bf16.mxu0 %v7747_v7  ;;  %v7796_v7 = vld [vmem:[#allocation2 + $0x498] ss:$12 sps:$4 sm:$0xff]  }
 0x2ec   : > { %2969 = vmatpush1.bf16.msra.mxu0 %v7745_v20  ;;  %v7804_v20 = vld [vmem:[#allocation2 + $0x484] ss:$12 sps:$4 sm:$0xff]  }
 0x2ed   : > { %2970 = vmatprep.subr.bf16.mxu0 %v7750_v58  ;;  %v7802_v58 = vld [vmem:[#allocation2 + $0x480] ss:$12 sps:$4 sm:$0xff]  }
 0x2f0   : > { %2971 = vmatpush1.bf16.msra.mxu0 %v7748_v19  ;;  %v7808_v19 = vld [vmem:[#allocation2 + $0x170] ss:$12 sps:$4 sm:$0xff]  }
 0x2f1   : > { %2972 = vmatprep.subr.bf16.mxu0 %v7753_v62 }
 0x2f4   : > { %2973 = vmatpush1.bf16.msra.mxu0 %v7751_v50 }
 0x2f5   : > { %2974 = vmatprep.subr.bf16.mxu0 %v7756_v36 }
 0x2f8   : > { %2975 = vmatpush1.bf16.msra.mxu0 %v7754_v9 }
 0x2f9   : > { %2976 = vmatprep.subr.bf16.mxu0 %v7759_v12 }
 0x2fc   : > { %2977 = vmatpush1.bf16.msra.mxu0 %v7757_v28 }
 0x2fd   : > { %2978 = vmatprep.subr.bf16.mxu0 %v7765_v43 }
 0x300   : > { %2979 = vmatpush2.bf16.msra.mxu0 %v7763_v35 }
 0x301   : > { %2980 = vmatprep.subr.bf16.mxu0 %v7771_v4 }
 0x304   : > { %2981 = vmatpush2.bf16.msra.mxu0 %v7769_v18 }
 0x305   : > { %2982 = vmatprep.subr.bf16.mxu0 %v7777_v40 }
 0x306   : > { %v9697_v34 = vpop.permute.xlu0 %7576 }
 0x307   : > { %v7579_v23 = vunpack.i.h.bf16 %v9697_v34  ;;  %v7578_v22 = vunpack.i.l.bf16 %v9697_v34 }
 0x308   : > { %2983 = vmatpush2.bf16.msra.mxu0 %v7775_v63 }
 0x309   : > { %2984 = vmatprep.subr.bf16.mxu0 %v7783_v42  ;;  %v1709_v17 = vsel %vm827_vm2, %v7564_v51, %v7578_v22  ;;  %v1710_v11 = vsel %vm827_vm2, %v7578_v22, %v7579_v23  ;;  %v7795_v51 = vld [vmem:[#allocation2 + $0x3f4] ss:$12 sps:$4 sm:$0xff]  }
 0x30a   : > { %v9701_v55 = vpop.permute.xlu1 %7581  ;;  %v1738_v48 = vmax.f32 %v9616_v21, %v1710_v11  ;;  %v1737_v27 = vmax.f32 %v9568_v31, %v1709_v17  ;;  %v7766_v21 = vld [vmem:[#allocation2 + $0x510] ss:$12 sps:$4 sm:$0xff]   ;;  %v7799_v31 = vld [vmem:[#allocation2 + $0x3d8] ss:$12 sps:$4 sm:$0xff]  }
 0x30b   : > { %v7584_v2 = vunpack.i.h.bf16 %v9701_v55  ;;  %v7583_v49 = vunpack.i.l.bf16 %v9701_v55 }
 0x30c   : > { %2985 = vmatpush2.bf16.msra.mxu0 %v7781_v38 }
 0x30d   : > { %v1716_v45 = vsel %vm827_vm2, %v7569_v57, %v7583_v49  ;;  %v1717_v6 = vsel %vm827_vm2, %v7583_v49, %v7584_v2  ;;  %2986 = vmatprep.subr.bf16.mxu0 %v7789_v0  ;;  %v7793_v57 = vld [vmem:[#allocation2 + $0x3f0] ss:$12 sps:$4 sm:$0xff]  }
 0x30e   : > { %v1745_v25 = vmax.f32 %v9630_v44, %v1717_v6  ;;  %v1744_v59 = vmax.f32 %v9593_v41, %v1716_v45  ;;  %v7774_v41 = vld [vmem:[#allocation2 + $0x4fc] ss:$12 sps:$4 sm:$0xff]   ;;  %v7807_v44 = vld [vmem:[#allocation2 + $0x3c4] ss:$12 sps:$4 sm:$0xff]  }
 0x30f   : > { %v7812_v6 = vld [vmem:[#allocation2 + $0x158] ss:$12 sps:$4 sm:$0xff]  }
 0x310   : > { %v9721_v39 = vpack.c.bf16 %v1745_v25, %v1738_v48  ;;  %v9723_v8 = vpack.c.bf16 %v1744_v59, %v1737_v27  ;;  %2987 = vmatpush2.bf16.msra.mxu0 %v7787_v47  ;;  %v7809_v47 = vld [vmem:[#allocation2 + $0xb0] ss:$12 sps:$4 sm:$0xff]   ;;  %v7819_v48 = vld [vmem:[#allocation2 + $0x200] ss:$12 sps:$4 sm:$0xff]   ;;  %v7820_v25 = vld [vmem:[#allocation2 + $0x128] ss:$12 sps:$4 sm:$0xff]  }
 0x311   : > { %2988 = vmatprep.subr.bf16.mxu0 %v7795_v51  ;;  %v7817_v51 = vld [vmem:[#allocation2 + $0x80] ss:$12 sps:$4 sm:$0xff]   ;;  %v7822_v27 = vld [vmem:[#allocation2 + $0x2a8] ss:$12 sps:$4 sm:$0xff]  }
 0x312   : > { %2951 = vmatprep.mubr.bf16.mxu1 %v9721_v39  ;;  %v7821_v59 = vld [vmem:[#allocation2 + $0x68] ss:$12 sps:$4 sm:$0xff]  }
 0x313   : > { %2952 = vmatmul.mubr.bf16.vlgmr.msra.gmra.mxu1 %v9723_v8 }
 0x314   : > { %3006 = vmatpush1.bf16.msra.mxu1 %v7760_v14  ;;  %2989 = vmatpush2.bf16.msra.mxu0 %v7793_v57  ;;  %v7824_v14 = vld [vmem:[#allocation2 + $0x110] ss:$12 sps:$4 sm:$0xff]  }
 0x315   : > { %3007 = vmatprep.subr.bf16.mxu1 %v7768_v24  ;;  %2990 = vmatprep.subr.bf16.mxu0 %v7801_v54  ;;  %v7826_v57 = vld [vmem:[#allocation2 + $0x290] ss:$12 sps:$4 sm:$0xff]   ;;  %v7828_v54 = vld [vmem:[#allocation2 + $0xf8] ss:$12 sps:$4 sm:$0xff]  }
 0x316   : > { %3037 = vmatprep.mubr.bf16.mxu1 %v10473_v32  ;;  %v7827_v24 = vld [vmem:[#allocation2 + $0x1d0] ss:$12 sps:$4 sm:$0xff]  }
 0x318   : > { %3008 = vmatpush1.bf16.msra.mxu1 %v7766_v21  ;;  %2991 = vmatpush2.bf16.msra.mxu0 %v7799_v31  ;;  %v7830_v21 = vld [vmem:[#allocation2 + $0x278] ss:$12 sps:$4 sm:$0xff]  }
 0x319   : > { %3009 = vmatprep.subr.bf16.mxu1 %v7774_v41  ;;  %2992 = vmatprep.subr.bf16.mxu0 %v7807_v44  ;;  %v7829_v31 = vld [vmem:[#allocation2 + $0x38] ss:$12 sps:$4 sm:$0xff]   ;;  %v7832_v44 = vld [vmem:[#allocation2 + $0xe0] ss:$12 sps:$4 sm:$0xff]  }
 0x31a   : > { %v7831_v41 = vld [vmem:[#allocation2 + $0x1b8] ss:$12 sps:$4 sm:$0xff]  }
 0x31c   : > { %3010 = vmatpush1.bf16.msra.mxu1 %v7772_v10  ;;  %2993 = vmatpush2.bf16.msra.mxu0 %v7805_v60  ;;  %v7834_v10 = vld [vmem:[#allocation2 + $0x260] ss:$12 sps:$4 sm:$0xff]  }
 0x31d   : > { %3011 = vmatprep.subr.bf16.mxu1 %v7780_v3  ;;  %6771 = vmatprep.subr.bf16.mxu0 %v7810_v13  ;;  %v7833_v60 = vld [vmem:[#allocation2 + $0x20] ss:$12 sps:$4 sm:$0xff]   ;;  %v7836_v13 = vld [vmem:[#allocation2 + $0xc8] ss:$12 sps:$4 sm:$0xff]  }
 0x31e   : > { %v7835_v3 = vld [vmem:[#allocation2 + $0x1a0] ss:$12 sps:$4 sm:$0xff]  }
 0x320   : > { %3012 = vmatpush1.bf16.msra.mxu1 %v7778_v61  ;;  %v7838_v61 = vld [vmem:[#allocation2 + $0x248] ss:$12 sps:$4 sm:$0xff]  }
 0x321   : > { %3013 = vmatprep.subr.bf16.mxu1 %v7786_v33  ;;  %v7837_v33 = vld [vmem:[#allocation2 + $0x8] ss:$12 sps:$4 sm:$0xff]  }
 0x324   : > { %3014 = vmatpush1.bf16.msra.mxu1 %v7784_v30  ;;  %v7839_v30 = vld [vmem:[#allocation2 + $0x188] ss:$12 sps:$4 sm:$0xff]  }
 0x325   : > { %3015 = vmatprep.subr.bf16.mxu1 %v7792_v46  ;;  %v7840_v46 = vld [vmem:[#allocation2 + $0x470] ss:$12 sps:$4 sm:$0xff]  }
 0x328   : > { %3016 = vmatpush1.bf16.msra.mxu1 %v7790_v16  ;;  %v7841_v16 = vld [vmem:[#allocation2 + $0x3b0] ss:$12 sps:$4 sm:$0xff]  }
 0x329   : > { %3017 = vmatprep.subr.bf16.mxu1 %v7798_v56  ;;  %v7842_v56 = vld [vmem:[#allocation2 + $0x530] ss:$12 sps:$4 sm:$0xff]  }
 0x32c   : > { %3018 = vmatpush1.bf16.msra.mxu1 %v7796_v7  ;;  %v8165_v7 = vmov 0.0  }
 0x32d   : > { %3019 = vmatprep.subr.bf16.mxu1 %v7804_v20  ;;  %v7843_v20 = vld [vmem:[#allocation2 + $0x458] ss:$12 sps:$4 sm:$0xff]  }
 0x330   : > { %3020 = vmatpush1.bf16.msra.mxu1 %v7802_v58  ;;  %v7844_v58 = vld [vmem:[#allocation2 + $0x398] ss:$12 sps:$4 sm:$0xff]  }
 0x331   : > { %6749 = vmatprep.subr.bf16.mxu1 %v7808_v19  ;;  %v7845_v19 = vld [vmem:[#allocation2 + $0x518] ss:$12 sps:$4 sm:$0xff]  }
 0x346   : > { %v7587_v62 = vpop.permute.xlu0 %7586 }
 0x347   : > { %v7589_v50 = vunpack.i.h.bf16 %v7587_v62  ;;  %v7588_v36 = vunpack.i.l.bf16 %v7587_v62  ;;  %v7846_v62 = vld [vmem:[#allocation2 + $0x440] ss:$12 sps:$4 sm:$0xff]  }
 0x349   : > { %v1713_v18 = vsel %vm827_vm2, %v7588_v36, %v7589_v50  ;;  %v7847_v50 = vld [vmem:[#allocation2 + $0x380] ss:$12 sps:$4 sm:$0xff]  }
 0x34a   : > { %v7597_v9 = vpop.permute.xlu0 %7596  ;;  %v7592_v12 = vpop.permute.xlu1 %7591  ;;  %v1741_v34 = vmax.f32 %v9645_v37, %v1713_v18  ;;  %v7813_v37 = vld [vmem:[#allocation2 + $0x98] ss:$12 sps:$4 sm:$0xff]  }
 0x34b   : > { %v7599_v28 = vunpack.i.h.bf16 %v7597_v9  ;;  %v7598_v43 = vunpack.i.l.bf16 %v7597_v9  ;;  %v7594_v35 = vunpack.i.h.bf16 %v7592_v12  ;;  %v7593_v4 = vunpack.i.l.bf16 %v7592_v12  ;;  %v7851_v9 = vld [vmem:[#allocation2 + $0x4e8] ss:$12 sps:$4 sm:$0xff]   ;;  %v7852_v12 = vld [vmem:[#allocation2 + $0x410] ss:$12 sps:$4 sm:$0xff]   ;;  %v7857_v18 = vld [vmem:[#allocation2 + $0x4b8] ss:$12 sps:$4 sm:$0xff]  }
 0x34d   : > { %v1711_v40 = vsel %vm827_vm2, %v7579_v23, %v7598_v43  ;;  %v1712_v63 = vsel %vm827_vm2, %v7598_v43, %v7588_v36  ;;  %v1718_v42 = vsel %vm827_vm2, %v7584_v2, %v7599_v28  ;;  %v1719_v22 = vsel %vm827_vm2, %v7599_v28, %v7593_v4  ;;  %v7850_v36 = vld [vmem:[#allocation2 + $0x368] ss:$12 sps:$4 sm:$0xff]   ;;  %v7853_v28 = vld [vmem:[#allocation2 + $0x350] ss:$12 sps:$4 sm:$0xff]  }
 0x34e   : > { %v1739_v38 = vmax.f32 %v9620_v15, %v1711_v40  ;;  %v1746_v0 = vmax.f32 %v9634_v53, %v1718_v42  ;;  %v1720_v17 = vsel %vm827_vm2, %v7593_v4, %v7594_v35  ;;  %v1740_v49 = vmax.f32 %v9658_v5, %v1712_v63  ;;  %v7811_v15 = vld [vmem:[#allocation2 + $0x230] ss:$12 sps:$4 sm:$0xff]   ;;  %v7814_v53 = vld [vmem:[#allocation2 + $0x2d8] ss:$12 sps:$4 sm:$0xff]   ;;  %v7858_v40 = vld [vmem:[#allocation2 + $0x3e0] ss:$12 sps:$4 sm:$0xff]  }
 0x34f   : > { %v1748_v23 = vmax.f32 %v9662_v26, %v1720_v17  ;;  %v1747_v11 = vmax.f32 %v9666_v52, %v1719_v22  ;;  %v7815_v5 = vld [vmem:[#allocation2 + $0x218] ss:$12 sps:$4 sm:$0xff]   ;;  %v7816_v26 = vld [vmem:[#allocation2 + $0x140] ss:$12 sps:$4 sm:$0xff]   ;;  %v7854_v43 = vld [vmem:[#allocation2 + $0x4d0] ss:$12 sps:$4 sm:$0xff]  }
 0x350   : > { %v9744_v55 = vpack.c.bf16 %v1746_v0, %v1739_v38  ;;  %v7818_v52 = vld [vmem:[#allocation2 + $0x2c0] ss:$12 sps:$4 sm:$0xff]   ;;  %v7855_v35 = vld [vmem:[#allocation2 + $0x3f8] ss:$12 sps:$4 sm:$0xff]   ;;  %v7861_v22 = vld [vmem:[#allocation2 + $0x3c8] ss:$12 sps:$4 sm:$0xff]  }
 0x351   : > { %v9746_v2 = vpack.c.bf16 %v1747_v11, %v1740_v49  ;;  %v9748_v45 = vpack.c.bf16 %v1748_v23, %v1741_v34  ;;  %v7856_v4 = vld [vmem:[#allocation2 + $0x338] ss:$12 sps:$4 sm:$0xff]   ;;  %v7859_v63 = vld [vmem:[#allocation2 + $0x320] ss:$12 sps:$4 sm:$0xff]   ;;  %v7862_v38 = vld [vmem:[#allocation2 + $0x308] ss:$12 sps:$4 sm:$0xff]  }
 0x352   : > { %v7860_v42 = vld [vmem:[#allocation2 + $0x4a0] ss:$12 sps:$4 sm:$0xff]   ;;  %v7863_v0 = vld [vmem:[#allocation2 + $0x488] ss:$12 sps:$4 sm:$0xff]  }
 0x353   : > { %2994 = vmatprep.mubr.bf16.mxu0 %v9746_v2  ;;  %3038 = vmatmul.mubr.bf16.vlgmr.msra.gmra.mxu1 %v9748_v45 }
 0x354   : > { %6750 = vmatpush3.bf16.msra.mxu1 %v7809_v47  ;;  %2995 = vmatmul.mubr.bf16.vlgmr.msra.gmra.mxu0 %v9744_v55 }
 0x355   : > { %3080 = vmatprep.mubr.bf16.mxu1 %v9691_v29  ;;  %6772 = vmatpush3.bf16.msra.mxu0 %v7811_v15  ;;  %v7823_v29 = vld [vmem:[#allocation2 + $0x1e8] ss:$12 sps:$4 sm:$0xff]  }
 0x356   : > { %3121 = vmatprep.mubr.bf16.mxu0 %v9721_v39  ;;  %6751 = vmatprep.subr.bf16.mxu1 %v7812_v6  ;;  %v7825_v39 = vld [vmem:[#allocation2 + $0x50] ss:$12 sps:$4 sm:$0xff]  }
 0x357   : > { %6773 = vmatprep.subr.bf16.mxu0 %v7814_v53 }
 0x358   : > { %6752 = vmatpush3.bf16.msra.mxu1 %v7813_v37 }
 0x359   : > { %6774 = vmatpush3.bf16.msra.mxu0 %v7815_v5  ;;  %6753 = vmatprep.subr.bf16.mxu1 %v7816_v26 }
 0x35a   : > { %6775 = vmatprep.subr.bf16.mxu0 %v7818_v52 }
 0x35c   : > { %6754 = vmatpush3.bf16.msra.mxu1 %v7817_v51 }
 0x35d   : > { %6776 = vmatpush3.bf16.msra.mxu0 %v7819_v48  ;;  %6755 = vmatprep.subr.bf16.mxu1 %v7820_v25 }
 0x35e   : > { %6777 = vmatprep.subr.bf16.mxu0 %v7822_v27 }
 0x360   : > { %6756 = vmatpush3.bf16.msra.mxu1 %v7821_v59 }
 0x361   : > { %6778 = vmatpush3.bf16.msra.mxu0 %v7823_v29  ;;  %6757 = vmatprep.subr.bf16.mxu1 %v7824_v14 }
 0x362   : > { %6779 = vmatprep.subr.bf16.mxu0 %v7826_v57 }
 0x364   : > { %6758 = vmatpush3.bf16.msra.mxu1 %v7825_v39 }
 0x365   : > { %6780 = vmatpush3.bf16.msra.mxu0 %v7827_v24  ;;  %6759 = vmatprep.subr.bf16.mxu1 %v7828_v54 }
 0x366   : > { %6781 = vmatprep.subr.bf16.mxu0 %v7830_v21 }
 0x368   : > { %6760 = vmatpush3.bf16.msra.mxu1 %v7829_v31 }
 0x369   : > { %6782 = vmatpush3.bf16.msra.mxu0 %v7831_v41  ;;  %6761 = vmatprep.subr.bf16.mxu1 %v7832_v44 }
 0x36a   : > { %6783 = vmatprep.subr.bf16.mxu0 %v7834_v10 }
 0x36c   : > { %6762 = vmatpush3.bf16.msra.mxu1 %v7833_v60 }
 0x36d   : > { %6784 = vmatpush3.bf16.msra.mxu0 %v7835_v3  ;;  %6763 = vmatprep.subr.bf16.mxu1 %v7836_v13 }
 0x36e   : > { %6785 = vmatprep.subr.bf16.mxu0 %v7838_v61 }
 0x370   : > { %6764 = vmatpush3.bf16.msra.mxu1 %v7837_v33 }
 0x371   : > { %6786 = vmatpush3.bf16.msra.mxu0 %v7839_v30  ;;  %6793 = vmatprep.subr.bf16.mxu1 %v7840_v46 }
 0x372   : > { %6993 = vmatprep.subr.bf16.mxu0 %v8165_v7 }
 0x373   : > { %3081 = vmatmul.mubr.bf16.vlgmr.msra.gmra.mxu1 %v9693_v1  ;;  %v7848_v1 = vld [vmem:[#allocation2 + $0x500] ss:$12 sps:$4 sm:$0xff]  }
 0x374   : > { %3122 = vmatmul.mubr.bf16.vlgmr.msra.gmra.mxu0 %v9723_v8  ;;  %6794 = vmatpush3.bf16.msra.mxu1 %v7841_v16  ;;  %v7849_v8 = vld [vmem:[#allocation2 + $0x428] ss:$12 sps:$4 sm:$0xff]  }
 0x375   : > { %3162 = vmatprep.mubr.bf16.mxu1 %v9746_v2  ;;  %6994 = vmatpush3.bf16.msra.mxu0 %v7842_v56 }
 0x376   : > { %6795 = vmatprep.subr.bf16.mxu1 %v7843_v20  ;;  %6995 = vmatprep.subr.bf16.mxu0 %v8165_v7 }
 0x377   : > { %7009 = vmatprep.mubr.msk.bf16.mxu0 %vm8166_vm8, %v8165_v7 }
 0x378   : > { %6796 = vmatpush3.bf16.msra.mxu1 %v7844_v58 }
 0x379   : > { %6996 = vmatpush3.bf16.msra.mxu0 %v7845_v19  ;;  %6797 = vmatprep.subr.bf16.mxu1 %v7846_v62 }
 0x37a   : > { %6997 = vmatprep.subr.bf16.mxu0 %v8165_v7 }
 0x37c   : > { %6798 = vmatpush3.bf16.msra.mxu1 %v7847_v50 }
 0x37d   : > { %6998 = vmatpush3.bf16.msra.mxu0 %v7848_v1  ;;  %6799 = vmatprep.subr.bf16.mxu1 %v7849_v8 }
 0x37e   : > { %6999 = vmatprep.subr.bf16.mxu0 %v8165_v7 }
 0x380   : > { %6800 = vmatpush3.bf16.msra.mxu1 %v7850_v36 }
 0x381   : > { %7000 = vmatpush3.bf16.msra.mxu0 %v7851_v9  ;;  %6801 = vmatprep.subr.bf16.mxu1 %v7852_v12 }
 0x382   : > { %7001 = vmatprep.subr.bf16.mxu0 %v8165_v7 }
 0x384   : > { %6802 = vmatpush3.bf16.msra.mxu1 %v7853_v28 }
 0x385   : > { %7002 = vmatpush3.bf16.msra.mxu0 %v7854_v43  ;;  %6803 = vmatprep.subr.bf16.mxu1 %v7855_v35 }
 0x386   : > { %7003 = vmatprep.subr.bf16.mxu0 %v8165_v7 }
 0x388   : > { %6804 = vmatpush3.bf16.msra.mxu1 %v7856_v4 }
 0x389   : > { %7004 = vmatpush3.bf16.msra.mxu0 %v7857_v18  ;;  %6805 = vmatprep.subr.bf16.mxu1 %v7858_v40 }
 0x38a   : > { %7005 = vmatprep.subr.bf16.mxu0 %v8165_v7 }
 0x38c   : > { %6806 = vmatpush3.bf16.msra.mxu1 %v7859_v63 }
 0x38d   : > { %7006 = vmatpush3.bf16.msra.mxu0 %v7860_v42  ;;  %6807 = vmatprep.subr.bf16.mxu1 %v7861_v22  ;;  %v7864_v22 = vld [vmem:[%s10292_s3 + $0x4] ss:$8 sps:$4 sm:$0xff]  }
 0x38e   : > { %7007 = vmatprep.subr.bf16.mxu0 %v8165_v7 }
 0x390   : > { %6808 = vmatpush3.bf16.msra.mxu1 %v7862_v38  ;;  %v3310_v38 = vld [vmem:[%s10293_s4] sm:$0xff] }
 0x391   : > { %7008 = vmatpush3.bf16.msra.mxu0 %v7863_v0  ;;  %v3311_v0 = vld [vmem:[%s10293_s4 + $0x8] sm:$0xff] }
 0x392   : > { %3631 = vmatprep.subr.bf16.mxu0 %v10473_v32 }
 0x393   : > { %3163 = vmatmul.mubr.bf16.vlgmr.msra.gmra.mxu1 %v9744_v55 }
 0x394   : > { %7010 = vmatmul.mubr.bf16.vlgmr.msra.gmra.mxu0 %v9748_v45  ;;  %6560 = vmatprep.mubr.msk.bf16.mxu1 %vm3352_vm9, %v7864_v22  ;;  %v7870_v22 = vld [vmem:[%s10295_s6 + $0x38] sm:$0xff]  }
 0x395   : > { %3632 = vmatpush1.bf16.msra.mxu0 %v7870_v22  ;;  %v7887_v22 = vld [vmem:[#allocation5] sm:$0xff]  }
 0x396   : > { %3633 = vmatprep.subr.bf16.mxu0 %v10473_v32 }
 0x39f   : > { %v2910_v49 = vpop.f32.mrf.mxu0 }
 0x3a1   : > { %v2912_v23 = vpop.f32.mrf.mxu0 }
 0x3a3   : > { %v2914_v47 = vpop.f32.mrf.mxu0 }
 0x3a5   : > { %v2916_v15 = vpop.f32.mrf.mxu0 }
 0x3d3   : > { %v2953_v17 = vpop.f32.mrf.mxu1 }
 0x3d4   : > { %v2954_v37 = vadd.f32 %v2953_v17, %v2910_v49 }
 0x3d5   : > { %v2955_v34 = vpop.f32.mrf.mxu1 }
 0x3d6   : > { %v2956_v55 = vadd.f32 %v2955_v34, %v2912_v23 }
 0x3d7   : > { %v2957_v11 = vpop.f32.mrf.mxu1 }
 0x3d8   : > { %v2958_v52 = vadd.f32 %v2957_v11, %v2914_v47 }
 0x3d9   : > { %v2959_v2 = vpop.f32.mrf.mxu1 }
 0x3da   : > { %v2960_v27 = vadd.f32 %v2959_v2, %v2916_v15 }
 0x413   : > { %v3039_v6 = vpop.f32.mrf.mxu1 }
 0x414   : > { %v2996_v53 = vpop.f32.mrf.mxu0 }
 0x415   : > { %v3041_v5 = vpop.f32.mrf.mxu1  ;;  %v2997_v51 = vadd.f32 %v2996_v53, %v2954_v37 }
 0x416   : > { %v2998_v26 = vpop.f32.mrf.mxu0 }
 0x417   : > { %v3043_v48 = vpop.f32.mrf.mxu1  ;;  %v3040_v29 = vadd.f32 %v3039_v6, %v2997_v51  ;;  %v2999_v14 = vadd.f32 %v2998_v26, %v2956_v55 }
 0x418   : > { %v3000_v25 = vpop.f32.mrf.mxu0 }
 0x419   : > { %v3001_v45 = vadd.f32 %v3000_v25, %v2958_v52  ;;  %v3045_v24 = vpop.f32.mrf.mxu1  ;;  %v3042_v31 = vadd.f32 %v3041_v5, %v2999_v14 }
 0x41a   : > { %v3002_v59 = vpop.f32.mrf.mxu0 }
 0x41b   : > { %v3044_v57 = vadd.f32 %v3043_v48, %v3001_v45  ;;  %v3003_v39 = vadd.f32 %v3002_v59, %v2960_v27 }
 0x41d   : > { %v9771_v54 = vpack.c.bf16 %v3044_v57, %v3040_v29  ;;  %v3046_v21 = vadd.f32 %v3045_v24, %v3003_v39 }
 0x41f   : > { %3273 = vrot.lane.b32.xlu0 %v9771_v54, %s8161_s19  ;;  %3284 = vrot.lane.b32.xlu1 %v9771_v54, %s8167_s15  ;;  %v9777_v41 = vpack.c.bf16 %v3046_v21, %v3042_v31 }
 0x423   : > { %3262 = vrot.lane.b32.xlu1 %v9771_v54, %s8168_s14  ;;  %3275 = vrot.lane.b32.xlu0 %v9777_v41, %s8161_s19 }
 0x427   : > { %3253 = vrot.lane.b32.xlu0 %v9777_v41, %s8169_s16  ;;  %3286 = vrot.lane.b32.xlu1 %v9777_v41, %s8167_s15 }
 0x42b   : > { %3264 = vrot.lane.b32.xlu1 %v9777_v41, %s8168_s14 }
 0x433   : > { %v6765_v44 = vpop.f32.mrf.mxu1 }
 0x434   : > { %v6787_v10 = vpop.f32.mrf.mxu0 }
 0x435   : > { %v6766_v60 = vpop.f32.mrf.mxu1 }
 0x436   : > { %v6788_v3 = vpop.f32.mrf.mxu0  ;;  %v6767_v16 = vadd.f32 %v6766_v60, %v6765_v44 }
 0x437   : > { %v6768_v13 = vpop.f32.mrf.mxu1  ;;  %v6789_v56 = vadd.f32 %v6788_v3, %v6787_v10 }
 0x438   : > { %v6790_v61 = vpop.f32.mrf.mxu0 }
 0x439   : > { %v6769_v33 = vpop.f32.mrf.mxu1  ;;  %v3124_v36 = vadd.f32 %v6789_v56, %v6767_v16 }
 0x43a   : > { %v6791_v30 = vpop.f32.mrf.mxu0  ;;  %v6770_v19 = vadd.f32 %v6769_v33, %v6768_v13 }
 0x43b   : > { %v6792_v62 = vadd.f32 %v6791_v30, %v6790_v61 }
 0x43d   : > { %v3127_v28 = vadd.f32 %v6792_v62, %v6770_v19 }
 0x453   : > { %v6809_v46 = vpop.f32.mrf.mxu1 }
 0x454   : > { %v3205_v20 = vpop.f32.mrf.mxu0 }
 0x455   : > { %v6810_v58 = vpop.f32.mrf.mxu1 }
 0x456   : > { %v6811_v50 = vadd.f32 %v6810_v58, %v6809_v46  ;;  %v7011_v1 = vpop.f32.mrf.mxu0  ;;  %v7866_v58 = vld [vmem:[%s10292_s3] ss:$8 sps:$4 sm:$0xff]  }
 0x457   : > { %v6812_v8 = vpop.f32.mrf.mxu1 }
 0x458   : > { %v3208_v9 = vpop.f32.mrf.mxu0  ;;  %v3165_v43 = vadd.f32 %v6811_v50, %v3124_v36 }
 0x459   : > { %v6813_v12 = vpop.f32.mrf.mxu1 }
 0x45a   : > { %v6814_v35 = vadd.f32 %v6813_v12, %v6812_v8  ;;  %v7012_v4 = vpop.f32.mrf.mxu0  ;;  %v3206_v40 = vadd.f32 %v3205_v20, %v3165_v43 }
 0x45c   : > { %v3168_v18 = vadd.f32 %v6814_v35, %v3127_v28 }
 0x45e   : > { %v3209_v63 = vadd.f32 %v3208_v9, %v3168_v18 }
 0x460   : > { %v3214_v42 = vpack.c.bf16 %v3209_v63, %v3206_v40 }
 0x462   : > { %3288 = vrot.lane.b32.xlu0 %v3214_v42, %s8167_s15  ;;  %3277 = vrot.lane.b32.xlu1 %v3214_v42, %s8161_s19  ;;  %s406_s15 = scalar_lea.vmem [#allocation7], %s405_s12 }
 0x466   : > { %3251 = vrot.lane.b32.xlu0 %v9771_v54, %s8169_s16  ;;  %3242 = vrot.lane.b32.xlu1 %v9777_v41, %s8170_s23 }
 0x46a   : > { %3266 = vrot.lane.b32.xlu0 %v3214_v42, %s8168_s14  ;;  %3255 = vrot.lane.b32.xlu1 %v3214_v42, %s8169_s16  ;;  %s6302_s14 = sshll.u32 %s406_s15, 4  ;;  %s10250_s14 = int_to_ptr.vmem [resolvable:$true] %s6302_s14 }
 0x46b   : > { %s8072_s26 = scalar_lea.vmem %s10250_s14, 16 }
 0x46c   : > { %p8073_p10 = scmp.ne.s32.totalorder %s10250_s14, %s8072_s26 }
 0x46e   : > { %3231 = vrot.lane.b32.xlu0 %v9777_v41, %s8158_s30  ;;  %3240 = vrot.lane.b32.xlu1 %v9771_v54, %s8170_s23  ;;  %p8074_p7 = pnand %p8073_p10, %p8271_p5 }
 0x470   : > { %p8075_p8 = pneg %p8074_p7 }
 0x472   : > { %3244 = vrot.lane.b32.xlu0 %v3214_v42, %s8170_s23  ;;  %3233 = vrot.lane.b32.xlu1 %v3214_v42, %s8158_s30 }
 0x476   : > { %3229 = vrot.lane.b32.xlu0 %v9771_v54, %s8158_s30  ;;  %3220 = vrot.lane.b32.xlu1 %v9777_v41, %s8157_s25 }
 0x47a   : > { %3222 = vrot.lane.b32.xlu0 %v3214_v42, %s8157_s25  ;;  %3218 = vrot.lane.b32.xlu1 %v9771_v54, %s8157_s25 }
 0x47e   : > { %3297 = vrot.lane.b32.xlu0 %v9777_v41, %s8171_s29  ;;  %3299 = vrot.lane.b32.xlu1 %v3214_v42, %s8171_s29 }
 0x482   : > { %3295 = vrot.lane.b32.xlu0 %v9771_v54, %s8171_s29  ;;  %3316 = vperm.xlu1 %7519, %v3310_v38   ;;  %v7871_v38 = vld [vmem:[%s10295_s6 + $0x30] sm:$0xff]   ;;  %s8076_s29 = sshll.u32 %s8172_s21, 4  ;;  %s8077_s29 = int_to_ptr.vmem [resolvable:$false] %s8076_s29 }
 0x483   : > { %3634 = vmatpush1.bf16.msra.mxu0 %v7871_v38  ;;  %s8078_s30 = scalar_lea.vmem %s8077_s29, 32  ;;  %p8079_p11 = scmp.lt.s32.totalorder %s10250_s14, %s8077_s29 }
 0x484   : > { %3635 = vmatprep.subr.bf16.mxu0 %v10473_v32  ;;  %p8080_p0 = scmp.lt.s32.totalorder %s8078_s30, %s8072_s26 }
 0x486   : > { %3321 = vperm.xlu0 %7518, %v3311_v0   ;;  %v7872_v0 = vld [vmem:[%s10295_s6 + $0x28] sm:$0xff]   ;;  %p8081_p1 = por %p8080_p0, %p8079_p11 }
 0x487   : > { %3636 = vmatpush1.bf16.msra.mxu0 %v7872_v0 }
 0x488   : > { %3637 = vmatprep.subr.bf16.mxu0 %v10473_v32  ;;  %p8082_p3 = pnand %p8081_p1, %p8075_p8 }
 0x491   : > { %v3285_v17 = vpop.permute.xlu1 %3284  ;;  %v3274_v49 = vpop.permute.xlu0 %3273 }
 0x495   : > { %v3263_v34 = vpop.permute.xlu1 %3262  ;;  %v3276_v23 = vpop.permute.xlu0 %3275 }
 0x496   : > { %v3280_v51 = vsel %vm1085_vm4, %v3274_v49, %v3276_v23  ;;  %v7874_v49 = vld [vmem:[%s10295_s6 + $0x18] sm:$0xff]  }
 0x499   : > { %v3287_v11 = vpop.permute.xlu1 %3286  ;;  %v3254_v47 = vpop.permute.xlu0 %3253 }
 0x49a   : > { %v3291_v37 = vsel %vm3290_vm10, %v3285_v17, %v3287_v11  ;;  %v7873_v17 = vld [vmem:[%s10295_s6 + $0x20] sm:$0xff]  }
 0x49b   : > { %3638 = vmatpush1.bf16.msra.mxu0 %v7873_v17 }
 0x49c   : > { %3639 = vmatprep.subr.bf16.mxu0 %v10473_v32 }
 0x49d   : > { %v3265_v2 = vpop.permute.xlu1 %3264 }
 0x49e   : > { %v3269_v27 = vsel %vm3268_vm11, %v3263_v34, %v3265_v2  ;;  %v7875_v34 = vld [vmem:[%s10295_s6 + $0x10] sm:$0xff]  }
 0x49f   : > { %3640 = vmatpush1.bf16.msra.mxu0 %v7874_v49  ;;  %v7901_v49 = vld [vmem:[#allocation5 + $0xd8] sm:$0xff]  }
 0x4a0   : > { %3641 = vmatprep.subr.bf16.mxu0 %v10473_v32 }
 0x4a3   : > { %3642 = vmatpush1.bf16.msra.mxu0 %v7875_v34 }
 0x4a4   : > { %3643 = vmatprep.subr.bf16.mxu0 %v10473_v32 }
 0x4d4   : > { %v3289_v15 = vpop.permute.xlu0 %3288  ;;  %v3278_v6 = vpop.permute.xlu1 %3277 }
 0x4d5   : > { %v3292_v53 = vsel %vm3290_vm10, %v3287_v11, %v3289_v15  ;;  %v3281_v5 = vsel %vm1085_vm4, %v3276_v23, %v3278_v6  ;;  %v7876_v23 = vld [vmem:[%s10295_s6 + $0x8] sm:$0xff]   ;;  %v7877_v11 = vld [vmem:[%s10295_s6] sm:$0xff]   ;;  %v7880_v15 = vld [vmem:[%s10295_s6 + $0x58] sm:$0xff]  }
 0x4d6   : > { %3359 = vmatprep.subr.bf16.mxu1 %v3292_v53  ;;  %3644 = vmatpush1.bf16.msra.mxu0 %v7876_v23  ;;  %v7881_v6 = vld [vmem:[%s10295_s6 + $0x50] sm:$0xff]  }
 0x4d7   : > { %3360 = vmatpush1.bf16.msra.mxu1 %v3291_v37  ;;  %3645 = vmatprep.subr.bf16.mxu0 %v10473_v32 }
 0x4d8   : > { %v3252_v26 = vpop.permute.xlu0 %3251  ;;  %3361 = vmatprep.subr.bf16.mxu1 %v3281_v5  ;;  %v3243_v52 = vpop.permute.xlu1 %3242 }
 0x4d9   : > { %v3258_v14 = vsel %vm3257_vm12, %v3252_v26, %v3254_v47  ;;  %v7882_v26 = vld [vmem:[%s10295_s6 + $0x48] sm:$0xff]  }
 0x4da   : > { %3646 = vmatpush1.bf16.msra.mxu0 %v7877_v11  ;;  %v7903_v11 = vld [vmem:[#allocation5 + $0xd0] sm:$0xff]  }
 0x4db   : > { %3362 = vmatpush1.bf16.msra.mxu1 %v3280_v51  ;;  %3651 = vmatprep.subr.bf16.mxu0 %v10473_v32 }
 0x4dc   : > { %v3267_v48 = vpop.permute.xlu0 %3266  ;;  %v3256_v25 = vpop.permute.xlu1 %3255 }
 0x4dd   : > { %v3270_v55 = vsel %vm3268_vm11, %v3265_v2, %v3267_v48  ;;  %v3259_v45 = vsel %vm3257_vm12, %v3254_v47, %v3256_v25  ;;  %v7878_v47 = vld [vmem:[%s10295_s6 + $0x68] sm:$0xff]   ;;  %v7879_v2 = vld [vmem:[%s10295_s6 + $0x60] sm:$0xff]  }
 0x4de   : > { %3363 = vmatprep.subr.bf16.mxu1 %v3270_v55  ;;  %3652 = vmatpush2.bf16.msra.mxu0 %v7878_v47  ;;  %v7883_v55 = vld [vmem:[%s10295_s6 + $0x40] sm:$0xff]  }
 0x4df   : > { %3364 = vmatpush1.bf16.msra.mxu1 %v3269_v27  ;;  %3653 = vmatprep.subr.bf16.mxu0 %v10473_v32 }
 0x4e0   : > { %v3232_v59 = vpop.permute.xlu0 %3231  ;;  %3365 = vmatprep.subr.bf16.mxu1 %v3259_v45  ;;  %v3241_v29 = vpop.permute.xlu1 %3240 }
 0x4e1   : > { %v3247_v21 = vsel %vm3246_vm13, %v3241_v29, %v3243_v52 }
 0x4e2   : > { %3654 = vmatpush2.bf16.msra.mxu0 %v7879_v2 }
 0x4e3   : > { %3366 = vmatpush1.bf16.msra.mxu1 %v3258_v14  ;;  %3655 = vmatprep.subr.bf16.mxu0 %v10473_v32 }
 0x4e4   : > { %v3245_v57 = vpop.permute.xlu0 %3244  ;;  %v3234_v39 = vpop.permute.xlu1 %3233 }
 0x4e5   : > { %v3248_v24 = vsel %vm3246_vm13, %v3243_v52, %v3245_v57  ;;  %v3237_v31 = vsel %vm698_vm1, %v3232_v59, %v3234_v39  ;;  %v3312_v39 = vld [vmem:[%s10293_s4 + $0x10] sm:$0xff] }
 0x4e6   : > { %3367 = vmatprep.subr.bf16.mxu1 %v3248_v24  ;;  %3656 = vmatpush2.bf16.msra.mxu0 %v7880_v15 }
 0x4e7   : > { %3368 = vmatpush1.bf16.msra.mxu1 %v3247_v21  ;;  %3657 = vmatprep.subr.bf16.mxu0 %v10473_v32 }
 0x4e8   : > { %v3230_v44 = vpop.permute.xlu0 %3229  ;;  %3369 = vmatprep.subr.bf16.mxu1 %v3237_v31  ;;  %v3221_v10 = vpop.permute.xlu1 %3220 }
 0x4e9   : > { %v3236_v60 = vsel %vm698_vm1, %v3230_v44, %v3232_v59 }
 0x4ea   : > { %3658 = vmatpush2.bf16.msra.mxu0 %v7881_v6 }
 0x4eb   : > { %3370 = vmatpush1.bf16.msra.mxu1 %v3236_v60  ;;  %3659 = vmatprep.subr.bf16.mxu0 %v10473_v32 }
 0x4ec   : > { %v3223_v3 = vpop.permute.xlu0 %3222  ;;  %v3219_v13 = vpop.permute.xlu1 %3218 }
 0x4ed   : > { %v3225_v61 = vsel %vm569_vm0, %v3219_v13, %v3221_v10  ;;  %v3226_v33 = vsel %vm569_vm0, %v3221_v10, %v3223_v3 }
 0x4ee   : > { %3371 = vmatprep.subr.bf16.mxu1 %v3226_v33  ;;  %3660 = vmatpush2.bf16.msra.mxu0 %v7882_v26  ;;  %v7905_v26 = vld [vmem:[#allocation5 + $0xc8] sm:$0xff]  }
 0x4ef   : > { %3372 = vmatpush1.bf16.msra.mxu1 %v3225_v61  ;;  %3661 = vmatprep.subr.bf16.mxu0 %v10473_v32  ;;  %v3313_v32 = vld [vmem:[%s10293_s4 + $0x18] sm:$0xff] }
 0x4f0   : > { %v3298_v30 = vpop.permute.xlu0 %3297  ;;  %3373 = vmatprep.subr.bf16.mxu1 %v9777_v41  ;;  %v3300_v46 = vpop.permute.xlu1 %3299  ;;  %v7867_v41 = vld [vmem:[%s10292_s3 + $0x14] ss:$8 sps:$4 sm:$0xff]  }
 0x4f1   : > { %v3303_v16 = vsel %vm3301_vm14, %v3298_v30, %v3300_v46 }
 0x4f2   : > { %3662 = vmatpush2.bf16.msra.mxu0 %v7883_v55 }
 0x4f3   : > { %3374 = vmatpush1.bf16.msra.mxu1 %v9771_v54  ;;  %v7869_v54 = vld [vmem:[%s10292_s3 + $0x10] ss:$8 sps:$4 sm:$0xff]   ;;  %7085 = vmatprep.subr.bf16.mxu0 %v8165_v7 }
 0x4f4   : > { %v3296_v56 = vpop.permute.xlu0 %3295  ;;  %3389 = vmatprep.subr.bf16.mxu1 %v3303_v16 }
 0x4f5   : > { %v3302_v20 = vsel %vm3301_vm14, %v3296_v56, %v3298_v30 }
 0x4f7   : > { %3390 = vmatpush2.bf16.msra.mxu1 %v3302_v20 }
 0x4f8   : > { %7013 = vmatprep.subr.bf16.mxu1 %v8165_v7 }
 0x4fa   : > { %3392 = vmatmul.mubr.bf16.vlgmr.msra.gmra.mxu1 %v7866_v58 }
 0x4fb   : > { %6561 = vmatprep.mubr.msk.bf16.mxu1 %vm3352_vm9, %v7867_v41 }
 0x4fd   : > { %v3317_v19 = vpop.permute.xlu1 %3316 }
 0x501   : > { %v3322_v36 = vpop.permute.xlu0 %3321 }
 0x502   : > { %3402 = vmatmul.mubr.bf16.gmra.mxu1 %v7869_v54 }
 0x503   : > { %7021 = vmatprep.mubr.msk.bf16.mxu1 %vm8166_vm8, %v8165_v7 }
 0x5ba   : > { %v3393_v62 = vpop.f32.mrf.mxu1 }
 0x5bb   : > { %v3394_v50 = vadd.f32 %v3393_v62, %v3317_v19 }
 0x5bc   : > { %v3395_v1 = vpop.f32.mrf.mxu1 }
 0x5bd   : > { %v3396_v8 = vadd.f32 %v3395_v1, %v3317_v19  ;;  %v3412_v12 = vmax.f32 %v3394_v50, 0.0 }
 0x5be   : > { %v3397_v9 = vpop.f32.mrf.mxu1 }
 0x5bf   : > { %v3413_v28 = vmax.f32 %v3396_v8, 0.0  ;;  %v3398_v43 = vadd.f32 %v3397_v9, %v3322_v36 }
 0x5c0   : > { %v3399_v35 = vpop.f32.mrf.mxu1 }
 0x5c1   : > { %v7600_v4 = vpack.i.bf16 %v3413_v28, %v3412_v12  ;;  %v3400_v18 = vadd.f32 %v3399_v35, %v3322_v36  ;;  %v3414_v40 = vmax.f32 %v3398_v43, 0.0  ;;  %v7884_v35 = vld [vmem:[#allocation5 + $0x18] sm:$0xff]  }
 0x5c2   : > { %v3403_v61 = vpop.f32.mrf.mxu1  ;;  %7014 = vmatpush3.bf16.msra.mxu1 %v7884_v35  ;;  %v7908_v35 = vld [vmem:[#allocation5 + $0xb8] sm:$0xff]  }
 0x5c3   : > { %v3415_v63 = vmax.f32 %v3400_v18, 0.0  ;;  %7601 = vrot.lane.b32.xlu1 %v7600_v4, %s8157_s25  ;;  %7015 = vmatprep.subr.bf16.mxu1 %v8165_v7 }
 0x5c4   : > { %v3405_v58 = vpop.f32.mrf.mxu1 }
 0x5c5   : > { %v7605_v42 = vpack.i.bf16 %v3415_v63, %v3414_v40 }
 0x5c6   : > { %v3407_v54 = vpop.f32.mrf.mxu1 }
 0x5c7   : > { %7606 = vrot.lane.b32.xlu0 %v7605_v42, %s8157_s25  ;;  %v7886_v42 = vld [vmem:[#allocation5 + $0x8] sm:$0xff]  }
 0x5c8   : > { %v3409_v36 = vpop.f32.mrf.mxu1 }
 0x635   : > { %v7602_v53 = vpop.permute.xlu1 %7601 }
 0x636   : > { %v7604_v37 = vunpack.i.h.bf16 %v7602_v53  ;;  %v7603_v5 = vunpack.i.l.bf16 %v7602_v53 }
 0x638   : > { %v3457_v52 = vmax.f32 %v3413_v28, %v7604_v37  ;;  %v3444_v51 = vsel %vm569_vm0, %v7603_v5, %v7604_v37 }
 0x639   : > { %v3456_v48 = vmax.f32 %v3412_v12, %v3444_v51  ;;  %v7607_v25 = vpop.permute.xlu0 %7606 }
 0x63a   : > { %v7609_v27 = vunpack.i.h.bf16 %v7607_v25  ;;  %v7608_v45 = vunpack.i.l.bf16 %v7607_v25 }
 0x63b   : > { %v7610_v59 = vpack.i.bf16 %v3457_v52, %v3456_v48 }
 0x63c   : > { %v3459_v29 = vmax.f32 %v3415_v63, %v7609_v27  ;;  %v3445_v14 = vsel %vm569_vm0, %v7608_v45, %v7609_v27  ;;  %v7888_v45 = vld [vmem:[#allocation5 + $0x38] sm:$0xff]  }
 0x63d   : > { %v3458_v57 = vmax.f32 %v3414_v40, %v3445_v14  ;;  %7611 = vrot.lane.b32.xlu1 %v7610_v59, %s8170_s23  ;;  %v7885_v40 = vld [vmem:[#allocation5 + $0x10] sm:$0xff]  }
 0x63e   : > { %7016 = vmatpush3.bf16.msra.mxu1 %v7885_v40  ;;  %v7889_v14 = vld [vmem:[#allocation5 + $0x30] sm:$0xff]  }
 0x63f   : > { %v7615_v24 = vpack.i.bf16 %v3459_v29, %v3458_v57  ;;  %7017 = vmatprep.subr.bf16.mxu1 %v8165_v7 }
 0x641   : > { %7616 = vrot.lane.b32.xlu0 %v7615_v24, %s8170_s23  ;;  %3326 = vperm.xlu1 %7519, %v3312_v39   ;;  %v7891_v39 = vld [vmem:[#allocation5 + $0x20] sm:$0xff]   ;;  %v7892_v24 = vld [vmem:[#allocation5 + $0x58] sm:$0xff]  }
 0x642   : > { %7018 = vmatpush3.bf16.msra.mxu1 %v7886_v42  ;;  %v7911_v42 = vld [vmem:[#allocation5 + $0x110] sm:$0xff]  }
 0x643   : > { %7019 = vmatprep.subr.bf16.mxu1 %v8165_v7 }
 0x645   : > { %3331 = vperm.xlu0 %7518, %v3313_v32  }
 0x646   : > { %7020 = vmatpush3.bf16.msra.mxu1 %v7887_v22  ;;  %v7912_v22 = vld [vmem:[#allocation5 + $0xa8] sm:$0xff]  }
 0x647   : > { %7025 = vmatprep.subr.bf16.mxu1 %v8165_v7 }
 0x6af   : > { %v7612_v21 = vpop.permute.xlu1 %7611 }
 0x6b0   : > { %v7614_v31 = vunpack.i.h.bf16 %v7612_v21  ;;  %v7613_v44 = vunpack.i.l.bf16 %v7612_v21  ;;  %v7893_v21 = vld [vmem:[#allocation5 + $0x50] sm:$0xff]  }
 0x6b2   : > { %v3489_v60 = vsel %vm3246_vm13, %v7613_v44, %v7614_v31  ;;  %v3502_v33 = vmax.f32 %v3457_v52, %v7614_v31  ;;  %v7894_v31 = vld [vmem:[#allocation5 + $0x48] sm:$0xff]   ;;  %v7895_v44 = vld [vmem:[#allocation5 + $0x40] sm:$0xff]  }
 0x6b3   : > { %v7617_v10 = vpop.permute.xlu0 %7616  ;;  %v3501_v16 = vmax.f32 %v3456_v48, %v3489_v60  ;;  %v7907_v48 = vld [vmem:[#allocation5 + $0xc0] sm:$0xff]  }
 0x6b4   : > { %v7619_v3 = vunpack.i.h.bf16 %v7617_v10  ;;  %v7618_v13 = vunpack.i.l.bf16 %v7617_v10  ;;  %v7896_v10 = vld [vmem:[#allocation5 + $0x78] sm:$0xff]  }
 0x6b6   : > { %v3504_v30 = vmax.f32 %v3459_v29, %v7619_v3  ;;  %v3490_v46 = vsel %vm3246_vm13, %v7618_v13, %v7619_v3  ;;  %v7897_v3 = vld [vmem:[#allocation5 + $0x70] sm:$0xff]   ;;  %v7898_v13 = vld [vmem:[#allocation5 + $0x68] sm:$0xff]  }
 0x6b7   : > { %v3503_v56 = vmax.f32 %v3458_v57, %v3490_v46  ;;  %v7890_v57 = vld [vmem:[#allocation5 + $0x28] sm:$0xff]  }
 0x6b8   : > { %v3510_v20 = vpack.c.bf16 %v3504_v30, %v3502_v33  ;;  %v7900_v30 = vld [vmem:[#allocation5 + $0x98] sm:$0xff]  }
 0x6b9   : > { %v3509_v41 = vpack.c.bf16 %v3503_v56, %v3501_v16 }
 0x6ba   : > { %6576 = vmatprep.mubr.msk.bf16.mxu0 %vm1085_vm4, %v3510_v20 }
 0x6bb   : > { %3664 = vmatmul.mubr.bf16.vlgmr.msra.gmra.mxu0 %v3509_v41 }
 0x6bc   : > { %v3327_v19 = vpop.permute.xlu1 %3326  ;;  %7086 = vmatpush3.bf16.msra.mxu0 %v7901_v49  ;;  %v7916_v49 = vld [vmem:[#allocation5 + $0xf8] sm:$0xff]  }
 0x6bd   : > { %v3404_v62 = vadd.f32 %v3403_v61, %v3327_v19  ;;  %v3406_v50 = vadd.f32 %v3405_v58, %v3327_v19  ;;  %7087 = vmatprep.subr.bf16.mxu0 %v8165_v7  ;;  %v7899_v61 = vld [vmem:[#allocation5 + $0x60] sm:$0xff]   ;;  %v7902_v58 = vld [vmem:[#allocation5 + $0x90] sm:$0xff]  }
 0x6bf   : > { %v3416_v1 = vmax.f32 %v3404_v62, 0.0  ;;  %v3417_v8 = vmax.f32 %v3406_v50, 0.0 }
 0x6c0   : > { %v3332_v9 = vpop.permute.xlu0 %3331  ;;  %7088 = vmatpush3.bf16.msra.mxu0 %v7903_v11 }
 0x6c1   : > { %v7620_v12 = vpack.i.bf16 %v3417_v8, %v3416_v1  ;;  %v3408_v28 = vadd.f32 %v3407_v54, %v3332_v9  ;;  %v3410_v43 = vadd.f32 %v3409_v36, %v3332_v9  ;;  %7089 = vmatprep.subr.bf16.mxu0 %v8165_v7 }
 0x6c3   : > { %v3418_v4 = vmax.f32 %v3408_v28, 0.0  ;;  %v3419_v18 = vmax.f32 %v3410_v43, 0.0  ;;  %7621 = vrot.lane.b32.xlu1 %v7620_v12, %s8157_s25  ;;  %v7906_v43 = vld [vmem:[#allocation5 + $0x80] sm:$0xff]  }
 0x6c4   : > { %7090 = vmatpush3.bf16.msra.mxu0 %v7905_v26 }
 0x6c5   : > { %v7625_v63 = vpack.i.bf16 %v3419_v18, %v3418_v4  ;;  %7091 = vmatprep.subr.bf16.mxu0 %v8165_v7 }
 0x6c7   : > { %7626 = vrot.lane.b32.xlu0 %v7625_v63, %s8157_s25  ;;  %v7910_v63 = vld [vmem:[#allocation5 + $0xb0] sm:$0xff]   ;;  %s10248_s25 = scalar_lea.hbm %s10300_s11, %s6746_s24 }
 0x6c8   : > { %7092 = vmatpush3.bf16.msra.mxu0 %v7907_v48  ;;  %v7926_v48 = vld [vmem:[#allocation5 + $0x130] sm:$0xff]  }
 0x6c9   : > { %7109 = vmatprep.subr.bf16.mxu0 %v8165_v7 }
 0x735   : > { %v7622_v38 = vpop.permute.xlu1 %7621 }
 0x736   : > { %v7624_v0 = vunpack.i.h.bf16 %v7622_v38  ;;  %v7623_v17 = vunpack.i.l.bf16 %v7622_v38  ;;  %v7913_v38 = vld [vmem:[#allocation5 + $0x108] sm:$0xff]  }
 0x738   : > { %v9922_v34 = vmax.f32 %v3417_v8, %v7624_v0  ;;  %v3446_v23 = vsel %vm569_vm0, %v7623_v17, %v7624_v0  ;;  %v7904_v8 = vld [vmem:[#allocation5 + $0x88] sm:$0xff]   ;;  %v7914_v0 = vld [vmem:[#allocation5 + $0xa0] sm:$0xff]  }
 0x739   : > { %v9925_v47 = vmax.f32 %v3416_v1, %v3446_v23  ;;  %v7627_v2 = vpop.permute.xlu0 %7626  ;;  %v7915_v17 = vld [vmem:[#allocation5 + $0x100] sm:$0xff]   ;;  %v7917_v23 = vld [vmem:[#allocation5 + $0x158] sm:$0xff]  }
 0x73a   : > { %v7629_v15 = vunpack.i.h.bf16 %v7627_v2  ;;  %v7628_v6 = vunpack.i.l.bf16 %v7627_v2  ;;  %v7919_v2 = vld [vmem:[#allocation5 + $0x150] sm:$0xff]  }
 0x73b   : > { %v7630_v53 = vpack.i.bf16 %v9922_v34, %v9925_v47 }
 0x73c   : > { %v9930_v37 = vmax.f32 %v3419_v18, %v7629_v15  ;;  %v3447_v5 = vsel %vm569_vm0, %v7628_v6, %v7629_v15  ;;  %v7909_v18 = vld [vmem:[#allocation5 + $0x118] sm:$0xff]   ;;  %v7920_v15 = vld [vmem:[#allocation5 + $0xe8] sm:$0xff]  }
 0x73d   : > { %v9933_v52 = vmax.f32 %v3418_v4, %v3447_v5  ;;  %7631 = vrot.lane.b32.xlu1 %v7630_v53, %s8170_s23  ;;  %v7921_v6 = vld [vmem:[#allocation5 + $0x148] sm:$0xff]   ;;  %v7922_v53 = vld [vmem:[#allocation5 + $0xe0] sm:$0xff]   ;;  %v7924_v5 = vld [vmem:[#allocation5 + $0x138] sm:$0xff]  }
 0x73f   : > { %v7635_v51 = vpack.i.bf16 %v9930_v37, %v9933_v52 }
 0x741   : > { %7636 = vrot.lane.b32.xlu0 %v7635_v51, %s8170_s23  ;;  %s6290_s23 = scalar_lea.sflag [#allocation4], %s405_s12 }
 0x77b   : > { %v3665_v25 = vpop.f32.mrf.mxu0 }
 0x77d   : > { %v3667_v55 = vpop.f32.mrf.mxu0 }
 0x77e   : > { %v7928_v55 = vld [vmem:[#allocation5 + $0x128] sm:$0xff]  }
 0x77f   : > { %v3668_v27 = vpop.f32.mrf.mxu0 }
 0x780   : > { %v9942_v59 = vpack.c.bf16 %v3668_v27, %v3665_v25  ;;  %v7927_v25 = vld [vmem:[#allocation5 + $0x190] sm:$0xff]   ;;  %v7929_v27 = vld [vmem:[#allocation5 + $0x188] sm:$0xff]  }
 0x781   : > { %v3670_v29 = vpop.f32.mrf.mxu0 }
 0x782   : > { %7022 = vmatmul.mubr.msk.bf16.vlgmr.msra.gmra.mxu1 %vm3715_vm15, %v9942_v59  ;;  %v9952_v32 = vshrl.u32 %v9942_v59, 16  ;;  %v3849_v60 = vrot.slane %v9942_v59, 1  ;;  %v4005_v4 = vrot.slane %v9942_v59, 2  ;;  %v4161_v40 = vrot.slane %v9942_v59, 3  ;;  %v7931_v29 = vld [vmem:[#allocation5 + $0x180] sm:$0xff]  }
 0x783   : > { %7026 = vmatpush3.bf16.msra.mxu1 %v7888_v45  ;;  %7033 = vmatprep.mubr.msk.bf16.mxu1 %vm8166_vm8, %v8165_v7  ;;  %v4317_v11 = vrot.slane %v9942_v59, 4  ;;  %v4473_v51 = vrot.slane %v9942_v59, 5  ;;  %v7930_v45 = vld [vmem:[#allocation5 + $0x120] sm:$0xff]  }
 0x784   : > { %7027 = vmatprep.subr.bf16.mxu1 %v8165_v7  ;;  %v3927_v56 = vrot.slane %v9952_v32, 1  ;;  %v4239_v26 = vrot.slane %v9952_v32, 3 }
 0x787   : > { %7028 = vmatpush3.bf16.msra.mxu1 %v7889_v14  ;;  %v7932_v14 = vld [vmem:[#allocation5 + $0x178] sm:$0xff]  }
 0x788   : > { %7029 = vmatprep.subr.bf16.mxu1 %v8165_v7 }
 0x78b   : > { %7030 = vmatpush3.bf16.msra.mxu1 %v7890_v57  ;;  %v4395_v57 = vrot.slane %v9952_v32, 4 }
 0x78c   : > { %7031 = vmatprep.subr.bf16.mxu1 %v8165_v7 }
 0x78f   : > { %7032 = vmatpush3.bf16.msra.mxu1 %v7891_v39  ;;  %v7933_v39 = vld [vmem:[#allocation5 + $0x1d8] sm:$0xff]  }
 0x790   : > { %7037 = vmatprep.subr.bf16.mxu1 %v8165_v7 }
 0x792   : > { %7034 = vmatmul.mubr.msk.bf16.vlgmr.msra.gmra.mxu1 %vm3715_vm15, %v9952_v32 }
 0x793   : > { %7038 = vmatpush3.bf16.msra.mxu1 %v7892_v24  ;;  %7045 = vmatprep.mubr.msk.bf16.mxu1 %vm8166_vm8, %v8165_v7  ;;  %v4629_v24 = vrot.slane %v9942_v59, 6 }
 0x794   : > { %7039 = vmatprep.subr.bf16.mxu1 %v8165_v7 }
 0x797   : > { %7040 = vmatpush3.bf16.msra.mxu1 %v7893_v21  ;;  %v7934_v21 = vld [vmem:[#allocation5 + $0x170] sm:$0xff]  }
 0x798   : > { %7041 = vmatprep.subr.bf16.mxu1 %v8165_v7 }
 0x79b   : > { %7042 = vmatpush3.bf16.msra.mxu1 %v7894_v31  ;;  %v7935_v31 = vld [vmem:[#allocation5 + $0x1d0] sm:$0xff]  }
 0x79c   : > { %7043 = vmatprep.subr.bf16.mxu1 %v8165_v7 }
 0x79f   : > { %7044 = vmatpush3.bf16.msra.mxu1 %v7895_v44  ;;  %v7936_v44 = vld [vmem:[#allocation5 + $0x168] sm:$0xff]  }
 0x7a0   : > { %7049 = vmatprep.subr.bf16.mxu1 %v8165_v7 }
 0x7a2   : > { %7046 = vmatmul.mubr.msk.bf16.vlgmr.msra.gmra.mxu1 %vm3715_vm15, %v3849_v60  ;;  %v7938_v60 = vld [vmem:[#allocation5 + $0x160] sm:$0xff]  }
 0x7a3   : > { %7050 = vmatpush3.bf16.msra.mxu1 %v7896_v10  ;;  %7057 = vmatprep.mubr.msk.bf16.mxu1 %vm8166_vm8, %v8165_v7  ;;  %v7937_v10 = vld [vmem:[#allocation5 + $0x1c8] sm:$0xff]  }
 0x7a4   : > { %7051 = vmatprep.subr.bf16.mxu1 %v8165_v7 }
 0x7a7   : > { %7052 = vmatpush3.bf16.msra.mxu1 %v7897_v3  ;;  %v7939_v3 = vld [vmem:[#allocation5 + $0x1c0] sm:$0xff]  }
 0x7a8   : > { %7053 = vmatprep.subr.bf16.mxu1 %v8165_v7 }
 0x7ab   : > { %7054 = vmatpush3.bf16.msra.mxu1 %v7898_v13  ;;  %v7940_v13 = vld [vmem:[#allocation5 + $0x1b8] sm:$0xff]  }
 0x7ac   : > { %7055 = vmatprep.subr.bf16.mxu1 %v8165_v7 }
 0x7af   : > { %7056 = vmatpush3.bf16.msra.mxu1 %v7899_v61  ;;  %v7632_v33 = vpop.permute.xlu1 %7631  ;;  %v4551_v61 = vrot.slane %v9952_v32, 5 }
 0x7b0   : > { %v7634_v46 = vunpack.i.h.bf16 %v7632_v33  ;;  %v7633_v16 = vunpack.i.l.bf16 %v7632_v33  ;;  %7061 = vmatprep.subr.bf16.mxu1 %v8165_v7  ;;  %v4785_v33 = vrot.slane %v9942_v59, 7  ;;  %v7942_v59 = vld [vmem:[#allocation5 + $0x1a8] sm:$0xff]  }
 0x7b2   : > { %7058 = vmatmul.mubr.msk.bf16.vlgmr.msra.gmra.mxu1 %vm3715_vm15, %v3927_v56  ;;  %v3491_v41 = vsel %vm3246_vm13, %v7633_v16, %v7634_v46  ;;  %v3506_v62 = vmax.f32 %v9922_v34, %v7634_v46  ;;  %v4083_v34 = vrot.slane %v9952_v32, 2  ;;  %v7941_v46 = vld [vmem:[#allocation5 + $0x1b0] sm:$0xff]   ;;  %v7952_v56 = vld [vmem:[#allocation5 + $0x208] sm:$0xff]  }
 0x7b3   : > { %7062 = vmatpush3.bf16.msra.mxu1 %v7900_v30  ;;  %v7637_v20 = vpop.permute.xlu0 %7636  ;;  %7069 = vmatprep.mubr.msk.bf16.mxu1 %vm8166_vm8, %v8165_v7  ;;  %v3505_v36 = vmax.f32 %v9925_v47, %v3491_v41  ;;  %v7918_v47 = vld [vmem:[#allocation5 + $0xf0] sm:$0xff]   ;;  %v7948_v30 = vld [vmem:[#allocation5 + $0x218] sm:$0xff]  }
 0x7b4   : > { %v7639_v54 = vunpack.i.h.bf16 %v7637_v20  ;;  %v7638_v19 = vunpack.i.l.bf16 %v7637_v20  ;;  %7063 = vmatprep.subr.bf16.mxu1 %v8165_v7  ;;  %v7950_v16 = vld [vmem:[#allocation5 + $0x210] sm:$0xff]   ;;  %v7943_v20 = vld [vmem:[#allocation5 + $0x1a0] sm:$0xff]   ;;  %v7944_v41 = vld [vmem:[#allocation5 + $0x1f8] sm:$0xff]  }
 0x7b6   : > { %v3508_v50 = vmax.f32 %v9930_v37, %v7639_v54  ;;  %v3492_v1 = vsel %vm3246_vm13, %v7638_v19, %v7639_v54  ;;  %v7923_v37 = vld [vmem:[#allocation5 + $0x140] sm:$0xff]   ;;  %v4707_v54 = vrot.slane %v9952_v32, 6  ;;  %v7945_v19 = vld [vmem:[#allocation5 + $0x1f0] sm:$0xff]  }
 0x7b7   : > { %7064 = vmatpush3.bf16.msra.mxu1 %v7902_v58  ;;  %v3507_v9 = vmax.f32 %v9933_v52, %v3492_v1  ;;  %v7925_v52 = vld [vmem:[#allocation5 + $0x198] sm:$0xff]   ;;  %v7954_v58 = vld [vmem:[#allocation5 + $0x200] sm:$0xff]  }
 0x7b8   : > { %v3512_v12 = vpack.c.bf16 %v3508_v50, %v3506_v62  ;;  %7065 = vmatprep.subr.bf16.mxu1 %v8165_v7  ;;  %v7946_v62 = vld [vmem:[#allocation5 + $0x1e8] sm:$0xff]   ;;  %v7947_v50 = vld [vmem:[#allocation5 + $0x1e0] sm:$0xff]   ;;  %v7949_v1 = vld [vmem:[#allocation5 + $0x238] sm:$0xff]  }
 0x7b9   : > { %v3511_v28 = vpack.c.bf16 %v3507_v9, %v3505_v36  ;;  %v7951_v36 = vld [vmem:[#allocation5 + $0x230] sm:$0xff]   ;;  %v7953_v9 = vld [vmem:[#allocation5 + $0x228] sm:$0xff]  }
 0x7ba   : > { %6577 = vmatprep.mubr.msk.bf16.mxu0 %vm1085_vm4, %v3512_v12  ;;  %v7955_v12 = vld [vmem:[#allocation5 + $0x220] sm:$0xff]  }
 0x7bb   : > { %7066 = vmatpush3.bf16.msra.mxu1 %v7904_v8  ;;  %3672 = vmatmul.mubr.bf16.gmra.mxu0 %v3511_v28  ;;  %v4863_v8 = vrot.slane %v9952_v32, 7 }
 0x7bc   : > { %7067 = vmatprep.subr.bf16.mxu1 %v8165_v7  ;;  %7093 = vmatprep.mubr.msk.bf16.mxu0 %vm8166_vm8, %v8165_v7 }
 0x7bf   : > { %7068 = vmatpush3.bf16.msra.mxu1 %v7906_v43 }
 0x7c0   : > { %7073 = vmatprep.subr.bf16.mxu1 %v8165_v7 }
 0x7c2   : > { %7070 = vmatmul.mubr.msk.bf16.vlgmr.msra.gmra.mxu1 %vm3715_vm15, %v4005_v4  ;;  %v3682_v4 = vld [vmem:[%s10297_s8] sm:$0x1] }
 0x7c3   : > { %7074 = vmatpush3.bf16.msra.mxu1 %v7908_v35  ;;  %7094 = vmatmul.mubr.msk.bf16.vlgmr.msra.gmra.mxu0 %vm3715_vm15, %v4161_v40 }
 0x7c4   : > { %7110 = vmatpush3.bf16.msra.mxu0 %v7909_v18  ;;  %7075 = vmatprep.subr.bf16.mxu1 %v8165_v7 }
 0x7c5   : > { %7111 = vmatprep.subr.bf16.mxu0 %v8165_v7  ;;  %7081 = vmatprep.mubr.msk.bf16.mxu1 %vm8166_vm8, %v8165_v7 }
 0x7c6   : > { %7117 = vmatprep.mubr.msk.bf16.mxu0 %vm8166_vm8, %v8165_v7 }
 0x7c7   : > { %7076 = vmatpush3.bf16.msra.mxu1 %v7910_v63 }
 0x7c8   : > { %7112 = vmatpush3.bf16.msra.mxu0 %v7911_v42  ;;  %7077 = vmatprep.subr.bf16.mxu1 %v8165_v7 }
 0x7c9   : > { %7113 = vmatprep.subr.bf16.mxu0 %v8165_v7 }
 0x7cb   : > { %7078 = vmatpush3.bf16.msra.mxu1 %v7912_v22 }
 0x7cc   : > { %7114 = vmatpush3.bf16.msra.mxu0 %v7913_v38  ;;  %7079 = vmatprep.subr.bf16.mxu1 %v8165_v7 }
 0x7cd   : > { %7115 = vmatprep.subr.bf16.mxu0 %v8165_v7 }
 0x7cf   : > { %7080 = vmatpush3.bf16.msra.mxu1 %v7914_v0 }
 0x7d0   : > { %7116 = vmatpush3.bf16.msra.mxu0 %v7915_v17  ;;  %7097 = vmatprep.subr.bf16.mxu1 %v8165_v7 }
 0x7d1   : > { %7133 = vmatprep.subr.bf16.mxu0 %v8165_v7 }
 0x7d2   : > { %7082 = vmatmul.mubr.msk.bf16.vlgmr.msra.gmra.mxu1 %vm3715_vm15, %v4083_v34 }
 0x7d3   : > { %7098 = vmatpush3.bf16.msra.mxu1 %v7916_v49  ;;  %7118 = vmatmul.mubr.msk.bf16.vlgmr.msra.gmra.mxu0 %vm3715_vm15, %v4317_v11 }
 0x7d4   : > { %7134 = vmatpush3.bf16.msra.mxu0 %v7917_v23  ;;  %7099 = vmatprep.subr.bf16.mxu1 %v8165_v7 }
 0x7d5   : > { %7135 = vmatprep.subr.bf16.mxu0 %v8165_v7  ;;  %7105 = vmatprep.mubr.msk.bf16.mxu1 %vm8166_vm8, %v8165_v7 }
 0x7d6   : > { %7141 = vmatprep.mubr.msk.bf16.mxu0 %vm8166_vm8, %v8165_v7 }
 0x7d7   : > { %7100 = vmatpush3.bf16.msra.mxu1 %v7918_v47 }
 0x7d8   : > { %7136 = vmatpush3.bf16.msra.mxu0 %v7919_v2  ;;  %7101 = vmatprep.subr.bf16.mxu1 %v8165_v7 }
 0x7d9   : > { %7137 = vmatprep.subr.bf16.mxu0 %v8165_v7 }
 0x7db   : > { %7102 = vmatpush3.bf16.msra.mxu1 %v7920_v15 }
 0x7dc   : > { %7138 = vmatpush3.bf16.msra.mxu0 %v7921_v6  ;;  %7103 = vmatprep.subr.bf16.mxu1 %v8165_v7 }
 0x7dd   : > { %7139 = vmatprep.subr.bf16.mxu0 %v8165_v7 }
 0x7df   : > { %7104 = vmatpush3.bf16.msra.mxu1 %v7922_v53 }
 0x7e0   : > { %7140 = vmatpush3.bf16.msra.mxu0 %v7923_v37  ;;  %7121 = vmatprep.subr.bf16.mxu1 %v8165_v7 }
 0x7e1   : > { %7157 = vmatprep.subr.bf16.mxu0 %v8165_v7 }
 0x7e2   : > { %7106 = vmatmul.mubr.msk.bf16.vlgmr.msra.gmra.mxu1 %vm3715_vm15, %v4239_v26  ;;  %v7956_v26 = vld [vmem:[#allocation5 + $0x258] sm:$0xff]  }
 0x7e3   : > { %7122 = vmatpush3.bf16.msra.mxu1 %v7924_v5  ;;  %7142 = vmatmul.mubr.msk.bf16.vlgmr.msra.gmra.mxu0 %vm3715_vm15, %v4473_v51 }
 0x7e4   : > { %7158 = vmatpush3.bf16.msra.mxu0 %v7925_v52  ;;  %7123 = vmatprep.subr.bf16.mxu1 %v8165_v7 }
 0x7e5   : > { %7159 = vmatprep.subr.bf16.mxu0 %v8165_v7  ;;  %7129 = vmatprep.mubr.msk.bf16.mxu1 %vm8166_vm8, %v8165_v7 }
 0x7e6   : > { %7165 = vmatprep.mubr.msk.bf16.mxu0 %vm8166_vm8, %v8165_v7 }
 0x7e7   : > { %7124 = vmatpush3.bf16.msra.mxu1 %v7926_v48  ;;  %v7957_v48 = vld [vmem:[#allocation5 + $0x278] sm:$0xff]  }
 0x7e8   : > { %7160 = vmatpush3.bf16.msra.mxu0 %v7927_v25  ;;  %7125 = vmatprep.subr.bf16.mxu1 %v8165_v7 }
 0x7e9   : > { %7161 = vmatprep.subr.bf16.mxu0 %v8165_v7 }
 0x7eb   : > { %7126 = vmatpush3.bf16.msra.mxu1 %v7928_v55 }
 0x7ec   : > { %7162 = vmatpush3.bf16.msra.mxu0 %v7929_v27  ;;  %7127 = vmatprep.subr.bf16.mxu1 %v8165_v7 }
 0x7ed   : > { %7163 = vmatprep.subr.bf16.mxu0 %v8165_v7 }
 0x7ef   : > { %7128 = vmatpush3.bf16.msra.mxu1 %v7930_v45 }
 0x7f0   : > { %7164 = vmatpush3.bf16.msra.mxu0 %v7931_v29  ;;  %7145 = vmatprep.subr.bf16.mxu1 %v8165_v7  ;;  %v7958_v29 = vld [vmem:[#allocation5 + $0x250] sm:$0xff]  }
 0x7f1   : > { %7181 = vmatprep.subr.bf16.mxu0 %v8165_v7 }
 0x7f2   : > { %7130 = vmatmul.mubr.msk.bf16.vlgmr.msra.gmra.mxu1 %vm3715_vm15, %v4395_v57 }
 0x7f3   : > { %7146 = vmatpush3.bf16.msra.mxu1 %v7932_v14  ;;  %7166 = vmatmul.mubr.msk.bf16.vlgmr.msra.gmra.mxu0 %vm3715_vm15, %v4629_v24 }
 0x7f4   : > { %7182 = vmatpush3.bf16.msra.mxu0 %v7933_v39  ;;  %7147 = vmatprep.subr.bf16.mxu1 %v8165_v7  ;;  %v7959_v39 = vld [vmem:[#allocation5 + $0x270] sm:$0xff]  }
 0x7f5   : > { %7183 = vmatprep.subr.bf16.mxu0 %v8165_v7  ;;  %7153 = vmatprep.mubr.msk.bf16.mxu1 %vm8166_vm8, %v8165_v7 }
 0x7f6   : > { %7189 = vmatprep.mubr.msk.bf16.mxu0 %vm8166_vm8, %v8165_v7 }
 0x7f7   : > { %7148 = vmatpush3.bf16.msra.mxu1 %v7934_v21 }
 0x7f8   : > { %7184 = vmatpush3.bf16.msra.mxu0 %v7935_v31  ;;  %7149 = vmatprep.subr.bf16.mxu1 %v8165_v7  ;;  %v7960_v31 = vld [vmem:[#allocation5 + $0x248] sm:$0xff]  }
 0x7f9   : > { %7185 = vmatprep.subr.bf16.mxu0 %v8165_v7 }
 0x7fb   : > { %7150 = vmatpush3.bf16.msra.mxu1 %v7936_v44 }
 0x7fc   : > { %7186 = vmatpush3.bf16.msra.mxu0 %v7937_v10  ;;  %7151 = vmatprep.subr.bf16.mxu1 %v8165_v7 }
 0x7fd   : > { %7187 = vmatprep.subr.bf16.mxu0 %v8165_v7 }
 0x7ff   : > { %7152 = vmatpush3.bf16.msra.mxu1 %v7938_v60  ;;  %v7961_v60 = vld [vmem:[#allocation5 + $0x268] sm:$0xff]  }
 0x800   : > { %7188 = vmatpush3.bf16.msra.mxu0 %v7939_v3  ;;  %7169 = vmatprep.subr.bf16.mxu1 %v8165_v7  ;;  %v7962_v3 = vld [vmem:[#allocation5 + $0x240] sm:$0xff]  }
 0x801   : > { %7205 = vmatprep.subr.bf16.mxu0 %v8165_v7 }
 0x802   : > { %7154 = vmatmul.mubr.msk.bf16.vlgmr.msra.gmra.mxu1 %vm3715_vm15, %v4551_v61  ;;  %v7964_v61 = vld [vmem:[#allocation5 + $0x298] sm:$0xff]  }
 0x803   : > { %7170 = vmatpush3.bf16.msra.mxu1 %v7940_v13  ;;  %7190 = vmatmul.mubr.msk.bf16.vlgmr.msra.gmra.mxu0 %vm3715_vm15, %v4785_v33  ;;  %v7963_v13 = vld [vmem:[#allocation5 + $0x260] sm:$0xff]  }
 0x804   : > { %7171 = vmatprep.subr.bf16.mxu1 %v8165_v7  ;;  %7177 = vmatprep.mubr.msk.bf16.mxu1 %vm8166_vm8, %v8165_v7 }
 0x805   : > { %7206 = vmatpush3.bf16.msra.mxu0 %v7948_v30  ;;  %7213 = vmatprep.mubr.msk.bf16.mxu0 %vm8166_vm8, %v8165_v7  ;;  %v7965_v30 = vld [vmem:[#allocation5 + $0x2b8] sm:$0xff]  }
 0x806   : > { %7207 = vmatprep.subr.bf16.mxu0 %v8165_v7 }
 0x807   : > { %7172 = vmatpush3.bf16.msra.mxu1 %v7941_v46 }
 0x808   : > { %7173 = vmatprep.subr.bf16.mxu1 %v8165_v7 }
 0x809   : > { %7208 = vmatpush3.bf16.msra.mxu0 %v7950_v16 }
 0x80a   : > { %7209 = vmatprep.subr.bf16.mxu0 %v8165_v7 }
 0x80b   : > { %7174 = vmatpush3.bf16.msra.mxu1 %v7942_v59 }
 0x80c   : > { %7175 = vmatprep.subr.bf16.mxu1 %v8165_v7 }
 0x80d   : > { %7210 = vmatpush3.bf16.msra.mxu0 %v7952_v56 }
 0x80e   : > { %7211 = vmatprep.subr.bf16.mxu0 %v8165_v7 }
 0x80f   : > { %7176 = vmatpush3.bf16.msra.mxu1 %v7943_v20  ;;  %v7966_v20 = vld [vmem:[#allocation5 + $0x290] sm:$0xff]  }
 0x810   : > { %7193 = vmatprep.subr.bf16.mxu1 %v8165_v7 }
 0x811   : > { %7212 = vmatpush3.bf16.msra.mxu0 %v7954_v58 }
 0x812   : > { %7178 = vmatmul.mubr.msk.bf16.vlgmr.msra.gmra.mxu1 %vm3715_vm15, %v4707_v54  ;;  %7229 = vmatprep.subr.bf16.mxu0 %v8165_v7  ;;  %v7967_v54 = vld [vmem:[#allocation5 + $0x2b0] sm:$0xff]  }
 0x813   : > { %7194 = vmatpush3.bf16.msra.mxu1 %v7944_v41  ;;  %7201 = vmatprep.mubr.msk.bf16.mxu1 %vm8166_vm8, %v8165_v7 }
 0x814   : > { %7195 = vmatprep.subr.bf16.mxu1 %v8165_v7 }
 0x817   : > { %7196 = vmatpush3.bf16.msra.mxu1 %v7945_v19 }
 0x818   : > { %7197 = vmatprep.subr.bf16.mxu1 %v8165_v7 }
 0x81b   : > { %7198 = vmatpush3.bf16.msra.mxu1 %v7946_v62 }
 0x81c   : > { %7199 = vmatprep.subr.bf16.mxu1 %v8165_v7 }
 0x81f   : > { %7200 = vmatpush3.bf16.msra.mxu1 %v7947_v50 }
 0x820   : > { %7217 = vmatprep.subr.bf16.mxu1 %v8165_v7 }
 0x822   : > { %7202 = vmatmul.mubr.msk.bf16.vlgmr.msra.gmra.mxu1 %vm3715_vm15, %v4863_v8 }
 0x823   : > { %7218 = vmatpush3.bf16.msra.mxu1 %v7949_v1  ;;  %7225 = vmatprep.mubr.msk.bf16.mxu1 %vm8166_vm8, %v8165_v7  ;;  %v7968_v1 = vld [vmem:[#allocation5 + $0x288] sm:$0xff]  }
 0x824   : > { %7219 = vmatprep.subr.bf16.mxu1 %v8165_v7 }
 0x827   : > { %7220 = vmatpush3.bf16.msra.mxu1 %v7951_v36 }
 0x828   : > { %7221 = vmatprep.subr.bf16.mxu1 %v8165_v7 }
 0x82b   : > { %7222 = vmatpush3.bf16.msra.mxu1 %v7953_v9  ;;  %v7969_v9 = vld [vmem:[#allocation5 + $0x2a8] sm:$0xff]  }
 0x82c   : > { %7223 = vmatprep.subr.bf16.mxu1 %v8165_v7 }
 0x82f   : > { %7224 = vmatpush3.bf16.msra.mxu1 %v7955_v12  ;;  %v7970_v12 = vld [vmem:[#allocation5 + $0x280] sm:$0xff]  }
 0x830   : > { %7241 = vmatprep.subr.bf16.mxu1 %v8165_v7 }
 0x842   : > { %v3753_v32 = vpop.f32.mrf.mxu1 }
 0x843   : > { %v3759_v18 = vadd.f32 %v3753_v32, %v3682_v4  ;;  %v7971_v32 = vld [vmem:[#allocation5 + $0x2a0] sm:$0xff]  }
 0x844   : > { %v7023_v28 = vpop.f32.mrf.mxu1 }
 0x845   : > { %v7972_v28 = vld [vmem:[#allocation5 + $0x2d8] sm:$0xff]  }
 0x846   : > { %v3756_v43 = vpop.f32.mrf.mxu1 }
 0x848   : > { %v7024_v35 = vpop.f32.mrf.mxu1 }
 0x849   : > { %v7973_v35 = vld [vmem:[#allocation5 + $0x2f8] sm:$0xff]  }
 0x852   : > { %v3832_v40 = vpop.f32.mrf.mxu1 }
 0x853   : > { %v3838_v63 = vadd.f32 %v3832_v40, %v3759_v18 }
 0x854   : > { %v7035_v42 = vpop.f32.mrf.mxu1 }
 0x855   : > { %v7974_v42 = vld [vmem:[#allocation5 + $0x2d0] sm:$0xff]  }
 0x856   : > { %v3835_v22 = vpop.f32.mrf.mxu1 }
 0x858   : > { %v7036_v38 = vpop.f32.mrf.mxu1 }
 0x862   : > { %v3911_v0 = vpop.f32.mrf.mxu1 }
 0x863   : > { %v3917_v17 = vadd.f32 %v3911_v0, %v3838_v63  ;;  %v7975_v0 = vld [vmem:[#allocation5 + $0x2f0] sm:$0xff]  }
 0x864   : > { %v7047_v49 = vpop.f32.mrf.mxu1 }
 0x866   : > { %v3914_v34 = vpop.f32.mrf.mxu1 }
 0x868   : > { %v7048_v23 = vpop.f32.mrf.mxu1 }
 0x869   : > { %v7976_v23 = vld [vmem:[#allocation5 + $0x2c8] sm:$0xff]  }
 0x872   : > { %v3989_v11 = vpop.f32.mrf.mxu1 }
 0x873   : > { %v3995_v47 = vadd.f32 %v3989_v11, %v3917_v17 }
 0x874   : > { %v7059_v2 = vpop.f32.mrf.mxu1 }
 0x875   : > { %v7977_v2 = vld [vmem:[#allocation5 + $0x2e8] sm:$0xff]  }
 0x876   : > { %v3992_v15 = vpop.f32.mrf.mxu1 }
 0x877   : > { %v7978_v15 = vld [vmem:[#allocation5 + $0x2c0] sm:$0xff]  }
 0x878   : > { %v7060_v6 = vpop.f32.mrf.mxu1 }
 0x879   : > { %v7979_v6 = vld [vmem:[#allocation5 + $0x2e0] sm:$0xff]  }
 0x87b   : > { %v3673_v53 = vpop.f32.mrf.mxu0 }
 0x87d   : > { %v3675_v37 = vpop.f32.mrf.mxu0 }
 0x87f   : > { %v3676_v5 = vpop.f32.mrf.mxu0 }
 0x880   : > { %v10087_v52 = vpack.c.bf16 %v3676_v5, %v3673_v53  ;;  %v7980_v53 = vld [vmem:[#allocation5 + $0x318] sm:$0xff]  }
 0x881   : > { %v3678_v51 = vpop.f32.mrf.mxu0  ;;  %v7981_v5 = vld [vmem:[#allocation5 + $0x338] sm:$0xff]  }
 0x882   : > { %v4067_v25 = vpop.f32.mrf.mxu1  ;;  %7214 = vmatmul.mubr.msk.bf16.vlgmr.msra.gmra.mxu0 %vm3715_vm15, %v10087_v52  ;;  %v10092_v55 = vshrl.u32 %v10087_v52, 16  ;;  %v5098_v33 = vrot.slane %v10087_v52, 1  ;;  %v5254_v43 = vrot.slane %v10087_v52, 2  ;;  %v5410_v37 = vrot.slane %v10087_v52, 3 }
 0x883   : > { %v4073_v27 = vadd.f32 %v4067_v25, %v3995_v47  ;;  %7230 = vmatpush3.bf16.msra.mxu0 %v7956_v26  ;;  %v4223_v45 = vpop.f32.mrf.mxu0  ;;  %7237 = vmatprep.mubr.msk.bf16.mxu0 %vm8166_vm8, %v8165_v7 }
 0x884   : > { %v7071_v14 = vpop.f32.mrf.mxu1  ;;  %7226 = vmatmul.mubr.msk.bf16.vlgmr.msra.gmra.mxu1 %vm3715_vm15, %v10092_v55  ;;  %7231 = vmatprep.subr.bf16.mxu0 %v8165_v7  ;;  %v5176_v16 = vrot.slane %v10092_v55, 1  ;;  %v5332_v18 = vrot.slane %v10092_v55, 2  ;;  %v5488_v51 = vrot.slane %v10092_v55, 3 }
 0x885   : > { %7242 = vmatpush3.bf16.msra.mxu1 %v7957_v48  ;;  %v7095_v57 = vpop.f32.mrf.mxu0  ;;  %7249 = vmatprep.mubr.msk.bf16.mxu1 %vm8166_vm8, %v8165_v7  ;;  %v7983_v14 = vld [vmem:[#allocation5 + $0x330] sm:$0xff]  }
 0x886   : > { %v4070_v24 = vpop.f32.mrf.mxu1  ;;  %7243 = vmatprep.subr.bf16.mxu1 %v8165_v7 }
 0x887   : > { %7232 = vmatpush3.bf16.msra.mxu0 %v7958_v29  ;;  %v4226_v21 = vpop.f32.mrf.mxu0 }
 0x888   : > { %v7072_v44 = vpop.f32.mrf.mxu1  ;;  %7233 = vmatprep.subr.bf16.mxu0 %v8165_v7  ;;  %v7984_v21 = vld [vmem:[#allocation5 + $0x308] sm:$0xff]  }
 0x889   : > { %7244 = vmatpush3.bf16.msra.mxu1 %v7959_v39  ;;  %v7096_v10 = vpop.f32.mrf.mxu0 }
 0x88a   : > { %7245 = vmatprep.subr.bf16.mxu1 %v8165_v7  ;;  %v7985_v10 = vld [vmem:[#allocation5 + $0x328] sm:$0xff]  }
 0x88b   : > { %7234 = vmatpush3.bf16.msra.mxu0 %v7960_v31 }
 0x88c   : > { %7235 = vmatprep.subr.bf16.mxu0 %v8165_v7 }
 0x88d   : > { %7246 = vmatpush3.bf16.msra.mxu1 %v7961_v60  ;;  %v7986_v60 = vld [vmem:[#allocation5 + $0x300] sm:$0xff]  }
 0x88e   : > { %7247 = vmatprep.subr.bf16.mxu1 %v8165_v7 }
 0x88f   : > { %7236 = vmatpush3.bf16.msra.mxu0 %v7962_v3  ;;  %v7987_v3 = vld [vmem:[#allocation5 + $0x320] sm:$0xff]  }
 0x890   : > { %7253 = vmatprep.subr.bf16.mxu0 %v8165_v7 }
 0x891   : > { %7248 = vmatpush3.bf16.msra.mxu1 %v7963_v13  ;;  %v7988_v13 = vld [vmem:[#allocation5 + $0x358] sm:$0xff]  }
 0x892   : > { %v4145_v46 = vpop.f32.mrf.mxu1  ;;  %7238 = vmatmul.mubr.msk.bf16.vlgmr.msra.gmra.mxu0 %vm3715_vm15, %v5098_v33  ;;  %7265 = vmatprep.subr.bf16.mxu1 %v8165_v7  ;;  %v7989_v33 = vld [vmem:[#allocation5 + $0x378] sm:$0xff]  }
 0x893   : > { %v4151_v59 = vadd.f32 %v4145_v46, %v4073_v27  ;;  %v4379_v56 = vpop.f32.mrf.mxu0  ;;  %7254 = vmatpush3.bf16.msra.mxu0 %v7964_v61  ;;  %7261 = vmatprep.mubr.msk.bf16.mxu0 %vm8166_vm8, %v8165_v7  ;;  %v7982_v27 = vld [vmem:[#allocation5 + $0x310] sm:$0xff]   ;;  %v5566_v61 = vrot.slane %v10087_v52, 4  ;;  %v5644_v46 = vrot.slane %v10092_v55, 4 }
 0x894   : > { %v7083_v58 = vpop.f32.mrf.mxu1  ;;  %7250 = vmatmul.mubr.msk.bf16.vlgmr.msra.gmra.mxu1 %vm3715_vm15, %v5176_v16  ;;  %7255 = vmatprep.subr.bf16.mxu0 %v8165_v7 }
 0x895   : > { %v7119_v41 = vpop.f32.mrf.mxu0  ;;  %7266 = vmatpush3.bf16.msra.mxu1 %v7965_v30  ;;  %v4229_v19 = vadd.f32 %v4223_v45, %v4151_v59  ;;  %7273 = vmatprep.mubr.msk.bf16.mxu1 %vm8166_vm8, %v8165_v7 }
 0x896   : > { %v4148_v62 = vpop.f32.mrf.mxu1  ;;  %7267 = vmatprep.subr.bf16.mxu1 %v8165_v7  ;;  %v7991_v41 = vld [vmem:[#allocation5 + $0x370] sm:$0xff]  }
 0x897   : > { %v4382_v50 = vpop.f32.mrf.mxu0  ;;  %7256 = vmatpush3.bf16.msra.mxu0 %v7966_v20 }
 0x898   : > { %v7084_v8 = vpop.f32.mrf.mxu1  ;;  %7257 = vmatprep.subr.bf16.mxu0 %v8165_v7  ;;  %v7992_v50 = vld [vmem:[#allocation5 + $0x348] sm:$0xff]  }
 0x899   : > { %v7120_v36 = vpop.f32.mrf.mxu0  ;;  %7268 = vmatpush3.bf16.msra.mxu1 %v7967_v54 }
 0x89a   : > { %7269 = vmatprep.subr.bf16.mxu1 %v8165_v7  ;;  %v7993_v36 = vld [vmem:[#allocation5 + $0x368] sm:$0xff]  }
 0x89b   : > { %7258 = vmatpush3.bf16.msra.mxu0 %v7968_v1 }
 0x89c   : > { %7259 = vmatprep.subr.bf16.mxu0 %v8165_v7 }
 0x89d   : > { %7270 = vmatpush3.bf16.msra.mxu1 %v7969_v9  ;;  %v7994_v9 = vld [vmem:[#allocation5 + $0x340] sm:$0xff]  }
 0x89e   : > { %7271 = vmatprep.subr.bf16.mxu1 %v8165_v7 }
 0x89f   : > { %7260 = vmatpush3.bf16.msra.mxu0 %v7970_v12  ;;  %v7995_v12 = vld [vmem:[#allocation5 + $0x360] sm:$0xff]  }
 0x8a0   : > { %7277 = vmatprep.subr.bf16.mxu0 %v8165_v7 }
 0x8a1   : > { %7272 = vmatpush3.bf16.msra.mxu1 %v7971_v32  ;;  %v7996_v32 = vld [vmem:[#allocation5 + $0x398] sm:$0xff]  }
 0x8a2   : > { %v4301_v4 = vpop.f32.mrf.mxu1  ;;  %7262 = vmatmul.mubr.msk.bf16.vlgmr.msra.gmra.mxu0 %vm3715_vm15, %v5254_v43  ;;  %7289 = vmatprep.subr.bf16.mxu1 %v8165_v7  ;;  %v7997_v43 = vld [vmem:[#allocation5 + $0x3b8] sm:$0xff]  }
 0x8a3   : > { %v4307_v40 = vadd.f32 %v4301_v4, %v4229_v19  ;;  %v4535_v63 = vpop.f32.mrf.mxu0  ;;  %7278 = vmatpush3.bf16.msra.mxu0 %v7972_v28  ;;  %7285 = vmatprep.mubr.msk.bf16.mxu0 %vm8166_vm8, %v8165_v7  ;;  %v5722_v28 = vrot.slane %v10087_v52, 5  ;;  %v5800_v4 = vrot.slane %v10092_v55, 5 }
 0x8a4   : > { %v7107_v22 = vpop.f32.mrf.mxu1  ;;  %7274 = vmatmul.mubr.msk.bf16.vlgmr.msra.gmra.mxu1 %vm3715_vm15, %v5332_v18  ;;  %7279 = vmatprep.subr.bf16.mxu0 %v8165_v7 }
 0x8a5   : > { %v7143_v38 = vpop.f32.mrf.mxu0  ;;  %7290 = vmatpush3.bf16.msra.mxu1 %v7973_v35  ;;  %v4385_v17 = vadd.f32 %v4379_v56, %v4307_v40  ;;  %7297 = vmatprep.mubr.msk.bf16.mxu1 %vm8166_vm8, %v8165_v7  ;;  %v7990_v56 = vld [vmem:[#allocation5 + $0x350] sm:$0xff]  }
 0x8a6   : > { %v4304_v49 = vpop.f32.mrf.mxu1  ;;  %7291 = vmatprep.subr.bf16.mxu1 %v8165_v7  ;;  %v7998_v40 = vld [vmem:[#allocation5 + $0x390] sm:$0xff]  }
 0x8a7   : > { %v4538_v34 = vpop.f32.mrf.mxu0  ;;  %7280 = vmatpush3.bf16.msra.mxu0 %v7974_v42  ;;  %v7999_v42 = vld [vmem:[#allocation5 + $0x3b0] sm:$0xff]   ;;  %v8001_v49 = vld [vmem:[#allocation5 + $0x3a8] sm:$0xff]  }
 0x8a8   : > { %v7108_v11 = vpop.f32.mrf.mxu1  ;;  %7281 = vmatprep.subr.bf16.mxu0 %v8165_v7  ;;  %v8002_v34 = vld [vmem:[#allocation5 + $0x380] sm:$0xff]  }
 0x8a9   : > { %v7144_v47 = vpop.f32.mrf.mxu0  ;;  %7292 = vmatpush3.bf16.msra.mxu1 %v7975_v0  ;;  %v8000_v0 = vld [vmem:[#allocation5 + $0x388] sm:$0xff]   ;;  %v8004_v11 = vld [vmem:[#allocation5 + $0x3d8] sm:$0xff]  }
 0x8aa   : > { %7293 = vmatprep.subr.bf16.mxu1 %v8165_v7  ;;  %v5878_v47 = vrot.slane %v10087_v52, 6 }
 0x8ab   : > { %7282 = vmatpush3.bf16.msra.mxu0 %v7976_v23  ;;  %v8003_v23 = vld [vmem:[#allocation5 + $0x3a0] sm:$0xff]  }
 0x8ac   : > { %7283 = vmatprep.subr.bf16.mxu0 %v8165_v7 }
 0x8ad   : > { %7294 = vmatpush3.bf16.msra.mxu1 %v7977_v2  ;;  %v8005_v2 = vld [vmem:[#allocation5 + $0x3f8] sm:$0xff]  }
 0x8ae   : > { %7295 = vmatprep.subr.bf16.mxu1 %v8165_v7 }
 0x8af   : > { %7284 = vmatpush3.bf16.msra.mxu0 %v7978_v15 }
 0x8b0   : > { %7301 = vmatprep.subr.bf16.mxu0 %v8165_v7 }
 0x8b1   : > { %7296 = vmatpush3.bf16.msra.mxu1 %v7979_v6  ;;  %v5956_v6 = vrot.slane %v10092_v55, 6 }
 0x8b2   : > { %v4457_v26 = vpop.f32.mrf.mxu1  ;;  %7286 = vmatmul.mubr.msk.bf16.vlgmr.msra.gmra.mxu0 %vm3715_vm15, %v5410_v37  ;;  %7313 = vmatprep.subr.bf16.mxu1 %v8165_v7  ;;  %v8006_v37 = vld [vmem:[#allocation5 + $0x3d0] sm:$0xff]  }
 0x8b3   : > { %v4463_v48 = vadd.f32 %v4457_v26, %v4385_v17  ;;  %v4691_v25 = vpop.f32.mrf.mxu0  ;;  %7302 = vmatpush3.bf16.msra.mxu0 %v7980_v53  ;;  %7309 = vmatprep.mubr.msk.bf16.mxu0 %vm8166_vm8, %v8165_v7  ;;  %v8007_v26 = vld [vmem:[#allocation5 + $0x3f0] sm:$0xff]  }
 0x8b4   : > { %v7131_v45 = vpop.f32.mrf.mxu1  ;;  %7298 = vmatmul.mubr.msk.bf16.vlgmr.msra.gmra.mxu1 %vm3715_vm15, %v5488_v51  ;;  %7303 = vmatprep.subr.bf16.mxu0 %v8165_v7 }
 0x8b5   : > { %v7167_v29 = vpop.f32.mrf.mxu0  ;;  %7314 = vmatpush3.bf16.msra.mxu1 %v7981_v5  ;;  %v4541_v57 = vadd.f32 %v4535_v63, %v4463_v48  ;;  %7321 = vmatprep.mubr.msk.bf16.mxu1 %vm8166_vm8, %v8165_v7  ;;  %v8008_v48 = vld [vmem:[#allocation5 + $0x3c8] sm:$0xff]   ;;  %v8010_v45 = vld [vmem:[#allocation5 + $0x3c0] sm:$0xff]  }
 0x8b6   : > { %v4460_v39 = vpop.f32.mrf.mxu1  ;;  %7315 = vmatprep.subr.bf16.mxu1 %v8165_v7  ;;  %v8011_v29 = vld [vmem:[#allocation5 + $0x3e0] sm:$0xff]  }
 0x8b7   : > { %v4694_v24 = vpop.f32.mrf.mxu0  ;;  %7304 = vmatpush3.bf16.msra.mxu0 %v7982_v27  ;;  %v8009_v27 = vld [vmem:[#allocation5 + $0x3e8] sm:$0xff]   ;;  %v8012_v39 = vld [vmem:[%s10298_s9 + $0x38] sm:$0xff]  }
 0x8b8   : > { %v7132_v31 = vpop.f32.mrf.mxu1  ;;  %7305 = vmatprep.subr.bf16.mxu0 %v8165_v7  ;;  %v8015_v24 = vld [vmem:[%s10298_s9 + $0x20] sm:$0xff]  }
 0x8b9   : > { %v7168_v44 = vpop.f32.mrf.mxu0  ;;  %7316 = vmatpush3.bf16.msra.mxu1 %v7983_v14  ;;  %v6034_v14 = vrot.slane %v10087_v52, 7  ;;  %v8013_v52 = vld [vmem:[%s10298_s9 + $0x30] sm:$0xff]  }
 0x8ba   : > { %7317 = vmatprep.subr.bf16.mxu1 %v8165_v7  ;;  %v8017_v31 = vld [vmem:[%s10298_s9 + $0x10] sm:$0xff]   ;;  %v8018_v44 = vld [vmem:[%s10298_s9 + $0x8] sm:$0xff]  }
 0x8bb   : > { %7306 = vmatpush3.bf16.msra.mxu0 %v7984_v21  ;;  %v8016_v21 = vld [vmem:[%s10298_s9 + $0x18] sm:$0xff]  }
 0x8bc   : > { %7307 = vmatprep.subr.bf16.mxu0 %v8165_v7 }
 0x8bd   : > { %7318 = vmatpush3.bf16.msra.mxu1 %v7985_v10  ;;  %v8019_v10 = vld [vmem:[%s10298_s9] sm:$0xff]  }
 0x8be   : > { %7319 = vmatprep.subr.bf16.mxu1 %v8165_v7 }
 0x8bf   : > { %7308 = vmatpush3.bf16.msra.mxu0 %v7986_v60 }
 0x8c0   : > { %7325 = vmatprep.subr.bf16.mxu0 %v8165_v7 }
 0x8c1   : > { %7320 = vmatpush3.bf16.msra.mxu1 %v7987_v3 }
 0x8c2   : > { %v4613_v30 = vpop.f32.mrf.mxu1  ;;  %7310 = vmatmul.mubr.msk.bf16.vlgmr.msra.gmra.mxu0 %vm3715_vm15, %v5566_v61  ;;  %7337 = vmatprep.subr.bf16.mxu1 %v8165_v7 }
 0x8c3   : > { %v4619_v16 = vadd.f32 %v4613_v30, %v4541_v57  ;;  %v4847_v59 = vpop.f32.mrf.mxu0  ;;  %7326 = vmatpush3.bf16.msra.mxu0 %v7988_v13  ;;  %7333 = vmatprep.mubr.msk.bf16.mxu0 %vm8166_vm8, %v8165_v7  ;;  %v6112_v57 = vrot.slane %v10092_v55, 7  ;;  %v8014_v55 = vld [vmem:[%s10298_s9 + $0x28] sm:$0xff]  }
 0x8c4   : > { %v7155_v20 = vpop.f32.mrf.mxu1  ;;  %7322 = vmatmul.mubr.msk.bf16.vlgmr.msra.gmra.mxu1 %vm3715_vm15, %v5644_v46  ;;  %7327 = vmatprep.subr.bf16.mxu0 %v8165_v7 }
 0x8c5   : > { %v7191_v58 = vpop.f32.mrf.mxu0  ;;  %7338 = vmatpush3.bf16.msra.mxu1 %v7989_v33  ;;  %v4697_v54 = vadd.f32 %v4691_v25, %v4619_v16  ;;  %7345 = vmatprep.mubr.msk.bf16.mxu1 %vm8166_vm8, %v8165_v7 }
 0x8c6   : > { %v4616_v19 = vpop.f32.mrf.mxu1  ;;  %7339 = vmatprep.subr.bf16.mxu1 %v8165_v7 }
 0x8c7   : > { %v4850_v62 = vpop.f32.mrf.mxu0  ;;  %7328 = vmatpush3.bf16.msra.mxu0 %v7990_v56 }
 0x8c8   : > { %v7156_v1 = vpop.f32.mrf.mxu1  ;;  %7329 = vmatprep.subr.bf16.mxu0 %v8165_v7 }
 0x8c9   : > { %v7192_v8 = vpop.f32.mrf.mxu0  ;;  %7340 = vmatpush3.bf16.msra.mxu1 %v7991_v41 }
 0x8ca   : > { %7341 = vmatprep.subr.bf16.mxu1 %v8165_v7 }
 0x8cb   : > { %7330 = vmatpush3.bf16.msra.mxu0 %v7992_v50 }
 0x8cc   : > { %7331 = vmatprep.subr.bf16.mxu0 %v8165_v7 }
 0x8cd   : > { %7342 = vmatpush3.bf16.msra.mxu1 %v7993_v36 }
 0x8ce   : > { %7343 = vmatprep.subr.bf16.mxu1 %v8165_v7 }
 0x8cf   : > { %7332 = vmatpush3.bf16.msra.mxu0 %v7994_v9 }
 0x8d0   : > { %7349 = vmatprep.subr.bf16.mxu0 %v8165_v7 }
 0x8d1   : > { %7344 = vmatpush3.bf16.msra.mxu1 %v7995_v12 }
 0x8d2   : > { %v4769_v35 = vpop.f32.mrf.mxu1  ;;  %7334 = vmatmul.mubr.msk.bf16.vlgmr.msra.gmra.mxu0 %vm3715_vm15, %v5722_v28  ;;  %7361 = vmatprep.subr.bf16.mxu1 %v8165_v7 }
 0x8d3   : > { %v4775_v18 = vadd.f32 %v4769_v35, %v4697_v54  ;;  %7350 = vmatpush3.bf16.msra.mxu0 %v7996_v32  ;;  %7357 = vmatprep.mubr.msk.bf16.mxu0 %vm8166_vm8, %v8165_v7 }
 0x8d4   : > { %v7179_v63 = vpop.f32.mrf.mxu1  ;;  %7346 = vmatmul.mubr.msk.bf16.vlgmr.msra.gmra.mxu1 %vm3715_vm15, %v5800_v4  ;;  %7351 = vmatprep.subr.bf16.mxu0 %v8165_v7 }
 0x8d5   : > { %7362 = vmatpush3.bf16.msra.mxu1 %v7997_v43  ;;  %v4853_v22 = vadd.f32 %v4847_v59, %v4775_v18  ;;  %7369 = vmatprep.mubr.msk.bf16.mxu1 %vm8166_vm8, %v8165_v7 }
 0x8d6   : > { %v4772_v38 = vpop.f32.mrf.mxu1  ;;  %7363 = vmatprep.subr.bf16.mxu1 %v8165_v7 }
 0x8d7   : > { %7352 = vmatpush3.bf16.msra.mxu0 %v7998_v40 }
 0x8d8   : > { %v7180_v17 = vpop.f32.mrf.mxu1  ;;  %7353 = vmatprep.subr.bf16.mxu0 %v8165_v7 }
 0x8d9   : > { %7364 = vmatpush3.bf16.msra.mxu1 %v7999_v42 }
 0x8da   : > { %7365 = vmatprep.subr.bf16.mxu1 %v8165_v7 }
 0x8db   : > { %7354 = vmatpush3.bf16.msra.mxu0 %v8000_v0 }
 0x8dc   : > { %7355 = vmatprep.subr.bf16.mxu0 %v8165_v7 }
 0x8dd   : > { %7366 = vmatpush3.bf16.msra.mxu1 %v8001_v49 }
 0x8de   : > { %7367 = vmatprep.subr.bf16.mxu1 %v8165_v7 }
 0x8df   : > { %7356 = vmatpush3.bf16.msra.mxu0 %v8002_v34 }
 0x8e0   : > { %7373 = vmatprep.subr.bf16.mxu0 %v8165_v7 }
 0x8e1   : > { %7368 = vmatpush3.bf16.msra.mxu1 %v8003_v23 }
 0x8e2   : > { %v4925_v15 = vpop.f32.mrf.mxu1  ;;  %7358 = vmatmul.mubr.msk.bf16.vlgmr.msra.gmra.mxu0 %vm3715_vm15, %v5878_v47  ;;  %7385 = vmatprep.subr.bf16.mxu1 %v8165_v7 }
 0x8e3   : > { %v4931_v53 = vadd.f32 %v4925_v15, %v4853_v22  ;;  %7374 = vmatpush3.bf16.msra.mxu0 %v8004_v11  ;;  %7381 = vmatprep.mubr.msk.bf16.mxu0 %vm8166_vm8, %v8165_v7 }
 0x8e4   : > { %v7203_v5 = vpop.f32.mrf.mxu1  ;;  %7370 = vmatmul.mubr.msk.bf16.vlgmr.msra.gmra.mxu1 %vm3715_vm15, %v5956_v6  ;;  %7375 = vmatprep.subr.bf16.mxu0 %v8165_v7 }
 0x8e5   : > { %7386 = vmatpush3.bf16.msra.mxu1 %v8005_v2  ;;  %7393 = vmatprep.mubr.msk.bf16.mxu1 %vm8166_vm8, %v8165_v7 }
 0x8e6   : > { %v4928_v51 = vpop.f32.mrf.mxu1  ;;  %7387 = vmatprep.subr.bf16.mxu1 %v8165_v7 }
 0x8e7   : > { %7376 = vmatpush3.bf16.msra.mxu0 %v8006_v37 }
 0x8e8   : > { %v7204_v25 = vpop.f32.mrf.mxu1  ;;  %7377 = vmatprep.subr.bf16.mxu0 %v8165_v7 }
 0x8e9   : > { %7388 = vmatpush3.bf16.msra.mxu1 %v8007_v26 }
 0x8ea   : > { %7389 = vmatprep.subr.bf16.mxu1 %v8165_v7 }
 0x8eb   : > { %7378 = vmatpush3.bf16.msra.mxu0 %v8008_v48 }
 0x8ec   : > { %7379 = vmatprep.subr.bf16.mxu0 %v8165_v7 }
 0x8ed   : > { %7390 = vmatpush3.bf16.msra.mxu1 %v8009_v27 }
 0x8ee   : > { %7391 = vmatprep.subr.bf16.mxu1 %v8165_v7 }
 0x8ef   : > { %7380 = vmatpush3.bf16.msra.mxu0 %v8010_v45 }
 0x8f0   : > { %7397 = vmatprep.subr.bf16.mxu0 %v8165_v7 }
 0x8f1   : > { %7392 = vmatpush3.bf16.msra.mxu1 %v8011_v29 }
 0x8f2   : > { %7382 = vmatmul.mubr.msk.bf16.vlgmr.msra.gmra.mxu0 %vm3715_vm15, %v6034_v14 }
 0x8f3   : > { %7413 = vmatprep.mubr.msk.bf16.mxu0 %vm8166_vm8, %v8165_v7  ;;  %7398 = vmatpush3.bf16.msra.mxu0 %v8012_v39 }
 0x8f4   : > { %7394 = vmatmul.mubr.msk.bf16.vlgmr.msra.gmra.mxu1 %vm3715_vm15, %v6112_v57  ;;  %7399 = vmatprep.subr.bf16.mxu0 %v8165_v7 }
 0x8f7   : > { %7400 = vmatpush3.bf16.msra.mxu0 %v8013_v52 }
 0x8f8   : > { %7401 = vmatprep.subr.bf16.mxu0 %v8165_v7 }
 0x8fb   : > { %7402 = vmatpush3.bf16.msra.mxu0 %v8014_v55 }
 0x8fc   : > { %7403 = vmatprep.subr.bf16.mxu0 %v8165_v7 }
 0x8ff   : > { %7404 = vmatpush3.bf16.msra.mxu0 %v8015_v24 }
 0x900   : > { %7405 = vmatprep.subr.bf16.mxu0 %v8165_v7 }
 0x903   : > { %7406 = vmatpush3.bf16.msra.mxu0 %v8016_v21 }
 0x904   : > { %7407 = vmatprep.subr.bf16.mxu0 %v8165_v7 }
 0x907   : > { %7408 = vmatpush3.bf16.msra.mxu0 %v8017_v31 }
 0x908   : > { %7409 = vmatprep.subr.bf16.mxu0 %v8165_v7 }
 0x90b   : > { %7410 = vmatpush3.bf16.msra.mxu0 %v8018_v44 }
 0x90c   : > { %7411 = vmatprep.subr.bf16.mxu0 %v8165_v7 }
 0x90f   : > { %7412 = vmatpush3.bf16.msra.mxu0 %v8019_v10 }
 0x942   : > { %v5002_v60 = vpop.f32.mrf.mxu0 }
 0x943   : > { %v5008_v3 = vadd.f32 %v5002_v60, %v4931_v53 }
 0x944   : > { %v7215_v13 = vpop.f32.mrf.mxu0  ;;  %v5081_v61 = vpop.f32.mrf.mxu1 }
 0x945   : > { %v5087_v33 = vadd.f32 %v5081_v61, %v5008_v3 }
 0x946   : > { %v5005_v30 = vpop.f32.mrf.mxu0  ;;  %v7227_v46 = vpop.f32.mrf.mxu1 }
 0x948   : > { %v7216_v16 = vpop.f32.mrf.mxu0  ;;  %v5084_v59 = vpop.f32.mrf.mxu1 }
 0x94a   : > { %v7228_v56 = vpop.f32.mrf.mxu1 }
 0x952   : > { %v5160_v20 = vpop.f32.mrf.mxu0 }
 0x953   : > { %v5166_v58 = vadd.f32 %v5160_v20, %v5087_v33 }
 0x954   : > { %v7239_v41 = vpop.f32.mrf.mxu0  ;;  %v5238_v54 = vpop.f32.mrf.mxu1 }
 0x955   : > { %v5244_v7 = vadd.f32 %v5238_v54, %v5166_v58 }
 0x956   : > { %v5163_v19 = vpop.f32.mrf.mxu0  ;;  %v7251_v62 = vpop.f32.mrf.mxu1 }
 0x958   : > { %v7240_v50 = vpop.f32.mrf.mxu0  ;;  %v5241_v1 = vpop.f32.mrf.mxu1 }
 0x959   : > { %v6199_v1 = vld [vmem:[%s10299_s10] sm:$0x1] }
 0x95a   : > { %v7252_v8 = vpop.f32.mrf.mxu1 }
 0x962   : > { %v5316_v36 = vpop.f32.mrf.mxu0 }
 0x963   : > { %v5322_v26 = vadd.f32 %v5316_v36, %v5244_v7 }
 0x964   : > { %v7263_v9 = vpop.f32.mrf.mxu0  ;;  %v5394_v12 = vpop.f32.mrf.mxu1 }
 0x965   : > { %v5400_v45 = vadd.f32 %v5394_v12, %v5322_v26 }
 0x966   : > { %v5319_v32 = vpop.f32.mrf.mxu0  ;;  %v7275_v28 = vpop.f32.mrf.mxu1 }
 0x968   : > { %v7264_v43 = vpop.f32.mrf.mxu0  ;;  %v5397_v35 = vpop.f32.mrf.mxu1 }
 0x96a   : > { %v7276_v4 = vpop.f32.mrf.mxu1 }
 0x972   : > { %v5472_v18 = vpop.f32.mrf.mxu0 }
 0x973   : > { %v5478_v14 = vadd.f32 %v5472_v18, %v5400_v45 }
 0x974   : > { %v7287_v40 = vpop.f32.mrf.mxu0  ;;  %v5550_v63 = vpop.f32.mrf.mxu1 }
 0x975   : > { %v5556_v57 = vadd.f32 %v5550_v63, %v5478_v14 }
 0x976   : > { %v5475_v42 = vpop.f32.mrf.mxu0  ;;  %v7299_v22 = vpop.f32.mrf.mxu1 }
 0x978   : > { %v7288_v38 = vpop.f32.mrf.mxu0  ;;  %v5553_v0 = vpop.f32.mrf.mxu1 }
 0x97a   : > { %v7300_v17 = vpop.f32.mrf.mxu1 }
 0x982   : > { %v5628_v49 = vpop.f32.mrf.mxu0 }
 0x983   : > { %v5634_v39 = vadd.f32 %v5628_v49, %v5556_v57 }
 0x984   : > { %v7311_v34 = vpop.f32.mrf.mxu0  ;;  %v5706_v23 = vpop.f32.mrf.mxu1 }
 0x985   : > { %v5712_v21 = vadd.f32 %v5706_v23, %v5634_v39 }
 0x986   : > { %v5631_v11 = vpop.f32.mrf.mxu0  ;;  %v7323_v47 = vpop.f32.mrf.mxu1 }
 0x988   : > { %v7312_v2 = vpop.f32.mrf.mxu0  ;;  %v5709_v15 = vpop.f32.mrf.mxu1 }
 0x98a   : > { %v7324_v6 = vpop.f32.mrf.mxu1 }
 0x992   : > { %v5784_v53 = vpop.f32.mrf.mxu0 }
 0x993   : > { %v5790_v10 = vadd.f32 %v5784_v53, %v5712_v21 }
 0x994   : > { %v7335_v37 = vpop.f32.mrf.mxu0  ;;  %v5862_v5 = vpop.f32.mrf.mxu1 }
 0x995   : > { %v5868_v61 = vadd.f32 %v5862_v5, %v5790_v10 }
 0x996   : > { %v5787_v51 = vpop.f32.mrf.mxu0  ;;  %v7347_v48 = vpop.f32.mrf.mxu1 }
 0x998   : > { %v7336_v25 = vpop.f32.mrf.mxu0  ;;  %v5865_v27 = vpop.f32.mrf.mxu1 }
 0x99a   : > { %v7348_v29 = vpop.f32.mrf.mxu1 }
 0x9a2   : > { %v5940_v52 = vpop.f32.mrf.mxu0 }
 0x9a3   : > { %v5946_v33 = vadd.f32 %v5940_v52, %v5868_v61 }
 0x9a4   : > { %v7359_v55 = vpop.f32.mrf.mxu0  ;;  %v6018_v24 = vpop.f32.mrf.mxu1 }
 0x9a5   : > { %v6024_v30 = vadd.f32 %v6018_v24, %v5946_v33 }
 0x9a6   : > { %v5943_v31 = vpop.f32.mrf.mxu0  ;;  %v7371_v44 = vpop.f32.mrf.mxu1 }
 0x9a8   : > { %v7360_v60 = vpop.f32.mrf.mxu0  ;;  %v6021_v3 = vpop.f32.mrf.mxu1 }
 0x9aa   : > { %v7372_v13 = vpop.f32.mrf.mxu1 }
 0x9b2   : > { %v6096_v46 = vpop.f32.mrf.mxu0 }
 0x9b3   : > { %v6102_v16 = vadd.f32 %v6096_v46, %v6024_v30 }
 0x9b4   : > { %v7383_v59 = vpop.f32.mrf.mxu0  ;;  %v6174_v56 = vpop.f32.mrf.mxu1 }
 0x9b5   : > { %v6180_v20 = vadd.f32 %v6174_v56, %v6102_v16 }
 0x9b6   : > { %v6099_v58 = vpop.f32.mrf.mxu0  ;;  %v7395_v41 = vpop.f32.mrf.mxu1 }
 0x9b7   : > { %v6181_v54 = vmax.f32 %v6180_v20, 0.0 }
 0x9b8   : > { %v7384_v7 = vpop.f32.mrf.mxu0  ;;  %v6177_v19 = vpop.f32.mrf.mxu1 }
 0x9b9   : > { %v6182_v62 = vpack.c.bf16 %v6181_v54, %v6181_v54 }
 0x9ba   : > { %v7396_v50 = vpop.f32.mrf.mxu1 }
 0x9bb   : > { %7414 = vmatmul.mubr.bf16.vlgmr.msra.gmra.mxu0 %v6182_v62 }
 0xa7b   : > { %v6282_v8 = vpop.f32.mrf.mxu0 }
 0xa7c   : > { %v6283_v36 = vadd.f32 %v6282_v8, %v6199_v1 }
 0xa7d   : > { %v7415_v9 = vpop.f32.mrf.mxu0 }
 0xa7e   : > { %6288 = vst [vmem:[%s406_s15] sm:$0x1] %v6283_v36 }
 0xa7f   : > { %v6285_v12 = vpop.f32.mrf.mxu0 }
 0xa80   : > { %8085 = shalt.err (!%p8082_p3)
}
 0xa81   : > { %s8086_s13 = scalar_lea.hbm %s10248_s25, 16  ;;  %s8090_s24 = scalar_lea.hbm %s10300_s11, 32 }
 0xa82   : > { %p8087_p2 = scmp.ne.s32.totalorder %s10248_s25, %s8086_s13  ;;  %p8091_p6 = scmp.lt.s32.totalorder %s10248_s25, %s10300_s11 }
 0xa83   : > { %p8092_p9 = scmp.lt.s32.totalorder %s8090_s24, %s8086_s13 }
 0xa84   : > { %p8088_p4 = pnand %p8087_p2, %p8271_p5 }
 0xa85   : > { %p8093_p12 = por %p8092_p9, %p8091_p6 }
 0xa86   : > { %p8089_p13 = pneg %p8088_p4 }
 0xa88   : > { %p8094_p10 = pnand %p8093_p12, %p8089_p13 }
 0xa8a   : > { %8097 = shalt.err (!%p8094_p10)
}
 0xa8b   : > { %7426 = dma.vmem_to_hbm [thread:$0]  (%p8271_p5), %s10250_s14, 16, %s10248_s25, %s6290_s23   ;;  %v7416_v32 = vpop.f32.mrf.mxu0 }
 0xa8c PF: > { %p7443_p7 = scmp.ge.s32.totalorder %s8140_s20, 2  ;;  %s6314_s19 = sand.u32 1, %s8128_s17  }
 0xa8d   : > { %p10474_p8 = scmp.ne.s32.totalorder %s10364_s28, 0  ;;  %s6315_s26 = scalar_lea.sflag [#allocation4], %s6314_s19 }
 0xa8f   : > { %p7436_p11 = pnand %p7443_p7, %p10474_p8 }
 0xa91   : > { %p7437_p0 = pneg %p7436_p11 }
 0xa93   : > { %8123 = dma.done.wait (%p7437_p0), %s6315_s26, 16  }
 0xa94   : > { %8125 = vsyncadd (%p7437_p0), %s6315_s26, 4294967280  ;;  %s10475_s20 = sld [smem:[#allocation12_spill]]  ;;  %s10478_s17 = smov %s8132_s18 }
 0xa95   : > { %s10476_s21 = sld [smem:[#allocation11_spill]] }
 0xa96   : > { %s10477_s19 = sld [smem:[#allocation13_spill]] }
 0xa9a   : > { %p23_p1 = scmp.ge.s32.totalorder %s10475_s20, 4  }
 0xa9b   : > { %s10479_s18 = smov %s10476_s21 }
 0xa9c   :  { %25 = sbr.rel (!%p23_p1) target bundleno = 5 (0x5), region = 139 }
 0xaa1   :  { %6319 = vsyncpa [#allocation3], 1 }
 0xaa2   :  { %6321 = vsyncpa [#allocation3 + $0x1], 1 }
 0xaa3   :  { %6322 = vsyncpa [#allocation6], 1 }
 0xaa4   :  { %6323 = vsyncpa [#allocation4], 1 }
 0xaa5   :  { %6325 = vsyncpa [#allocation4 + $0x1], 1 }

</bundles_post_ra>
